<compile_context>
chip_gen: v7x
topology: tpu7x:2x2x1
jax: 0.10.0
libtpu: 0.0.40
codegen_flags: <defaults>
</compile_context>

<pallas_src>
import functools

import jax
import jax.numpy as jnp
from jax.experimental import pallas as pl
from jax.experimental.pallas import tpu as pltpu


MXU_DTYPE = jnp.bfloat16      # MXU operand dtype (accumulation stays f32)
NEG_INF = -1e30               # additive mask for non-edges (finite, bf16-representable)
LANE = 128


def _round_up(v, m):
    return ((v + m - 1) // m) * m


def _pad2(a, rows, cols):
    """Zero-pad a 2-D array to [rows, cols] (real data in the top-left corner)."""
    out = jnp.zeros((rows, cols), jnp.float32)
    return out.at[:a.shape[0], :a.shape[1]].set(a.astype(jnp.float32))


def _mxu_dot(a, b):
    """2-D matmul with bf16 MXU operands and f32 accumulation."""
    return jnp.dot(a.astype(MXU_DTYPE), b.astype(MXU_DTYPE),
                   preferred_element_type=jnp.float32)


# ----------------------------------------------------------------------------
# One GAT layer (+ optional BN/ELU/residual epilogue, + optional fused decoder),
# row-tiled over destination nodes.
# ----------------------------------------------------------------------------
def _gat_layer_kernel(*refs, heads, out_ch, tile_rows, post, residual, with_decoder):
    it = iter(refs)
    x_ref = next(it)        # [Np, Fin_p]  f32   (full node set, resident across grid)
    w_ref = next(it)        # [Fin_p, HC_p] f32  projection weight (all heads)
    wdst_ref = next(it)     # [Fin_p, 128]  f32  col h = W_h @ att_dst_h
    wsrc_ref = next(it)     # [H, Fin_p]    f32  row h = W_h @ att_src_h
    bias_ref = next(it)     # [H, T, Np]    bf16 edge-attn term + NEG_INF mask (row tile)
    linb_ref = next(it)     # [1, HC_p]     f32
    if post:
        bn_scale_ref = next(it)
        bn_shift_ref = next(it)
    if with_decoder:
        w1_ref = next(it); b1_ref = next(it)
        ds_ref = next(it); dsh_ref = next(it)
        w2_ref = next(it); b2_ref = next(it)
        w3_ref = next(it); b3_ref = next(it)
    y_ref = next(it)        # [T, HC_p] out (lane-dense)
    if with_decoder:
        rec_ref = next(it)  # [T, D3_p] out (lane-dense)

    hc_p = w_ref.shape[1]
    i0 = pl.multiple_of(pl.program_id(0) * tile_rows, tile_rows)

    x_all = x_ref[...]                                   # [Np, Fin_p]  (sources)
    x_rows = x_ref[pl.ds(i0, tile_rows), :]              # [T, Fin_p]   (destinations)

    # (1) node projection for ALL heads: one lane-dense MXU matmul, no broadcast copies.
    hs2d = _mxu_dot(x_all, w_ref[...])                   # [Np, HC_p] f32

    # (2) attention logits as lane-dense bf16 matmuls (no rank-1 outputs, no xb copy).
    a_dst = _mxu_dot(x_rows, wdst_ref[...])              # [T, 128]; col h = dst logit
    a_src = jnp.einsum("hf,nf->hn",
                       wsrc_ref[...].astype(MXU_DTYPE), x_all.astype(MXU_DTYPE),
                       preferred_element_type=jnp.float32)      # [H, Np]; lanes = sources

    col = jax.lax.broadcasted_iota(jnp.int32, (1, hc_p), 1)

    # (3) per-head scores -> softmax -> aggregation.  The loop is unrolled (H <= 4) and
    # every matmul below has a full-lane-width (128) output; head h's result lands
    # directly in lanes [h*C, (h+1)*C) so no concat / transpose epilogue is needed.
    y = jnp.zeros((tile_rows, hc_p), jnp.float32)
    for h in range(heads):
        b_h = bias_ref[h].astype(jnp.float32)            # [T, Np]  (bf16 -> f32)
        s = a_dst[:, h:h + 1] + a_src[h:h + 1, :] + b_h  # logits
        s = jnp.where(s > 0.0, s, 0.2 * s)               # LeakyReLU(0.2)
        m = jnp.max(s, axis=-1, keepdims=True)           # self loops => >=1 finite entry
        p = jnp.exp(s - m)
        alpha = p / jnp.sum(p, axis=-1, keepdims=True)   # exact softmax (parity-safe)
        # attention dropout (p=0.1) is identity in eval mode
        head_cols = (col >= h * out_ch) & (col < (h + 1) * out_ch)
        hs_h = jnp.where(head_cols, hs2d, 0.0)           # keep only head h's columns
        y = y + _mxu_dot(alpha, hs_h)                    # [T, HC_p]

    y = y + linb_ref[...]                                # GATConv bias

    if post:
        y = y * bn_scale_ref[...] + bn_shift_ref[...]    # BatchNorm (eval, folded)
        y = jnp.where(y > 0.0, y, jnp.exp(y) - 1.0)      # ELU(alpha=1)
        if residual:
            y = y + x_rows                               # shapes match (checked in glue)
        # Dropout(0.2) is identity in eval mode
    y_ref[...] = y                                       # lane-dense full-width store

    if with_decoder:
        h1 = jnp.maximum(_mxu_dot(y, w1_ref[...]) + b1_ref[...], 0.0)   # Linear -> ReLU
        h1 = h1 * ds_ref[...] + dsh_ref[...]                            # BatchNorm1d (eval)
        # Dropout(0.1) is identity in eval mode
        h2 = jnp.maximum(_mxu_dot(h1, w2_ref[...]) + b2_ref[...], 0.0)  # Linear -> ReLU
        rec_ref[...] = _mxu_dot(h2, w3_ref[...]) + b3_ref[...]          # Linear


def _call_gat_layer(x_pad, bias, packed, *, heads, out_ch, tile_rows, post, residual,
                    decoder_pack=None):
    n_pad = x_pad.shape[0]
    hc_p = packed["w2d"].shape[1]
    grid = (n_pad // tile_rows,)
    with_decoder = decoder_pack is not None

    def whole_spec(arr):
        nd = arr.ndim
        return pl.BlockSpec(arr.shape, lambda *_: (0,) * nd)

    inputs = [x_pad, packed["w2d"], packed["wdst_cols"], packed["wsrc_rows"], bias,
              packed["lin_b"]]
    in_specs = [whole_spec(x_pad), whole_spec(packed["w2d"]),
                whole_spec(packed["wdst_cols"]), whole_spec(packed["wsrc_rows"]),
                # stream the bias one destination-row tile at a time
                pl.BlockSpec((heads, tile_rows, n_pad), lambda i: (0, i, 0)),
                whole_spec(packed["lin_b"])]
    if post:
        inputs += [packed["bn_scale"], packed["bn_shift"]]
        in_specs += [whole_spec(packed["bn_scale"]), whole_spec(packed["bn_shift"])]
    if with_decoder:
        for k in ("W1", "b1", "d_scale", "d_shift", "W2", "b2", "W3", "b3"):
            inputs.append(decoder_pack[k])
            in_specs.append(whole_spec(decoder_pack[k]))

    y_spec = pl.BlockSpec((tile_rows, hc_p), lambda i: (i, 0))
    y_shape = jax.ShapeDtypeStruct((n_pad, hc_p), jnp.float32)
    if with_decoder:
        d3_p = decoder_pack["W3"].shape[1]
        out_specs = (y_spec, pl.BlockSpec((tile_rows, d3_p), lambda i: (i, 0)))
        out_shape = (y_shape, jax.ShapeDtypeStruct((n_pad, d3_p), jnp.float32))
    else:
        out_specs = y_spec
        out_shape = y_shape

    kernel = functools.partial(_gat_layer_kernel, heads=heads, out_ch=out_ch,
                               tile_rows=tile_rows, post=post, residual=residual,
                               with_decoder=with_decoder)
    return pl.pallas_call(
        kernel,
        grid=grid,
        in_specs=in_specs,
        out_specs=out_specs,
        out_shape=out_shape,
        compiler_params=pltpu.CompilerParams(
            dimension_semantics=("parallel",),        # shard row tiles across TCs (v7x)
            vmem_limit_bytes=48 * 1024 * 1024),       # below v7x's 64 MiB physical VMEM
    )(*inputs)


# ----------------------------------------------------------------------------
# Glue: dense [H, Npad, Npad] bias built from the sparse edge list (bf16 in HBM).
# ----------------------------------------------------------------------------
def build_attention_bias(edge_index, edge_attr, num_nodes, n_pad, gat_params):
    # bias[h, i, j] = edge-attention term of edge j->i (incl. PyG 'mean' self loops),
    #                 NEG_INF on non-edges / padded rows / padded columns.
    # NOTE: duplicate (dst, src) pairs collapse (last write wins) and pre-existing self
    # loops are overwritten by the 'mean'-filled loop attribute; acceptable for the
    # simple-graph case this model targets.
    src, dst = edge_index[0], edge_index[1]
    de = edge_attr.shape[1]

    sums = jnp.zeros((num_nodes, de), jnp.float32).at[dst].add(edge_attr)
    cnt = jnp.zeros((num_nodes,), jnp.float32).at[dst].add(1.0)
    loop_attr = sums / jnp.maximum(cnt, 1.0)[:, None]      # fill_value='mean'
    diag = jnp.arange(num_nodes)

    biases = []
    for p in gat_params:
        heads, c = p["att_src"].shape
        # fold lin_edge with att_edge:  we[d, h] = sum_c W_edge[d, h*C+c] * att_edge[h, c]
        we = jnp.einsum("dhc,hc->dh", p["W_edge"].reshape(de, heads, c), p["att_edge"])
        e_alpha = edge_attr @ we                            # [E, H]
        l_alpha = loop_attr @ we                            # [N, H]
        b = jnp.full((heads, n_pad, n_pad), NEG_INF, jnp.float32)
        b = b.at[:, dst, src].set(e_alpha.T)
        b = b.at[:, diag, diag].set(l_alpha.T)
        biases.append(b.astype(jnp.bfloat16))               # halve HBM/VMEM traffic
    return biases


# ----------------------------------------------------------------------------
# Forward pass wrapper (eval mode):  embedding, node_recon = model(data)
# ----------------------------------------------------------------------------
def graph_autoencoder_forward(x, edge_index, edge_attr, params):
    n, node_dim = x.shape
    num_layers = len(params["gat"])
    dec = params["decoder"]

    n_pad = _round_up(max(n, LANE), LANE)
    # Small graphs: a small tile so the grid / megacore path is exercised; large graphs:
    # 128-row tiles.  TODO(synk): halve tile_rows on v7x (64 MiB VMEM) at large N.
    tile_rows = 64 if n_pad <= 128 else 128

    biases = build_attention_bias(edge_index, edge_attr, n, n_pad, params["gat"])

    cur_real = node_dim
    cur_pad = _round_up(max(node_dim, LANE), LANE)
    x_cur = jnp.zeros((n_pad, cur_pad), jnp.float32).at[:n, :node_dim].set(x)

    emb_dim = None
    recon = None
    for i, gp in enumerate(params["gat"]):
        heads, c = gp["att_src"].shape
        fin = gp["W"].shape[0]
        assert fin == cur_real
        hc = heads * c
        hc_p = _round_up(max(hc, LANE), LANE)

        wb = gp["W"].reshape(fin, heads, c)
        packed = dict(
            w2d=_pad2(gp["W"], cur_pad, hc_p),                                    # [Fin_p, HC_p]
            wdst_cols=_pad2(jnp.einsum("fhc,hc->fh", wb, gp["att_dst"]), cur_pad, LANE),
            wsrc_rows=_pad2(jnp.einsum("fhc,hc->hf", wb, gp["att_src"]), heads, cur_pad),
            lin_b=_pad2(gp["bias"][None, :], 1, hc_p),
        )

        post = i < num_layers - 1
        residual = post and (hc == cur_real)    # residual only if shapes match (as in torch)
        if post:
            bn = params["bn"][i]
            scale = bn["gamma"] * jax.lax.rsqrt(bn["var"] + 1e-5)
            shift = bn["beta"] - bn["mean"] * scale
            packed["bn_scale"] = _pad2(scale, 1, hc_p)
            packed["bn_shift"] = _pad2(shift, 1, hc_p)

        decoder_pack = None
        if i == num_layers - 1:
            d1_p = _round_up(max(dec["W1"].shape[1], LANE), LANE)
            d2_p = _round_up(max(dec["W2"].shape[1], LANE), LANE)
            d3_p = _round_up(max(dec["W3"].shape[1], LANE), LANE)
            d_scale = dec["bn_gamma"] * jax.lax.rsqrt(dec["bn_var"] + 1e-5)
            d_shift = dec["bn_beta"] - dec["bn_mean"] * d_scale
            decoder_pack = dict(
                W1=_pad2(dec["W1"], hc_p, d1_p), b1=_pad2(dec["b1"], 1, d1_p),
                d_scale=_pad2(d_scale, 1, d1_p), d_shift=_pad2(d_shift, 1, d1_p),
                W2=_pad2(dec["W2"], d1_p, d2_p), b2=_pad2(dec["b2"], 1, d2_p),
                W3=_pad2(dec["W3"], d2_p, d3_p), b3=_pad2(dec["b3"], 1, d3_p))

        result = _call_gat_layer(x_cur, biases[i], packed, heads=heads, out_ch=c,
                                 tile_rows=tile_rows, post=post, residual=residual,
                                 decoder_pack=decoder_pack)
        if decoder_pack is None:
            x_cur = result
        else:
            x_cur, recon = result
            emb_dim = hc
        cur_real, cur_pad = hc, hc_p

    embedding = x_cur[:n, :emb_dim]
    node_recon = recon[:n, :dec["W3"].shape[1]]
    return embedding, node_recon


# ----------------------------------------------------------------------------
# Parameter init (deterministic, synthetic -- shapes follow the module __init__)
# ----------------------------------------------------------------------------
def init_params(key, node_dim, edge_dim, hidden_dim, embedding_dim,
                num_gat_layers, gat_heads):
    keys = iter(jax.random.split(key, 64))

    def glorot(k, shape):
        fan_in, fan_out = shape[0], shape[-1]
        std = (2.0 / (fan_in + fan_out)) ** 0.5
        return std * jax.random.normal(k, shape, jnp.float32)

    def kaiming_out(k, shape):            # kaiming_normal_(mode='fan_out', relu)
        std = (2.0 / shape[1]) ** 0.5
        return std * jax.random.normal(k, shape, jnp.float32)

    gat, bns = [], []
    cur = node_dim
    for i in range(num_gat_layers):
        if i == num_gat_layers - 1:
            c, h = embedding_dim, 1
        else:
            c, h = hidden_dim, gat_heads
        gat.append(dict(
            W=glorot(next(keys), (cur, h * c)),
            att_src=glorot(next(keys), (h, c)),
            att_dst=glorot(next(keys), (h, c)),
            W_edge=glorot(next(keys), (edge_dim, h * c)),
            att_edge=glorot(next(keys), (h, c)),
            bias=jnp.zeros((h * c,), jnp.float32),
        ))
        if i < num_gat_layers - 1:
            d = h * c
            bns.append(dict(gamma=jnp.ones((1, d), jnp.float32),
                            beta=jnp.zeros((1, d), jnp.float32),
                            mean=jnp.zeros((1, d), jnp.float32),
                            var=jnp.ones((1, d), jnp.float32)))
        cur = h * c

    h2 = hidden_dim * 2
    decoder = dict(
        W1=kaiming_out(next(keys), (embedding_dim, h2)),
        b1=jnp.zeros((1, h2), jnp.float32),
        bn_gamma=jnp.ones((1, h2), jnp.float32),
        bn_beta=jnp.zeros((1, h2), jnp.float32),
        bn_mean=jnp.zeros((1, h2), jnp.float32),
        bn_var=jnp.ones((1, h2), jnp.float32),
        W2=kaiming_out(next(keys), (h2, hidden_dim)),
        b2=jnp.zeros((1, hidden_dim), jnp.float32),
        W3=kaiming_out(next(keys), (hidden_dim, node_dim)),
        b3=jnp.zeros((1, node_dim), jnp.float32),
    )
    return dict(gat=gat, bn=bns, decoder=decoder)


if __name__ == "__main__":
    # Small shapes consistent with the module:
    N = 16                 # nodes
    node_feature_dim = 8
    edge_feature_dim = 4
    hidden_dim = 16
    embedding_dim = 8
    num_gat_layers = 2
    gat_heads = 4

    key = jax.random.PRNGKey(0)
    k_x, k_e, k_p = jax.random.split(key, 3)

    x = jax.random.normal(k_x, (N, node_feature_dim), jnp.float32)

    # deterministic self-loop-free edge set (ring + skip connections), E = 32
    src = jnp.concatenate([jnp.arange(N), jnp.arange(N)])
    dst = jnp.concatenate([(jnp.arange(N) + 1) % N, (jnp.arange(N) + 2) % N])
    edge_index = jnp.stack([src, dst]).astype(jnp.int32)           # [2, 32]
    edge_attr = jax.random.normal(k_e, (edge_index.shape[1], edge_feature_dim),
                                  jnp.float32)

    params = init_params(k_p, node_feature_dim, edge_feature_dim,
                         hidden_dim, embedding_dim, num_gat_layers, gat_heads)

    fwd = jax.jit(graph_autoencoder_forward)
    embedding, node_recon = fwd(x, edge_index, edge_attr, params)
    jax.block_until_ready((embedding, node_recon))

    assert embedding.shape == (N, embedding_dim)
    assert node_recon.shape == (N, node_feature_dim)
    assert bool(jnp.isfinite(embedding).all()) and bool(jnp.isfinite(node_recon).all())
    print("KERNEL_OK")
</pallas_src>

<mosaic_0001>
module attributes {stable_mosaic.version = 11 : i64} {
  func.func private @main(%arg0: i32) attributes {dimension_semantics = [#tpu.dimension_semantics<core_parallel>], iteration_bounds = array<i64: 2>, tpu.core_type = #tpu.core_type<sc_scalar_subcore>, window_params = []} {
    return
  }
}

module attributes {stable_mosaic.version = 11 : i64} {
  func.func private @main(%arg0: i32) attributes {dimension_semantics = [#tpu.dimension_semantics<core_parallel>], iteration_bounds = array<i64: 2>, tpu.core_type = #tpu.core_type<sc_scalar_subcore>, window_params = []} {
    return
  }
}

module attributes {stable_mosaic.version = 11 : i64} {
  func.func @_gat_layer_kernel(%arg0: i32, %arg1: memref<128x128xf32, #tpu.memory_space<vmem>>, %arg2: memref<128x128xf32, #tpu.memory_space<vmem>>, %arg3: memref<128x128xf32, #tpu.memory_space<vmem>>, %arg4: memref<4x128xf32, #tpu.memory_space<vmem>>, %arg5: memref<4x64x128xbf16, #tpu.memory_space<vmem>>, %arg6: memref<1x128xf32, #tpu.memory_space<vmem>>, %arg7: memref<1x128xf32, #tpu.memory_space<vmem>>, %arg8: memref<1x128xf32, #tpu.memory_space<vmem>>, %arg9: memref<64x128xf32, #tpu.memory_space<vmem>>) attributes {dimension_semantics = [#tpu.dimension_semantics<parallel>], iteration_bounds = array<i64: 2>, scalar_prefetch = 0 : i64, scratch_operands = 0 : i64, tpu.core_type = #tpu.core_type<tc>, window_params = [{pipeline_mode = #tpu.pipeline_mode<synchronous>, transform_indices = @transform_0, window_bounds = array<i64: 128, 128>}, {pipeline_mode = #tpu.pipeline_mode<synchronous>, transform_indices = @transform_1, window_bounds = array<i64: 128, 128>}, {pipeline_mode = #tpu.pipeline_mode<synchronous>, transform_indices = @transform_2, window_bounds = array<i64: 128, 128>}, {pipeline_mode = #tpu.pipeline_mode<synchronous>, transform_indices = @transform_3, window_bounds = array<i64: 4, 128>}, {transform_indices = @transform_4, window_bounds = array<i64: 4, 64, 128>}, {pipeline_mode = #tpu.pipeline_mode<synchronous>, transform_indices = @transform_5, window_bounds = array<i64: 1, 128>}, {pipeline_mode = #tpu.pipeline_mode<synchronous>, transform_indices = @transform_6, window_bounds = array<i64: 1, 128>}, {pipeline_mode = #tpu.pipeline_mode<synchronous>, transform_indices = @transform_7, window_bounds = array<i64: 1, 128>}, {transform_indices = @transform_8, window_bounds = array<i64: 64, 128>}]} {
    %c64_i32 = arith.constant 64 : i32
    %0 = arith.muli %arg0, %c64_i32 : i32
    %1 = tpu.assume_multiple %0, 64 : i32
    %c0 = arith.constant 0 : index
    %c0_0 = arith.constant 0 : index
    %2 = vector.load %arg1[%c0, %c0_0] : memref<128x128xf32, #tpu.memory_space<vmem>>, vector<128x128xf32>
    %3 = arith.index_cast %1 : i32 to index
    %c0_1 = arith.constant 0 : index
    %4 = vector.load %arg1[%3, %c0_1] : memref<128x128xf32, #tpu.memory_space<vmem>>, vector<64x128xf32>
    %c0_2 = arith.constant 0 : index
    %c0_3 = arith.constant 0 : index
    %5 = vector.load %arg2[%c0_2, %c0_3] : memref<128x128xf32, #tpu.memory_space<vmem>>, vector<128x128xf32>
    %6 = arith.truncf %2 : vector<128x128xf32> to vector<128x128xbf16>
    %7 = arith.truncf %5 : vector<128x128xf32> to vector<128x128xbf16>
    %cst = arith.constant dense<0.000000e+00> : vector<128x128xf32>
    %8 = tpu.matmul %6, %7, %cst {dimension_numbers = #tpu.dot_dimension_numbers<[1], [0], [0], [1], [0, 0, 1, 1], [], []>} : vector<128x128xbf16>, vector<128x128xbf16>, vector<128x128xf32> -> vector<128x128xf32>
    %c0_4 = arith.constant 0 : index
    %c0_5 = arith.constant 0 : index
    %9 = vector.load %arg3[%c0_4, %c0_5] : memref<128x128xf32, #tpu.memory_space<vmem>>, vector<128x128xf32>
    %10 = arith.truncf %4 : vector<64x128xf32> to vector<64x128xbf16>
    %11 = arith.truncf %9 : vector<128x128xf32> to vector<128x128xbf16>
    %cst_6 = arith.constant dense<0.000000e+00> : vector<64x128xf32>
    %12 = tpu.matmul %10, %11, %cst_6 {dimension_numbers = #tpu.dot_dimension_numbers<[1], [0], [0], [1], [0, 0, 1, 1], [], []>} : vector<64x128xbf16>, vector<128x128xbf16>, vector<64x128xf32> -> vector<64x128xf32>
    %c0_7 = arith.constant 0 : index
    %c0_8 = arith.constant 0 : index
    %13 = vector.load %arg4[%c0_7, %c0_8] : memref<4x128xf32, #tpu.memory_space<vmem>>, vector<4x128xf32>
    %14 = arith.truncf %13 : vector<4x128xf32> to vector<4x128xbf16>
    %15 = arith.truncf %2 : vector<128x128xf32> to vector<128x128xbf16>
    "tpu.trace_start"() <{level = 10 : i32, message = "hf,nf->hn"}> : () -> ()
    %cst_9 = arith.constant dense<0.000000e+00> : vector<4x128xf32>
    %16 = tpu.matmul %14, %15, %cst_9 {dimension_numbers = #tpu.dot_dimension_numbers<[1], [1], [0], [0], [0, 0, 1, 0], [], []>} : vector<4x128xbf16>, vector<128x128xbf16>, vector<4x128xf32> -> vector<4x128xf32>
    "tpu.trace_stop"() : () -> ()
    %17 = tpu.iota {dimensions = array<i32: 1>} : vector<1x128xi32>
    %cst_10 = arith.constant 0.000000e+00 : f32
    %18 = vector.broadcast %cst_10 : f32 to vector<64x128xf32>
    %c0_11 = arith.constant 0 : index
    %c0_12 = arith.constant 0 : index
    %c0_13 = arith.constant 0 : index
    %19 = vector.load %arg5[%c0_11, %c0_12, %c0_13] : memref<4x64x128xbf16, #tpu.memory_space<vmem>>, vector<1x64x128xbf16>
    %20 = vector.shape_cast %19 : vector<1x64x128xbf16> to vector<64x128xbf16>
    %21 = arith.extf %20 : vector<64x128xbf16> to vector<64x128xf32>
    %22 = vector.extract_strided_slice %12 {offsets = [0, 0], sizes = [64, 1], strides = [1, 1]} : vector<64x128xf32> to vector<64x1xf32>
    %23 = vector.extract_strided_slice %16 {offsets = [0, 0], sizes = [1, 128], strides = [1, 1]} : vector<4x128xf32> to vector<1x128xf32>
    %24 = vector.broadcast %22 : vector<64x1xf32> to vector<64x128xf32>
    %25 = vector.broadcast %23 : vector<1x128xf32> to vector<64x128xf32>
    %26 = arith.addf %24, %25 : vector<64x128xf32>
    %27 = arith.addf %26, %21 : vector<64x128xf32>
    %cst_14 = arith.constant 0.000000e+00 : f32
    %28 = vector.broadcast %cst_14 : f32 to vector<64x128xf32>
    %29 = arith.cmpf ogt, %27, %28 : vector<64x128xf32>
    %cst_15 = arith.constant 2.000000e-01 : f32
    %30 = vector.broadcast %cst_15 : f32 to vector<64x128xf32>
    %31 = arith.mulf %30, %27 : vector<64x128xf32>
    %32 = arith.select %29, %27, %31 : vector<64x128xi1>, vector<64x128xf32>
    %cst_16 = arith.constant dense<0xFF800000> : vector<64xf32>
    %33 = vector.multi_reduction <maximumf>, %32, %cst_16 [1] : vector<64x128xf32> to vector<64xf32>
    %34 = vector.shape_cast %33 : vector<64xf32> to vector<64x1xf32>
    %35 = vector.broadcast %34 : vector<64x1xf32> to vector<64x128xf32>
    %36 = arith.subf %32, %35 : vector<64x128xf32>
    %37 = math.exp %36 : vector<64x128xf32>
    %cst_17 = arith.constant dense<0.000000e+00> : vector<64xf32>
    %38 = vector.multi_reduction <add>, %37, %cst_17 [1] : vector<64x128xf32> to vector<64xf32>
    %39 = vector.shape_cast %38 : vector<64xf32> to vector<64x1xf32>
    %40 = vector.broadcast %39 : vector<64x1xf32> to vector<64x128xf32>
    %41 = arith.divf %37, %40 : vector<64x128xf32>
    %c0_i32 = arith.constant 0 : i32
    %42 = vector.broadcast %c0_i32 : i32 to vector<1x128xi32>
    %43 = arith.cmpi sge, %17, %42 : vector<1x128xi32>
    %c16_i32 = arith.constant 16 : i32
    %44 = vector.broadcast %c16_i32 : i32 to vector<1x128xi32>
    %45 = arith.cmpi slt, %17, %44 : vector<1x128xi32>
    %46 = arith.andi %43, %45 : vector<1x128xi1>
    %cst_18 = arith.constant 0.000000e+00 : f32
    %47 = vector.shape_cast %46 : vector<1x128xi1> to vector<1x128xi1>
    %48 = vector.broadcast %47 : vector<1x128xi1> to vector<128x128xi1>
    %49 = vector.broadcast %cst_18 : f32 to vector<128x128xf32>
    %50 = arith.select %48, %8, %49 : vector<128x128xi1>, vector<128x128xf32>
    %51 = arith.truncf %41 : vector<64x128xf32> to vector<64x128xbf16>
    %52 = arith.truncf %50 : vector<128x128xf32> to vector<128x128xbf16>
    %cst_19 = arith.constant dense<0.000000e+00> : vector<64x128xf32>
    %53 = tpu.matmul %51, %52, %cst_19 {dimension_numbers = #tpu.dot_dimension_numbers<[1], [0], [0], [1], [0, 0, 1, 1], [], []>} : vector<64x128xbf16>, vector<128x128xbf16>, vector<64x128xf32> -> vector<64x128xf32>
    %54 = arith.addf %18, %53 : vector<64x128xf32>
    %c1 = arith.constant 1 : index
    %c0_20 = arith.constant 0 : index
    %c0_21 = arith.constant 0 : index
    %55 = vector.load %arg5[%c1, %c0_20, %c0_21] : memref<4x64x128xbf16, #tpu.memory_space<vmem>>, vector<1x64x128xbf16>
    %56 = vector.shape_cast %55 : vector<1x64x128xbf16> to vector<64x128xbf16>
    %57 = arith.extf %56 : vector<64x128xbf16> to vector<64x128xf32>
    %58 = vector.extract_strided_slice %12 {offsets = [0, 1], sizes = [64, 1], strides = [1, 1]} : vector<64x128xf32> to vector<64x1xf32>
    %59 = vector.extract_strided_slice %16 {offsets = [1, 0], sizes = [1, 128], strides = [1, 1]} : vector<4x128xf32> to vector<1x128xf32>
    %60 = vector.broadcast %58 : vector<64x1xf32> to vector<64x128xf32>
    %61 = vector.broadcast %59 : vector<1x128xf32> to vector<64x128xf32>
    %62 = arith.addf %60, %61 : vector<64x128xf32>
    %63 = arith.addf %62, %57 : vector<64x128xf32>
    %cst_22 = arith.constant 0.000000e+00 : f32
    %64 = vector.broadcast %cst_22 : f32 to vector<64x128xf32>
    %65 = arith.cmpf ogt, %63, %64 : vector<64x128xf32>
    %cst_23 = arith.constant 2.000000e-01 : f32
    %66 = vector.broadcast %cst_23 : f32 to vector<64x128xf32>
    %67 = arith.mulf %66, %63 : vector<64x128xf32>
    %68 = arith.select %65, %63, %67 : vector<64x128xi1>, vector<64x128xf32>
    %cst_24 = arith.constant dense<0xFF800000> : vector<64xf32>
    %69 = vector.multi_reduction <maximumf>, %68, %cst_24 [1] : vector<64x128xf32> to vector<64xf32>
    %70 = vector.shape_cast %69 : vector<64xf32> to vector<64x1xf32>
    %71 = vector.broadcast %70 : vector<64x1xf32> to vector<64x128xf32>
    %72 = arith.subf %68, %71 : vector<64x128xf32>
    %73 = math.exp %72 : vector<64x128xf32>
    %cst_25 = arith.constant dense<0.000000e+00> : vector<64xf32>
    %74 = vector.multi_reduction <add>, %73, %cst_25 [1] : vector<64x128xf32> to vector<64xf32>
    %75 = vector.shape_cast %74 : vector<64xf32> to vector<64x1xf32>
    %76 = vector.broadcast %75 : vector<64x1xf32> to vector<64x128xf32>
    %77 = arith.divf %73, %76 : vector<64x128xf32>
    %c16_i32_26 = arith.constant 16 : i32
    %78 = vector.broadcast %c16_i32_26 : i32 to vector<1x128xi32>
    %79 = arith.cmpi sge, %17, %78 : vector<1x128xi32>
    %c32_i32 = arith.constant 32 : i32
    %80 = vector.broadcast %c32_i32 : i32 to vector<1x128xi32>
    %81 = arith.cmpi slt, %17, %80 : vector<1x128xi32>
    %82 = arith.andi %79, %81 : vector<1x128xi1>
    %cst_27 = arith.constant 0.000000e+00 : f32
    %83 = vector.shape_cast %82 : vector<1x128xi1> to vector<1x128xi1>
    %84 = vector.broadcast %83 : vector<1x128xi1> to vector<128x128xi1>
    %85 = vector.broadcast %cst_27 : f32 to vector<128x128xf32>
    %86 = arith.select %84, %8, %85 : vector<128x128xi1>, vector<128x128xf32>
    %87 = arith.truncf %77 : vector<64x128xf32> to vector<64x128xbf16>
    %88 = arith.truncf %86 : vector<128x128xf32> to vector<128x128xbf16>
    %cst_28 = arith.constant dense<0.000000e+00> : vector<64x128xf32>
    %89 = tpu.matmul %87, %88, %cst_28 {dimension_numbers = #tpu.dot_dimension_numbers<[1], [0], [0], [1], [0, 0, 1, 1], [], []>} : vector<64x128xbf16>, vector<128x128xbf16>, vector<64x128xf32> -> vector<64x128xf32>
    %90 = arith.addf %54, %89 : vector<64x128xf32>
    %c2 = arith.constant 2 : index
    %c0_29 = arith.constant 0 : index
    %c0_30 = arith.constant 0 : index
    %91 = vector.load %arg5[%c2, %c0_29, %c0_30] : memref<4x64x128xbf16, #tpu.memory_space<vmem>>, vector<1x64x128xbf16>
    %92 = vector.shape_cast %91 : vector<1x64x128xbf16> to vector<64x128xbf16>
    %93 = arith.extf %92 : vector<64x128xbf16> to vector<64x128xf32>
    %94 = vector.extract_strided_slice %12 {offsets = [0, 2], sizes = [64, 1], strides = [1, 1]} : vector<64x128xf32> to vector<64x1xf32>
    %95 = vector.extract_strided_slice %16 {offsets = [2, 0], sizes = [1, 128], strides = [1, 1]} : vector<4x128xf32> to vector<1x128xf32>
    %96 = vector.broadcast %94 : vector<64x1xf32> to vector<64x128xf32>
    %97 = vector.broadcast %95 : vector<1x128xf32> to vector<64x128xf32>
    %98 = arith.addf %96, %97 : vector<64x128xf32>
    %99 = arith.addf %98, %93 : vector<64x128xf32>
    %cst_31 = arith.constant 0.000000e+00 : f32
    %100 = vector.broadcast %cst_31 : f32 to vector<64x128xf32>
    %101 = arith.cmpf ogt, %99, %100 : vector<64x128xf32>
    %cst_32 = arith.constant 2.000000e-01 : f32
    %102 = vector.broadcast %cst_32 : f32 to vector<64x128xf32>
    %103 = arith.mulf %102, %99 : vector<64x128xf32>
    %104 = arith.select %101, %99, %103 : vector<64x128xi1>, vector<64x128xf32>
    %cst_33 = arith.constant dense<0xFF800000> : vector<64xf32>
    %105 = vector.multi_reduction <maximumf>, %104, %cst_33 [1] : vector<64x128xf32> to vector<64xf32>
    %106 = vector.shape_cast %105 : vector<64xf32> to vector<64x1xf32>
    %107 = vector.broadcast %106 : vector<64x1xf32> to vector<64x128xf32>
    %108 = arith.subf %104, %107 : vector<64x128xf32>
    %109 = math.exp %108 : vector<64x128xf32>
    %cst_34 = arith.constant dense<0.000000e+00> : vector<64xf32>
    %110 = vector.multi_reduction <add>, %109, %cst_34 [1] : vector<64x128xf32> to vector<64xf32>
    %111 = vector.shape_cast %110 : vector<64xf32> to vector<64x1xf32>
    %112 = vector.broadcast %111 : vector<64x1xf32> to vector<64x128xf32>
    %113 = arith.divf %109, %112 : vector<64x128xf32>
    %c32_i32_35 = arith.constant 32 : i32
    %114 = vector.broadcast %c32_i32_35 : i32 to vector<1x128xi32>
    %115 = arith.cmpi sge, %17, %114 : vector<1x128xi32>
    %c48_i32 = arith.constant 48 : i32
    %116 = vector.broadcast %c48_i32 : i32 to vector<1x128xi32>
    %117 = arith.cmpi slt, %17, %116 : vector<1x128xi32>
    %118 = arith.andi %115, %117 : vector<1x128xi1>
    %cst_36 = arith.constant 0.000000e+00 : f32
    %119 = vector.shape_cast %118 : vector<1x128xi1> to vector<1x128xi1>
    %120 = vector.broadcast %119 : vector<1x128xi1> to vector<128x128xi1>
    %121 = vector.broadcast %cst_36 : f32 to vector<128x128xf32>
    %122 = arith.select %120, %8, %121 : vector<128x128xi1>, vector<128x128xf32>
    %123 = arith.truncf %113 : vector<64x128xf32> to vector<64x128xbf16>
    %124 = arith.truncf %122 : vector<128x128xf32> to vector<128x128xbf16>
    %cst_37 = arith.constant dense<0.000000e+00> : vector<64x128xf32>
    %125 = tpu.matmul %123, %124, %cst_37 {dimension_numbers = #tpu.dot_dimension_numbers<[1], [0], [0], [1], [0, 0, 1, 1], [], []>} : vector<64x128xbf16>, vector<128x128xbf16>, vector<64x128xf32> -> vector<64x128xf32>
    %126 = arith.addf %90, %125 : vector<64x128xf32>
    %c3 = arith.constant 3 : index
    %c0_38 = arith.constant 0 : index
    %c0_39 = arith.constant 0 : index
    %127 = vector.load %arg5[%c3, %c0_38, %c0_39] : memref<4x64x128xbf16, #tpu.memory_space<vmem>>, vector<1x64x128xbf16>
    %128 = vector.shape_cast %127 : vector<1x64x128xbf16> to vector<64x128xbf16>
    %129 = arith.extf %128 : vector<64x128xbf16> to vector<64x128xf32>
    %130 = vector.extract_strided_slice %12 {offsets = [0, 3], sizes = [64, 1], strides = [1, 1]} : vector<64x128xf32> to vector<64x1xf32>
    %131 = vector.extract_strided_slice %16 {offsets = [3, 0], sizes = [1, 128], strides = [1, 1]} : vector<4x128xf32> to vector<1x128xf32>
    %132 = vector.broadcast %130 : vector<64x1xf32> to vector<64x128xf32>
    %133 = vector.broadcast %131 : vector<1x128xf32> to vector<64x128xf32>
    %134 = arith.addf %132, %133 : vector<64x128xf32>
    %135 = arith.addf %134, %129 : vector<64x128xf32>
    %cst_40 = arith.constant 0.000000e+00 : f32
    %136 = vector.broadcast %cst_40 : f32 to vector<64x128xf32>
    %137 = arith.cmpf ogt, %135, %136 : vector<64x128xf32>
    %cst_41 = arith.constant 2.000000e-01 : f32
    %138 = vector.broadcast %cst_41 : f32 to vector<64x128xf32>
    %139 = arith.mulf %138, %135 : vector<64x128xf32>
    %140 = arith.select %137, %135, %139 : vector<64x128xi1>, vector<64x128xf32>
    %cst_42 = arith.constant dense<0xFF800000> : vector<64xf32>
    %141 = vector.multi_reduction <maximumf>, %140, %cst_42 [1] : vector<64x128xf32> to vector<64xf32>
    %142 = vector.shape_cast %141 : vector<64xf32> to vector<64x1xf32>
    %143 = vector.broadcast %142 : vector<64x1xf32> to vector<64x128xf32>
    %144 = arith.subf %140, %143 : vector<64x128xf32>
    %145 = math.exp %144 : vector<64x128xf32>
    %cst_43 = arith.constant dense<0.000000e+00> : vector<64xf32>
    %146 = vector.multi_reduction <add>, %145, %cst_43 [1] : vector<64x128xf32> to vector<64xf32>
    %147 = vector.shape_cast %146 : vector<64xf32> to vector<64x1xf32>
    %148 = vector.broadcast %147 : vector<64x1xf32> to vector<64x128xf32>
    %149 = arith.divf %145, %148 : vector<64x128xf32>
    %c48_i32_44 = arith.constant 48 : i32
    %150 = vector.broadcast %c48_i32_44 : i32 to vector<1x128xi32>
    %151 = arith.cmpi sge, %17, %150 : vector<1x128xi32>
    %c64_i32_45 = arith.constant 64 : i32
    %152 = vector.broadcast %c64_i32_45 : i32 to vector<1x128xi32>
    %153 = arith.cmpi slt, %17, %152 : vector<1x128xi32>
    %154 = arith.andi %151, %153 : vector<1x128xi1>
    %cst_46 = arith.constant 0.000000e+00 : f32
    %155 = vector.shape_cast %154 : vector<1x128xi1> to vector<1x128xi1>
    %156 = vector.broadcast %155 : vector<1x128xi1> to vector<128x128xi1>
    %157 = vector.broadcast %cst_46 : f32 to vector<128x128xf32>
    %158 = arith.select %156, %8, %157 : vector<128x128xi1>, vector<128x128xf32>
    %159 = arith.truncf %149 : vector<64x128xf32> to vector<64x128xbf16>
    %160 = arith.truncf %158 : vector<128x128xf32> to vector<128x128xbf16>
    %cst_47 = arith.constant dense<0.000000e+00> : vector<64x128xf32>
    %161 = tpu.matmul %159, %160, %cst_47 {dimension_numbers = #tpu.dot_dimension_numbers<[1], [0], [0], [1], [0, 0, 1, 1], [], []>} : vector<64x128xbf16>, vector<128x128xbf16>, vector<64x128xf32> -> vector<64x128xf32>
    %162 = arith.addf %126, %161 : vector<64x128xf32>
    %c0_48 = arith.constant 0 : index
    %c0_49 = arith.constant 0 : index
    %163 = vector.load %arg6[%c0_48, %c0_49] : memref<1x128xf32, #tpu.memory_space<vmem>>, vector<1x128xf32>
    %164 = vector.broadcast %163 : vector<1x128xf32> to vector<64x128xf32>
    %165 = arith.addf %162, %164 : vector<64x128xf32>
    %c0_50 = arith.constant 0 : index
    %c0_51 = arith.constant 0 : index
    %166 = vector.load %arg7[%c0_50, %c0_51] : memref<1x128xf32, #tpu.memory_space<vmem>>, vector<1x128xf32>
    %167 = vector.broadcast %166 : vector<1x128xf32> to vector<64x128xf32>
    %168 = arith.mulf %165, %167 : vector<64x128xf32>
    %c0_52 = arith.constant 0 : index
    %c0_53 = arith.constant 0 : index
    %169 = vector.load %arg8[%c0_52, %c0_53] : memref<1x128xf32, #tpu.memory_space<vmem>>, vector<1x128xf32>
    %170 = vector.broadcast %169 : vector<1x128xf32> to vector<64x128xf32>
    %171 = arith.addf %168, %170 : vector<64x128xf32>
    %cst_54 = arith.constant 0.000000e+00 : f32
    %172 = vector.broadcast %cst_54 : f32 to vector<64x128xf32>
    %173 = arith.cmpf ogt, %171, %172 : vector<64x128xf32>
    %174 = math.exp %171 : vector<64x128xf32>
    %cst_55 = arith.constant 1.000000e+00 : f32
    %175 = vector.broadcast %cst_55 : f32 to vector<64x128xf32>
    %176 = arith.subf %174, %175 : vector<64x128xf32>
    %177 = arith.select %173, %171, %176 : vector<64x128xi1>, vector<64x128xf32>
    %c0_56 = arith.constant 0 : index
    %c0_57 = arith.constant 0 : index
    %178 = vector.load %arg9[%c0_56, %c0_57] : memref<64x128xf32, #tpu.memory_space<vmem>>, vector<64x128xf32>
    tpu.vector_store %arg9[%c0_56, %c0_57], %177 {strides = array<i32>} : memref<64x128xf32, #tpu.memory_space<vmem>>, vector<64x128xf32>,
    return
  }
  func.func @transform_0(%arg0: i32) -> (i32, i32) {
    %c0_i32 = arith.constant 0 : i32
    %c0_i32_0 = arith.constant 0 : i32
    %c0_i32_1 = arith.constant 0 : i32
    return %c0_i32, %c0_i32_0 : i32, i32
  }
  func.func @transform_1(%arg0: i32) -> (i32, i32) {
    %c0_i32 = arith.constant 0 : i32
    %c0_i32_0 = arith.constant 0 : i32
    %c0_i32_1 = arith.constant 0 : i32
    return %c0_i32, %c0_i32_0 : i32, i32
  }
  func.func @transform_2(%arg0: i32) -> (i32, i32) {
    %c0_i32 = arith.constant 0 : i32
    %c0_i32_0 = arith.constant 0 : i32
    %c0_i32_1 = arith.constant 0 : i32
    return %c0_i32, %c0_i32_0 : i32, i32
  }
  func.func @transform_3(%arg0: i32) -> (i32, i32) {
    %c0_i32 = arith.constant 0 : i32
    %c0_i32_0 = arith.constant 0 : i32
    %c0_i32_1 = arith.constant 0 : i32
    return %c0_i32, %c0_i32_0 : i32, i32
  }
  func.func @transform_4(%arg0: i32) -> (i32, i32, i32) {
    %c0_i32 = arith.constant 0 : i32
    %c0_i32_0 = arith.constant 0 : i32
    %c0_i32_1 = arith.constant 0 : i32
    return %c0_i32, %arg0, %c0_i32_0 : i32, i32, i32
  }
  func.func @transform_5(%arg0: i32) -> (i32, i32) {
    %c0_i32 = arith.constant 0 : i32
    %c0_i32_0 = arith.constant 0 : i32
    %c0_i32_1 = arith.constant 0 : i32
    return %c0_i32, %c0_i32_0 : i32, i32
  }
  func.func @transform_6(%arg0: i32) -> (i32, i32) {
    %c0_i32 = arith.constant 0 : i32
    %c0_i32_0 = arith.constant 0 : i32
    %c0_i32_1 = arith.constant 0 : i32
    return %c0_i32, %c0_i32_0 : i32, i32
  }
  func.func @transform_7(%arg0: i32) -> (i32, i32) {
    %c0_i32 = arith.constant 0 : i32
    %c0_i32_0 = arith.constant 0 : i32
    %c0_i32_1 = arith.constant 0 : i32
    return %c0_i32, %c0_i32_0 : i32, i32
  }
  func.func @transform_8(%arg0: i32) -> (i32, i32) {
    %c0_i32 = arith.constant 0 : i32
    %c0_i32_0 = arith.constant 0 : i32
    return %arg0, %c0_i32 : i32, i32
  }
}

module attributes {stable_mosaic.version = 11 : i64} {
  func.func @_gat_layer_kernel(%arg0: i32, %arg1: memref<128x128xf32, #tpu.memory_space<vmem>>, %arg2: memref<128x128xf32, #tpu.memory_space<vmem>>, %arg3: memref<128x128xf32, #tpu.memory_space<vmem>>, %arg4: memref<1x128xf32, #tpu.memory_space<vmem>>, %arg5: memref<1x64x128xbf16, #tpu.memory_space<vmem>>, %arg6: memref<1x128xf32, #tpu.memory_space<vmem>>, %arg7: memref<128x128xf32, #tpu.memory_space<vmem>>, %arg8: memref<1x128xf32, #tpu.memory_space<vmem>>, %arg9: memref<1x128xf32, #tpu.memory_space<vmem>>, %arg10: memref<1x128xf32, #tpu.memory_space<vmem>>, %arg11: memref<128x128xf32, #tpu.memory_space<vmem>>, %arg12: memref<1x128xf32, #tpu.memory_space<vmem>>, %arg13: memref<128x128xf32, #tpu.memory_space<vmem>>, %arg14: memref<1x128xf32, #tpu.memory_space<vmem>>, %arg15: memref<64x128xf32, #tpu.memory_space<vmem>>, %arg16: memref<64x128xf32, #tpu.memory_space<vmem>>) attributes {dimension_semantics = [#tpu.dimension_semantics<parallel>], iteration_bounds = array<i64: 2>, scalar_prefetch = 0 : i64, scratch_operands = 0 : i64, tpu.core_type = #tpu.core_type<tc>, window_params = [{pipeline_mode = #tpu.pipeline_mode<synchronous>, transform_indices = @transform_0, window_bounds = array<i64: 128, 128>}, {pipeline_mode = #tpu.pipeline_mode<synchronous>, transform_indices = @transform_1, window_bounds = array<i64: 128, 128>}, {pipeline_mode = #tpu.pipeline_mode<synchronous>, transform_indices = @transform_2, window_bounds = array<i64: 128, 128>}, {pipeline_mode = #tpu.pipeline_mode<synchronous>, transform_indices = @transform_3, window_bounds = array<i64: 1, 128>}, {transform_indices = @transform_4, window_bounds = array<i64: 1, 64, 128>}, {pipeline_mode = #tpu.pipeline_mode<synchronous>, transform_indices = @transform_5, window_bounds = array<i64: 1, 128>}, {pipeline_mode = #tpu.pipeline_mode<synchronous>, transform_indices = @transform_6, window_bounds = array<i64: 128, 128>}, {pipeline_mode = #tpu.pipeline_mode<synchronous>, transform_indices = @transform_7, window_bounds = array<i64: 1, 128>}, {pipeline_mode = #tpu.pipeline_mode<synchronous>, transform_indices = @transform_8, window_bounds = array<i64: 1, 128>}, {pipeline_mode = #tpu.pipeline_mode<synchronous>, transform_indices = @transform_9, window_bounds = array<i64: 1, 128>}, {pipeline_mode = #tpu.pipeline_mode<synchronous>, transform_indices = @transform_10, window_bounds = array<i64: 128, 128>}, {pipeline_mode = #tpu.pipeline_mode<synchronous>, transform_indices = @transform_11, window_bounds = array<i64: 1, 128>}, {pipeline_mode = #tpu.pipeline_mode<synchronous>, transform_indices = @transform_12, window_bounds = array<i64: 128, 128>}, {pipeline_mode = #tpu.pipeline_mode<synchronous>, transform_indices = @transform_13, window_bounds = array<i64: 1, 128>}, {transform_indices = @transform_14, window_bounds = array<i64: 64, 128>}, {transform_indices = @transform_15, window_bounds = array<i64: 64, 128>}]} {
    %c64_i32 = arith.constant 64 : i32
    %0 = arith.muli %arg0, %c64_i32 : i32
    %1 = tpu.assume_multiple %0, 64 : i32
    %c0 = arith.constant 0 : index
    %c0_0 = arith.constant 0 : index
    %2 = vector.load %arg1[%c0, %c0_0] : memref<128x128xf32, #tpu.memory_space<vmem>>, vector<128x128xf32>
    %3 = arith.index_cast %1 : i32 to index
    %c0_1 = arith.constant 0 : index
    %4 = vector.load %arg1[%3, %c0_1] : memref<128x128xf32, #tpu.memory_space<vmem>>, vector<64x128xf32>
    %c0_2 = arith.constant 0 : index
    %c0_3 = arith.constant 0 : index
    %5 = vector.load %arg2[%c0_2, %c0_3] : memref<128x128xf32, #tpu.memory_space<vmem>>, vector<128x128xf32>
    %6 = arith.truncf %2 : vector<128x128xf32> to vector<128x128xbf16>
    %7 = arith.truncf %5 : vector<128x128xf32> to vector<128x128xbf16>
    %cst = arith.constant dense<0.000000e+00> : vector<128x128xf32>
    %8 = tpu.matmul %6, %7, %cst {dimension_numbers = #tpu.dot_dimension_numbers<[1], [0], [0], [1], [0, 0, 1, 1], [], []>} : vector<128x128xbf16>, vector<128x128xbf16>, vector<128x128xf32> -> vector<128x128xf32>
    %c0_4 = arith.constant 0 : index
    %c0_5 = arith.constant 0 : index
    %9 = vector.load %arg3[%c0_4, %c0_5] : memref<128x128xf32, #tpu.memory_space<vmem>>, vector<128x128xf32>
    %10 = arith.truncf %4 : vector<64x128xf32> to vector<64x128xbf16>
    %11 = arith.truncf %9 : vector<128x128xf32> to vector<128x128xbf16>
    %cst_6 = arith.constant dense<0.000000e+00> : vector<64x128xf32>
    %12 = tpu.matmul %10, %11, %cst_6 {dimension_numbers = #tpu.dot_dimension_numbers<[1], [0], [0], [1], [0, 0, 1, 1], [], []>} : vector<64x128xbf16>, vector<128x128xbf16>, vector<64x128xf32> -> vector<64x128xf32>
    %c0_7 = arith.constant 0 : index
    %c0_8 = arith.constant 0 : index
    %13 = vector.load %arg4[%c0_7, %c0_8] : memref<1x128xf32, #tpu.memory_space<vmem>>, vector<1x128xf32>
    %14 = arith.truncf %13 : vector<1x128xf32> to vector<1x128xbf16>
    %15 = arith.truncf %2 : vector<128x128xf32> to vector<128x128xbf16>
    "tpu.trace_start"() <{level = 10 : i32, message = "hf,nf->hn"}> : () -> ()
    %cst_9 = arith.constant dense<0.000000e+00> : vector<1x128xf32>
    %16 = tpu.matmul %14, %15, %cst_9 {dimension_numbers = #tpu.dot_dimension_numbers<[1], [1], [0], [0], [0, 0, 1, 0], [], []>} : vector<1x128xbf16>, vector<128x128xbf16>, vector<1x128xf32> -> vector<1x128xf32>
    "tpu.trace_stop"() : () -> ()
    %17 = tpu.iota {dimensions = array<i32: 1>} : vector<1x128xi32>
    %cst_10 = arith.constant 0.000000e+00 : f32
    %18 = vector.broadcast %cst_10 : f32 to vector<64x128xf32>
    %c0_11 = arith.constant 0 : index
    %c0_12 = arith.constant 0 : index
    %c0_13 = arith.constant 0 : index
    %19 = vector.load %arg5[%c0_11, %c0_12, %c0_13] : memref<1x64x128xbf16, #tpu.memory_space<vmem>>, vector<1x64x128xbf16>
    %20 = vector.shape_cast %19 : vector<1x64x128xbf16> to vector<64x128xbf16>
    %21 = arith.extf %20 : vector<64x128xbf16> to vector<64x128xf32>
    %22 = vector.extract_strided_slice %12 {offsets = [0, 0], sizes = [64, 1], strides = [1, 1]} : vector<64x128xf32> to vector<64x1xf32>
    %23 = vector.broadcast %22 : vector<64x1xf32> to vector<64x128xf32>
    %24 = vector.broadcast %16 : vector<1x128xf32> to vector<64x128xf32>
    %25 = arith.addf %23, %24 : vector<64x128xf32>
    %26 = arith.addf %25, %21 : vector<64x128xf32>
    %cst_14 = arith.constant 0.000000e+00 : f32
    %27 = vector.broadcast %cst_14 : f32 to vector<64x128xf32>
    %28 = arith.cmpf ogt, %26, %27 : vector<64x128xf32>
    %cst_15 = arith.constant 2.000000e-01 : f32
    %29 = vector.broadcast %cst_15 : f32 to vector<64x128xf32>
    %30 = arith.mulf %29, %26 : vector<64x128xf32>
    %31 = arith.select %28, %26, %30 : vector<64x128xi1>, vector<64x128xf32>
    %cst_16 = arith.constant dense<0xFF800000> : vector<64xf32>
    %32 = vector.multi_reduction <maximumf>, %31, %cst_16 [1] : vector<64x128xf32> to vector<64xf32>
    %33 = vector.shape_cast %32 : vector<64xf32> to vector<64x1xf32>
    %34 = vector.broadcast %33 : vector<64x1xf32> to vector<64x128xf32>
    %35 = arith.subf %31, %34 : vector<64x128xf32>
    %36 = math.exp %35 : vector<64x128xf32>
    %cst_17 = arith.constant dense<0.000000e+00> : vector<64xf32>
    %37 = vector.multi_reduction <add>, %36, %cst_17 [1] : vector<64x128xf32> to vector<64xf32>
    %38 = vector.shape_cast %37 : vector<64xf32> to vector<64x1xf32>
    %39 = vector.broadcast %38 : vector<64x1xf32> to vector<64x128xf32>
    %40 = arith.divf %36, %39 : vector<64x128xf32>
    %c0_i32 = arith.constant 0 : i32
    %41 = vector.broadcast %c0_i32 : i32 to vector<1x128xi32>
    %42 = arith.cmpi sge, %17, %41 : vector<1x128xi32>
    %c8_i32 = arith.constant 8 : i32
    %43 = vector.broadcast %c8_i32 : i32 to vector<1x128xi32>
    %44 = arith.cmpi slt, %17, %43 : vector<1x128xi32>
    %45 = arith.andi %42, %44 : vector<1x128xi1>
    %cst_18 = arith.constant 0.000000e+00 : f32
    %46 = vector.shape_cast %45 : vector<1x128xi1> to vector<1x128xi1>
    %47 = vector.broadcast %46 : vector<1x128xi1> to vector<128x128xi1>
    %48 = vector.broadcast %cst_18 : f32 to vector<128x128xf32>
    %49 = arith.select %47, %8, %48 : vector<128x128xi1>, vector<128x128xf32>
    %50 = arith.truncf %40 : vector<64x128xf32> to vector<64x128xbf16>
    %51 = arith.truncf %49 : vector<128x128xf32> to vector<128x128xbf16>
    %cst_19 = arith.constant dense<0.000000e+00> : vector<64x128xf32>
    %52 = tpu.matmul %50, %51, %cst_19 {dimension_numbers = #tpu.dot_dimension_numbers<[1], [0], [0], [1], [0, 0, 1, 1], [], []>} : vector<64x128xbf16>, vector<128x128xbf16>, vector<64x128xf32> -> vector<64x128xf32>
    %53 = arith.addf %18, %52 : vector<64x128xf32>
    %c0_20 = arith.constant 0 : index
    %c0_21 = arith.constant 0 : index
    %54 = vector.load %arg6[%c0_20, %c0_21] : memref<1x128xf32, #tpu.memory_space<vmem>>, vector<1x128xf32>
    %55 = vector.broadcast %54 : vector<1x128xf32> to vector<64x128xf32>
    %56 = arith.addf %53, %55 : vector<64x128xf32>
    %c0_22 = arith.constant 0 : index
    %c0_23 = arith.constant 0 : index
    %57 = vector.load %arg15[%c0_22, %c0_23] : memref<64x128xf32, #tpu.memory_space<vmem>>, vector<64x128xf32>
    tpu.vector_store %arg15[%c0_22, %c0_23], %56 {strides = array<i32>} : memref<64x128xf32, #tpu.memory_space<vmem>>, vector<64x128xf32>,
    %c0_24 = arith.constant 0 : index
    %c0_25 = arith.constant 0 : index
    %58 = vector.load %arg7[%c0_24, %c0_25] : memref<128x128xf32, #tpu.memory_space<vmem>>, vector<128x128xf32>
    %59 = arith.truncf %56 : vector<64x128xf32> to vector<64x128xbf16>
    %60 = arith.truncf %58 : vector<128x128xf32> to vector<128x128xbf16>
    %cst_26 = arith.constant dense<0.000000e+00> : vector<64x128xf32>
    %61 = tpu.matmul %59, %60, %cst_26 {dimension_numbers = #tpu.dot_dimension_numbers<[1], [0], [0], [1], [0, 0, 1, 1], [], []>} : vector<64x128xbf16>, vector<128x128xbf16>, vector<64x128xf32> -> vector<64x128xf32>
    %c0_27 = arith.constant 0 : index
    %c0_28 = arith.constant 0 : index
    %62 = vector.load %arg8[%c0_27, %c0_28] : memref<1x128xf32, #tpu.memory_space<vmem>>, vector<1x128xf32>
    %63 = vector.broadcast %62 : vector<1x128xf32> to vector<64x128xf32>
    %64 = arith.addf %61, %63 : vector<64x128xf32>
    %cst_29 = arith.constant 0.000000e+00 : f32
    %65 = vector.broadcast %cst_29 : f32 to vector<64x128xf32>
    %66 = arith.maximumf %64, %65 : vector<64x128xf32>
    %c0_30 = arith.constant 0 : index
    %c0_31 = arith.constant 0 : index
    %67 = vector.load %arg9[%c0_30, %c0_31] : memref<1x128xf32, #tpu.memory_space<vmem>>, vector<1x128xf32>
    %68 = vector.broadcast %67 : vector<1x128xf32> to vector<64x128xf32>
    %69 = arith.mulf %66, %68 : vector<64x128xf32>
    %c0_32 = arith.constant 0 : index
    %c0_33 = arith.constant 0 : index
    %70 = vector.load %arg10[%c0_32, %c0_33] : memref<1x128xf32, #tpu.memory_space<vmem>>, vector<1x128xf32>
    %71 = vector.broadcast %70 : vector<1x128xf32> to vector<64x128xf32>
    %72 = arith.addf %69, %71 : vector<64x128xf32>
    %c0_34 = arith.constant 0 : index
    %c0_35 = arith.constant 0 : index
    %73 = vector.load %arg11[%c0_34, %c0_35] : memref<128x128xf32, #tpu.memory_space<vmem>>, vector<128x128xf32>
    %74 = arith.truncf %72 : vector<64x128xf32> to vector<64x128xbf16>
    %75 = arith.truncf %73 : vector<128x128xf32> to vector<128x128xbf16>
    %cst_36 = arith.constant dense<0.000000e+00> : vector<64x128xf32>
    %76 = tpu.matmul %74, %75, %cst_36 {dimension_numbers = #tpu.dot_dimension_numbers<[1], [0], [0], [1], [0, 0, 1, 1], [], []>} : vector<64x128xbf16>, vector<128x128xbf16>, vector<64x128xf32> -> vector<64x128xf32>
    %c0_37 = arith.constant 0 : index
    %c0_38 = arith.constant 0 : index
    %77 = vector.load %arg12[%c0_37, %c0_38] : memref<1x128xf32, #tpu.memory_space<vmem>>, vector<1x128xf32>
    %78 = vector.broadcast %77 : vector<1x128xf32> to vector<64x128xf32>
    %79 = arith.addf %76, %78 : vector<64x128xf32>
    %cst_39 = arith.constant 0.000000e+00 : f32
    %80 = vector.broadcast %cst_39 : f32 to vector<64x128xf32>
    %81 = arith.maximumf %79, %80 : vector<64x128xf32>
    %c0_40 = arith.constant 0 : index
    %c0_41 = arith.constant 0 : index
    %82 = vector.load %arg13[%c0_40, %c0_41] : memref<128x128xf32, #tpu.memory_space<vmem>>, vector<128x128xf32>
    %83 = arith.truncf %81 : vector<64x128xf32> to vector<64x128xbf16>
    %84 = arith.truncf %82 : vector<128x128xf32> to vector<128x128xbf16>
    %cst_42 = arith.constant dense<0.000000e+00> : vector<64x128xf32>
    %85 = tpu.matmul %83, %84, %cst_42 {dimension_numbers = #tpu.dot_dimension_numbers<[1], [0], [0], [1], [0, 0, 1, 1], [], []>} : vector<64x128xbf16>, vector<128x128xbf16>, vector<64x128xf32> -> vector<64x128xf32>
    %c0_43 = arith.constant 0 : index
    %c0_44 = arith.constant 0 : index
    %86 = vector.load %arg14[%c0_43, %c0_44] : memref<1x128xf32, #tpu.memory_space<vmem>>, vector<1x128xf32>
    %87 = vector.broadcast %86 : vector<1x128xf32> to vector<64x128xf32>
    %88 = arith.addf %85, %87 : vector<64x128xf32>
    %c0_45 = arith.constant 0 : index
    %c0_46 = arith.constant 0 : index
    %89 = vector.load %arg16[%c0_45, %c0_46] : memref<64x128xf32, #tpu.memory_space<vmem>>, vector<64x128xf32>
    tpu.vector_store %arg16[%c0_45, %c0_46], %88 {strides = array<i32>} : memref<64x128xf32, #tpu.memory_space<vmem>>, vector<64x128xf32>,
    return
  }
  func.func @transform_0(%arg0: i32) -> (i32, i32) {
    %c0_i32 = arith.constant 0 : i32
    %c0_i32_0 = arith.constant 0 : i32
    %c0_i32_1 = arith.constant 0 : i32
    return %c0_i32, %c0_i32_0 : i32, i32
  }
  func.func @transform_1(%arg0: i32) -> (i32, i32) {
    %c0_i32 = arith.constant 0 : i32
    %c0_i32_0 = arith.constant 0 : i32
    %c0_i32_1 = arith.constant 0 : i32
    return %c0_i32, %c0_i32_0 : i32, i32
  }
  func.func @transform_2(%arg0: i32) -> (i32, i32) {
    %c0_i32 = arith.constant 0 : i32
    %c0_i32_0 = arith.constant 0 : i32
    %c0_i32_1 = arith.constant 0 : i32
    return %c0_i32, %c0_i32_0 : i32, i32
  }
  func.func @transform_3(%arg0: i32) -> (i32, i32) {
    %c0_i32 = arith.constant 0 : i32
    %c0_i32_0 = arith.constant 0 : i32
    %c0_i32_1 = arith.constant 0 : i32
    return %c0_i32, %c0_i32_0 : i32, i32
  }
  func.func @transform_4(%arg0: i32) -> (i32, i32, i32) {
    %c0_i32 = arith.constant 0 : i32
    %c0_i32_0 = arith.constant 0 : i32
    %c0_i32_1 = arith.constant 0 : i32
    return %c0_i32, %arg0, %c0_i32_0 : i32, i32, i32
  }
  func.func @transform_5(%arg0: i32) -> (i32, i32) {
    %c0_i32 = arith.constant 0 : i32
    %c0_i32_0 = arith.constant 0 : i32
    %c0_i32_1 = arith.constant 0 : i32
    return %c0_i32, %c0_i32_0 : i32, i32
  }
  func.func @transform_6(%arg0: i32) -> (i32, i32) {
    %c0_i32 = arith.constant 0 : i32
    %c0_i32_0 = arith.constant 0 : i32
    %c0_i32_1 = arith.constant 0 : i32
    return %c0_i32, %c0_i32_0 : i32, i32
  }
  func.func @transform_7(%arg0: i32) -> (i32, i32) {
    %c0_i32 = arith.constant 0 : i32
    %c0_i32_0 = arith.constant 0 : i32
    %c0_i32_1 = arith.constant 0 : i32
    return %c0_i32, %c0_i32_0 : i32, i32
  }
  func.func @transform_8(%arg0: i32) -> (i32, i32) {
    %c0_i32 = arith.constant 0 : i32
    %c0_i32_0 = arith.constant 0 : i32
    %c0_i32_1 = arith.constant 0 : i32
    return %c0_i32, %c0_i32_0 : i32, i32
  }
  func.func @transform_9(%arg0: i32) -> (i32, i32) {
    %c0_i32 = arith.constant 0 : i32
    %c0_i32_0 = arith.constant 0 : i32
    %c0_i32_1 = arith.constant 0 : i32
    return %c0_i32, %c0_i32_0 : i32, i32
  }
  func.func @transform_10(%arg0: i32) -> (i32, i32) {
    %c0_i32 = arith.constant 0 : i32
    %c0_i32_0 = arith.constant 0 : i32
    %c0_i32_1 = arith.constant 0 : i32
    return %c0_i32, %c0_i32_0 : i32, i32
  }
  func.func @transform_11(%arg0: i32) -> (i32, i32) {
    %c0_i32 = arith.constant 0 : i32
    %c0_i32_0 = arith.constant 0 : i32
    %c0_i32_1 = arith.constant 0 : i32
    return %c0_i32, %c0_i32_0 : i32, i32
  }
  func.func @transform_12(%arg0: i32) -> (i32, i32) {
    %c0_i32 = arith.constant 0 : i32
    %c0_i32_0 = arith.constant 0 : i32
    %c0_i32_1 = arith.constant 0 : i32
    return %c0_i32, %c0_i32_0 : i32, i32
  }
  func.func @transform_13(%arg0: i32) -> (i32, i32) {
    %c0_i32 = arith.constant 0 : i32
    %c0_i32_0 = arith.constant 0 : i32
    %c0_i32_1 = arith.constant 0 : i32
    return %c0_i32, %c0_i32_0 : i32, i32
  }
  func.func @transform_14(%arg0: i32) -> (i32, i32) {
    %c0_i32 = arith.constant 0 : i32
    %c0_i32_0 = arith.constant 0 : i32
    return %arg0, %c0_i32 : i32, i32
  }
  func.func @transform_15(%arg0: i32) -> (i32, i32) {
    %c0_i32 = arith.constant 0 : i32
    %c0_i32_0 = arith.constant 0 : i32
    return %arg0, %c0_i32 : i32, i32
  }
}

</mosaic_0001>

<bundles_post_ra>
// kernel: graph_autoencoder_forward.2
= control target key start
LH: loop header
LB: loop body
LE: loop exit
PB: predicated region body
PF: predicated region fallthrough
CT: control target
= control target key end

     0   :  { %s2782_s27 = smov 0   ;;  %s2784_s28 = smov 0   ;;  %s3699_s0 = inlined_call_operand.vmem [shape: f32[128,128], index: 0, kind: input, shape index: {}]   ;;  %s3700_s1 = inlined_call_operand.vmem [shape: f32[128,128], index: 1, kind: input, shape index: {}]   ;;  %s3701_s2 = inlined_call_operand.vmem [shape: f32[128,128], index: 2, kind: input, shape index: {}]   ;;  %s3702_s3 = inlined_call_operand.vmem [shape: f32[4,128], index: 3, kind: input, shape index: {}]   ;;  %s3703_s4 = inlined_call_operand.vmem [shape: bf16[4,128,128], index: 4, kind: input, shape index: {}]   ;;  %s3704_s5 = inlined_call_operand.vmem [shape: f32[1,128], index: 5, kind: input, shape index: {}]   ;;  %s3705_s6 = inlined_call_operand.vmem [shape: f32[1,128], index: 6, kind: input, shape index: {}]   ;;  %s3706_s7 = inlined_call_operand.vmem [shape: f32[1,128], index: 7, kind: input, shape index: {}]   ;;  %s3707_s8 = inlined_call_operand.vmem [shape: f32[128,128], index: 8, kind: output, shape index: {}]  }
   0x1   :  { %s2786_s29 = smov 0  }
   0x2 LB: > { %s1999_s30 = sadd.s32 4294967295, %s2729_s29   ;;  %s2799_s9 = sadd.s32 1, %s2729_s29   ;;  %s2729_s29 = sphi %s2786_s29, %s3718_s29   ;;  %s2725_s28 = sphi %s2784_s28, %s3717_s28   ;;  %s2721_s27 = sphi %s2782_s27, %s3716_s27  }
   0x3   : > { %s106_s10 = ssub.s32 %s2729_s29, %s2799_s9  ;;  %s109_s11 = sadd.s32 1, %s2725_s28 }
   0x4   : > { %p107_p0 = scmp.eq.s32.totalorder %s106_s10, 0  ;;  %p116_p1 = scmp.ne.s32.totalorder %s2725_s28, %s2721_s27 }
   0x5   : > { %p117_p2 = scmp.eq.s32.totalorder %s2729_s29, 0  ;;  %p2002_p4 = scmp.ge.s32.totalorder %s2729_s29, 2 }
   0x6   : > { %s2808_s12 = scalar_select %p107_p0, %s2725_s28, %s109_s11  }
   0x7   : > { %p118_p3 = por %p117_p2, %p116_p1  ;;  %252 = sbr.rel (%p2002_p4) target bundleno = 26 (0x1a), region = 44 }
   0xe   : > { %255 = sbr.rel (!%p118_p3) target bundleno = 26 (0x1a), region = 48  ;;  %s257_s13 = sand.u32 (%p118_p3), 1, %s2725_s28  }
   0xf   : > { %s2144_s14 = sshll.u32 (%p118_p3), %s2729_s29, 5  ;;  %s2003_s15 = sshll.u32 (%p118_p3), %s257_s13, 7 }
  0x10   : > { %s2816_s18 = scalar_lea.vmem (%p118_p3), %s3703_s4, %s2144_s14  ;;  %s259_s19 = scalar_lea.vmem (%p118_p3), [#allocation2], %s2003_s15 }
  0x11   : > { %v278_v0 = vld [vmem:[%s2816_s18] sm:$0xff] (%p118_p3)   ;;  %v282_v1 = vld [vmem:[%s2816_s18 + $0x8] sm:$0xff] (%p118_p3)   ;;  %v286_v2 = vld [vmem:[%s2816_s18 + $0x10] sm:$0xff] (%p118_p3)  }
  0x12   : > { %279 = vst [vmem:[%s259_s19] sm:$0xff] (%p118_p3), %v278_v0   ;;  %283 = vst [vmem:[%s259_s19 + $0x8] sm:$0xff] (%p118_p3), %v282_v1   ;;  %v290_v3 = vld [vmem:[%s2816_s18 + $0x18] sm:$0xff] (%p118_p3)   ;;  %v294_v4 = vld [vmem:[%s2816_s18 + $0x40] sm:$0xff] (%p118_p3)  }
  0x13   : > { %287 = vst [vmem:[%s259_s19 + $0x10] sm:$0xff] (%p118_p3), %v286_v2   ;;  %v298_v5 = vld [vmem:[%s2816_s18 + $0x48] sm:$0xff] (%p118_p3)   ;;  %291 = vst [vmem:[%s259_s19 + $0x18] sm:$0xff] (%p118_p3), %v290_v3   ;;  %v302_v6 = vld [vmem:[%s2816_s18 + $0x50] sm:$0xff] (%p118_p3)  }
  0x14   : > { %295 = vst [vmem:[%s259_s19 + $0x20] sm:$0xff] (%p118_p3), %v294_v4   ;;  %299 = vst [vmem:[%s259_s19 + $0x28] sm:$0xff] (%p118_p3), %v298_v5   ;;  %v306_v7 = vld [vmem:[%s2816_s18 + $0x58] sm:$0xff] (%p118_p3)   ;;  %v310_v8 = vld [vmem:[%s2816_s18 + $0x80] sm:$0xff] (%p118_p3)  }
  0x15   : > { %303 = vst [vmem:[%s259_s19 + $0x30] sm:$0xff] %v302_v6   ;;  %307 = vst [vmem:[%s259_s19 + $0x38] sm:$0xff] %v306_v7   ;;  %v314_v9 = vld [vmem:[%s2816_s18 + $0x88] sm:$0xff]   ;;  %v318_v10 = vld [vmem:[%s2816_s18 + $0x90] sm:$0xff]  }
  0x16   : > { %311 = vst [vmem:[%s259_s19 + $0x40] sm:$0xff] %v310_v8   ;;  %v322_v11 = vld [vmem:[%s2816_s18 + $0x98] sm:$0xff]   ;;  %315 = vst [vmem:[%s259_s19 + $0x48] sm:$0xff] %v314_v9   ;;  %v326_v12 = vld [vmem:[%s2816_s18 + $0xc0] sm:$0xff]  }
  0x17   : > { %319 = vst [vmem:[%s259_s19 + $0x50] sm:$0xff] %v318_v10   ;;  %323 = vst [vmem:[%s259_s19 + $0x58] sm:$0xff] %v322_v11   ;;  %v330_v13 = vld [vmem:[%s2816_s18 + $0xc8] sm:$0xff]   ;;  %v334_v14 = vld [vmem:[%s2816_s18 + $0xd0] sm:$0xff]  }
  0x18   : > { %327 = vst [vmem:[%s259_s19 + $0x60] sm:$0xff] %v326_v12   ;;  %331 = vst [vmem:[%s259_s19 + $0x68] sm:$0xff] %v330_v13   ;;  %v338_v15 = vld [vmem:[%s2816_s18 + $0xd8] sm:$0xff]  }
  0x19   : > { %335 = vst [vmem:[%s259_s19 + $0x70] sm:$0xff] %v334_v14   ;;  %339 = vst [vmem:[%s259_s19 + $0x78] sm:$0xff] %v338_v15  }
  0x1a PF: > { %p2006_p5 = scmp.ge.s32.totalorder %s2729_s29, 1  ;;  %p427_p6 = scmp.lt.s32.totalorder %s2729_s29, 3 }
  0x1c   : > { %p428_p7 = pnand %p2006_p5, %p427_p6 }
  0x1d   : > { %v501_v16 = vld [vmem:[%s3700_s1] sm:$0xff] (!%p428_p7)  ;;  %v502_v17 = vld [vmem:[%s3700_s1 + $0x8] sm:$0xff] (!%p428_p7)  ;;  %v503_v18 = vld [vmem:[%s3700_s1 + $0x10] sm:$0xff] (!%p428_p7)  ;;  %s2010_s24 = sshll.u32 (!%p428_p7), %s1999_s30, 6  ;;  %vm2732_vm0 = vmmov (!%p428_p7), 0   ;;  %s434_s26 = sand.u32 (!%p428_p7), 1, %s2721_s27  }
  0x1e   : > { %431 = sbr.rel (%p428_p7) target bundleno = 1226 (0x4ca), region = 89  ;;  %v525_v19 = vpack.c.bf16 (!%p428_p7), %v502_v17, %v501_v16  ;;  %v504_v20 = vld [vmem:[%s3700_s1 + $0x18] sm:$0xff] (!%p428_p7)  ;;  %v505_v22 = vld [vmem:[%s3700_s1 + $0x20] sm:$0xff] (!%p428_p7)  ;;  %v506_v23 = vld [vmem:[%s3700_s1 + $0x28] sm:$0xff] (!%p428_p7)  ;;  %s2988_s15 = scalar_lea.vmem (!%p428_p7), %s3699_s0, %s2010_s24 }
  0x1f   : > { %v526_v21 = vpack.c.bf16 (!%p428_p7), %v504_v20, %v503_v18  ;;  %v527_v24 = vpack.c.bf16 (!%p428_p7), %v506_v23, %v505_v22  ;;  %v476_v25 = vld [vmem:[%s3699_s0] sm:$0xff] (!%p428_p7)  ;;  %v477_v26 = vld [vmem:[%s3699_s0 + $0x8] sm:$0xff] (!%p428_p7)  ;;  %v507_v27 = vld [vmem:[%s3700_s1 + $0x30] sm:$0xff] (!%p428_p7)  ;;  %s2007_s10 = sshll.u32 (!%p428_p7), %s434_s26, 7  ;;  %s2008_s18 = sshll.u32 (!%p428_p7), %s1999_s30, 3 }
  0x20   : > { %2309 = vmatprep.subr.bf16.mxu0 (!%p428_p7), %v525_v19  ;;  %v508_v28 = vld [vmem:[%s3700_s1 + $0x38] sm:$0xff] (!%p428_p7)  ;;  %v2866_v29 = vpack.c.bf16 (!%p428_p7), %v477_v26, %v476_v25  ;;  %v509_v31 = vld [vmem:[%s3700_s1 + $0x40] sm:$0xff] (!%p428_p7)  ;;  %v510_v32 = vld [vmem:[%s3700_s1 + $0x48] sm:$0xff] (!%p428_p7)  ;;  %s3129_s11 = scalar_lea.vmem (!%p428_p7), [#allocation2], %s2007_s10  ;;  %p469_p8 = scmp.lt.s32.totalorder (!%p428_p7), %s2008_s18, 15 }
  0x21   : > { %2310 = vmatpush3.bf16.msra.mxu0 (!%p428_p7), %v525_v19  ;;  %v528_v30 = vpack.c.bf16 (!%p428_p7), %v508_v28, %v507_v27  ;;  %v529_v33 = vpack.c.bf16 (!%p428_p7), %v510_v32, %v509_v31  ;;  %v511_v34 = vld [vmem:[%s3700_s1 + $0x50] sm:$0xff] (!%p428_p7)  ;;  %v512_v35 = vld [vmem:[%s3700_s1 + $0x58] sm:$0xff] (!%p428_p7)  ;;  %v513_v37 = vld [vmem:[%s3700_s1 + $0x60] sm:$0xff] (!%p428_p7) }
  0x22   : > { %2311 = vmatprep.subr.bf16.mxu0 (!%p428_p7), %v526_v21  ;;  %2325 = vmatprep.mubr.bf16.mxu0 (!%p428_p7), %v2866_v29  ;;  %v530_v36 = vpack.c.bf16 (!%p428_p7), %v512_v35, %v511_v34  ;;  %v514_v38 = vld [vmem:[%s3700_s1 + $0x68] sm:$0xff] (!%p428_p7)  ;;  %v515_v40 = vld [vmem:[%s3700_s1 + $0x70] sm:$0xff] (!%p428_p7)  ;;  %v516_v41 = vld [vmem:[%s3700_s1 + $0x78] sm:$0xff] (!%p428_p7)  ;;  %v2731_v34 = vmov (!%p428_p7), 0.0  }
  0x23   : > { %v531_v39 = vpack.c.bf16 (!%p428_p7), %v514_v38, %v513_v37  ;;  %v532_v42 = vpack.c.bf16 (!%p428_p7), %v516_v41, %v515_v40  ;;  %v630_v43 = vld [vmem:[%s3701_s2] sm:$0xff] (!%p428_p7)  ;;  %v631_v44 = vld [vmem:[%s3701_s2 + $0x8] sm:$0xff] (!%p428_p7)  ;;  %v478_v45 = vld [vmem:[%s3699_s0 + $0x10] sm:$0xff] (!%p428_p7)  ;;  %v2734_v40 = vmov (!%p428_p7), 1   ;;  %v765_v41 = vlaneseq (!%p428_p7) }
  0x24   : > { %v479_v46 = vld [vmem:[%s3699_s0 + $0x18] sm:$0xff] (!%p428_p7)  ;;  %v650_v47 = vpack.c.bf16 (!%p428_p7), %v631_v44, %v630_v43  ;;  %v480_v48 = vld [vmem:[%s3699_s0 + $0x20] sm:$0xff] (!%p428_p7)  ;;  %v481_v49 = vld [vmem:[%s3699_s0 + $0x28] sm:$0xff] (!%p428_p7)  ;;  %2535 = vset.pattern.permute.xlu1 (!%p428_p7), %v2734_v40 }
  0x25   : > { %2312 = vmatpush3.bf16.msra.mxu0 %v526_v21  ;;  %v632_v50 = vld [vmem:[%s3701_s2 + $0x10] sm:$0xff]  ;;  %v633_v51 = vld [vmem:[%s3701_s2 + $0x18] sm:$0xff]  ;;  %v2917_v52 = vpack.c.bf16 %v479_v46, %v478_v45  ;;  %v2919_v53 = vpack.c.bf16 %v481_v49, %v480_v48  ;;  %v634_v55 = vld [vmem:[%s3701_s2 + $0x20] sm:$0xff]  ;;  %s3720_s18 = smov (!%p469_p8, %s2008_s18), 15 }
  0x26   : > { %2313 = vmatprep.subr.bf16.mxu0 %v527_v24  ;;  %v651_v54 = vpack.c.bf16 %v633_v51, %v632_v50  ;;  %v635_v56 = vld [vmem:[%s3701_s2 + $0x28] sm:$0xff]  ;;  %v482_v57 = vld [vmem:[%s3699_s0 + $0x30] sm:$0xff]  ;;  %v483_v58 = vld [vmem:[%s3699_s0 + $0x38] sm:$0xff]  ;;  %s2009_s29 = sshll.u32 %s3720_s18, 3 }
  0x27   : > { %v652_v59 = vpack.c.bf16 %v635_v56, %v634_v55  ;;  %v484_v60 = vld [vmem:[%s3699_s0 + $0x40] sm:$0xff]  ;;  %v485_v61 = vld [vmem:[%s3699_s0 + $0x48] sm:$0xff]  ;;  %v636_v62 = vld [vmem:[%s3701_s2 + $0x30] sm:$0xff]  ;;  %v2947_v0 = vpack.c.bf16 %v483_v58, %v482_v57  ;;  %s3671_s20 = scalar_lea.vmem %s3707_s8, %s2009_s29 }
  0x28   : > { %v637_v63 = vld [vmem:[%s3701_s2 + $0x38] sm:$0xff]  ;;  %v2949_v1 = vpack.c.bf16 %v485_v61, %v484_v60  ;;  %v638_v3 = vld [vmem:[%s3701_s2 + $0x40] sm:$0xff]  ;;  %v639_v4 = vld [vmem:[%s3701_s2 + $0x48] sm:$0xff] }
  0x29   : > { %2314 = vmatpush3.bf16.msra.mxu0 %v527_v24  ;;  %v653_v2 = vpack.c.bf16 %v637_v63, %v636_v62  ;;  %v486_v5 = vld [vmem:[%s3699_s0 + $0x50] sm:$0xff]  ;;  %v487_v6 = vld [vmem:[%s3699_s0 + $0x58] sm:$0xff]  ;;  %v654_v7 = vpack.c.bf16 %v639_v4, %v638_v3  ;;  %v488_v8 = vld [vmem:[%s3699_s0 + $0x60] sm:$0xff] }
  0x2a   : > { %2315 = vmatprep.subr.bf16.mxu0 %v528_v30  ;;  %v489_v9 = vld [vmem:[%s3699_s0 + $0x68] sm:$0xff]  ;;  %v640_v10 = vld [vmem:[%s3701_s2 + $0x50] sm:$0xff]  ;;  %v641_v11 = vld [vmem:[%s3701_s2 + $0x58] sm:$0xff]  ;;  %v522_v12 = vpack.c.bf16 %v487_v6, %v486_v5 }
  0x2b   : > { %v523_v13 = vpack.c.bf16 %v489_v9, %v488_v8  ;;  %v655_v14 = vpack.c.bf16 %v641_v11, %v640_v10  ;;  %v642_v15 = vld [vmem:[%s3701_s2 + $0x60] sm:$0xff]  ;;  %v643_v16 = vld [vmem:[%s3701_s2 + $0x68] sm:$0xff]  ;;  %v490_v17 = vld [vmem:[%s3699_s0 + $0x70] sm:$0xff]  ;;  %v2735_v9 = vmov 0  }
  0x2c   : > { %v491_v18 = vld [vmem:[%s3699_s0 + $0x78] sm:$0xff]  ;;  %v656_v19 = vpack.c.bf16 %v643_v16, %v642_v15  ;;  %v493_v20 = vld [vmem:[%s2988_s15] sm:$0xff]  ;;  %v494_v21 = vld [vmem:[%s2988_s15 + $0x8] sm:$0xff]  ;;  %v824_v15 = vshrl.u32 %v765_v41, 7 }
  0x2d   : > { %2316 = vmatpush3.bf16.msra.mxu0 %v528_v30  ;;  %v644_v22 = vld [vmem:[%s3701_s2 + $0x70] sm:$0xff]  ;;  %v645_v23 = vld [vmem:[%s3701_s2 + $0x78] sm:$0xff]  ;;  %v524_v24 = vpack.c.bf16 %v491_v18, %v490_v17  ;;  %v646_v25 = vpack.c.bf16 %v494_v21, %v493_v20  ;;  %v497_v30 = vld [vmem:[%s2988_s15 + $0x20] sm:$0xff] }
  0x2e   : > { %2317 = vmatprep.subr.bf16.mxu0 %v529_v33  ;;  %v657_v26 = vpack.c.bf16 %v645_v23, %v644_v22  ;;  %v495_v27 = vld [vmem:[%s2988_s15 + $0x10] sm:$0xff]  ;;  %v496_v28 = vld [vmem:[%s2988_s15 + $0x18] sm:$0xff]  ;;  %v498_v31 = vld [vmem:[%s2988_s15 + $0x28] sm:$0xff]  ;;  %v1351_v16 = vsub.s32 2, %v824_v15  ;;  %v1622_v17 = vsub.s32 3, %v824_v15 }
  0x2f   : > { %v647_v32 = vpack.c.bf16 %v496_v28, %v495_v27  ;;  %v499_v35 = vld [vmem:[%s2988_s15 + $0x30] sm:$0xff]  ;;  %v825_v27 = vsub.s32 0, %v824_v15 }
  0x31   : > { %2318 = vmatpush3.bf16.msra.mxu0 %v529_v33  ;;  %v648_v33 = vpack.c.bf16 %v498_v31, %v497_v30 }
  0x32   : > { %2319 = vmatprep.subr.bf16.mxu0 %v530_v36 }
  0x35   : > { %2320 = vmatpush3.bf16.msra.mxu0 %v530_v36  ;;  %v500_v36 = vld [vmem:[%s2988_s15 + $0x38] sm:$0xff] }
  0x36   : > { %2321 = vmatprep.subr.bf16.mxu0 %v531_v39  ;;  %v649_v37 = vpack.c.bf16 %v500_v36, %v499_v35 }
  0x39   : > { %2322 = vmatpush3.bf16.msra.mxu0 %v531_v39  ;;  %v2733_v39 = vmov 3  }
  0x3a   : > { %2323 = vmatprep.subr.bf16.mxu0 %v532_v42  ;;  %2538 = vset.pattern.permute.xlu0 %v2733_v39 }
  0x3d   : > { %2324 = vmatpush3.bf16.msra.mxu0 %v532_v42  ;;  %v3021_v42 = vand.u32 127, %v765_v41 }
  0x3e   : > { %2341 = vmatprep.subr.bf16.mxu0 %v650_v47 }
  0x3f   : > { %vm1137_vm1 = vcmp.ge.s32.totalorder %v3021_v42, 16  ;;  %vm1138_vm2 = vcmp.lt.s32.totalorder %v3021_v42, 32  ;;  %vm940_vm5 = vcmp.lt.s32.totalorder %v3021_v42, 16 }
  0x40   : > { %2326 = vmatmul.mubr.bf16.vlgmr.msra.gmra.mrb[0].mxu0 %v2917_v52  ;;  %vm1139_vm3 = vmand %vm1137_vm1, %vm1138_vm2 }
  0x41   : > { %2342 = vmatpush3.bf16.msra.mxu0 %v650_v47  ;;  %2329 = vmatprep.mubr.bf16.mxu0 %v2919_v53  ;;  %vm3027_vm4 = vmpackc.low %vm1139_vm3, %vm1139_vm3 }
  0x42   : > { %2343 = vmatprep.subr.bf16.mxu0 %v651_v54  ;;  %vm3091_vm6 = vmpackc.low %vm940_vm5, %vm940_vm5 }
  0x45   : > { %2344 = vmatpush3.bf16.msra.mxu0 %v651_v54 }
  0x46   : > { %2345 = vmatprep.subr.bf16.mxu0 %v652_v59 }
  0x48   : > { %2330 = vmatmul.mubr.bf16.gmra.mrb[4].mxu0 %v2947_v0 }
  0x49   : > { %2346 = vmatpush3.bf16.msra.mxu0 %v652_v59  ;;  %2333 = vmatprep.mubr.bf16.mxu0 %v2949_v1 }
  0x4a   : > { %2347 = vmatprep.subr.bf16.mxu0 %v653_v2 }
  0x4d   : > { %2348 = vmatpush3.bf16.msra.mxu0 %v653_v2 }
  0x4e   : > { %2349 = vmatprep.subr.bf16.mxu0 %v654_v7 }
  0x50   : > { %2334 = vmatmul.mubr.bf16.gmra.mrb[8].mxu0 %v522_v12 }
  0x51   : > { %2350 = vmatpush3.bf16.msra.mxu0 %v654_v7  ;;  %2337 = vmatprep.mubr.bf16.mxu0 %v523_v13 }
  0x52   : > { %2351 = vmatprep.subr.bf16.mxu0 %v655_v14 }
  0x55   : > { %2352 = vmatpush3.bf16.msra.mxu0 %v655_v14 }
  0x56   : > { %2353 = vmatprep.subr.bf16.mxu0 %v656_v19 }
  0x58   : > { %2338 = vmatmul.mubr.bf16.gmra.mrb[12].mxu0 %v524_v24 }
  0x59   : > { %2354 = vmatpush3.bf16.msra.mxu0 %v656_v19  ;;  %2357 = vmatprep.mubr.bf16.mxu0 %v646_v25  ;;  %v2213_v25 = vld [vmem:[%s3129_s11 + $0x28] sm:$0xff]  }
  0x5a   : > { %2355 = vmatprep.subr.bf16.mxu0 %v657_v26  ;;  %v2167_v28 = vunpack.c.l.bf16 %v2213_v25 }
  0x5d   : > { %2356 = vmatpush3.bf16.msra.mxu0 %v657_v26 }
  0x5e   : > { %2365 = vmatprep.subr.bf16.mxu0 %v2731_v34 }
  0x60   : > { %2358 = vmatmul.mubr.bf16.vlgmr.msra.gmra.mrb[16].mxu0 %v647_v32 }
  0x61   : > { %2361 = vmatprep.mubr.bf16.mxu0 %v648_v33 }
  0x66   : > { %2366 = vmatpush3.bf16.xpose.msra.mxu0 %v2866_v29  ;;  %v723_v29 = vld [vmem:[%s3702_s3] sm:$0xf] }
  0x67   : > { %2367 = vmatprep.subr.bf16.mxu0 %v2731_v34  ;;  %v724_v38 = vpack.c.bf16 %v723_v29, %v723_v29 }
  0x68   : > { %2362 = vmatmul.mubr.bf16.gmra.mrb[20].mxu0 %v649_v37 }
  0x69   : > { %2381 = vmatprep.mubr.msk.bf16.mxu0 %vm2732_vm0, %v2731_v34 }
  0x6e   : > { %2368 = vmatpush3.bf16.xpose.msra.mxu0 %v2917_v52 }
  0x6f   : > { %2369 = vmatprep.subr.bf16.mxu0 %v2731_v34 }
  0x76   : > { %2370 = vmatpush3.bf16.xpose.msra.mxu0 %v2919_v53 }
  0x77   : > { %2371 = vmatprep.subr.bf16.mxu0 %v2731_v34 }
  0x7e   : > { %2372 = vmatpush3.bf16.xpose.msra.mxu0 %v2947_v0 }
  0x7f   : > { %2373 = vmatprep.subr.bf16.mxu0 %v2731_v34 }
  0x86   : > { %2374 = vmatpush3.bf16.xpose.msra.mxu0 %v2949_v1 }
  0x87   : > { %2375 = vmatprep.subr.bf16.mxu0 %v2731_v34 }
  0x8e   : > { %2376 = vmatpush3.bf16.xpose.msra.mxu0 %v522_v12  ;;  %v2736_v12 = vmov 2  }
  0x8f   : > { %2377 = vmatprep.subr.bf16.mxu0 %v2731_v34 }
  0x96   : > { %2378 = vmatpush3.bf16.xpose.msra.mxu0 %v523_v13 }
  0x97   : > { %2379 = vmatprep.subr.bf16.mxu0 %v2731_v34  ;;  %v2212_v34 = vld [vmem:[%s3129_s11 + $0x20] sm:$0xff]  }
  0x98   : > { %v2163_v37 = vunpack.c.l.bf16 %v2212_v34 }
  0x9e   : > { %2380 = vmatpush3.bf16.xpose.msra.mxu0 %v524_v24  ;;  %v1023_v24 = vsub.s32 1, %v824_v15 }
  0xa5   : > { %2382 = vmatmul.mubr.bf16.vlgmr.msra.gmra.mrb[24].mxu0 %v724_v38 }
 0x113   : > { %v2327_v43 = vpop.f32.mrb[0].mxu0 }
 0x114   : > { %v567_v44 = vpop.f32.mrb[1].mxu0 }
 0x115   : > { %v2328_v45 = vpop.f32.mrb[2].mxu0 }
 0x116   : > { %v3025_v46 = vpack.c.bf16 %v2328_v45, %v2327_v43  ;;  %v570_v47 = vpop.f32.mrb[3].mxu0  ;;  %v2146_v43 = vld [vmem:[%s3129_s11] sm:$0xff]  }
 0x117   : > { %v3031_v49 = vpack.c.bf16 %v570_v47, %v567_v44  ;;  %v2147_v47 = vunpack.c.l.bf16 %v2146_v43 }
 0x119   : > { %2385 = vmatprep.subr.msk.bf16.mxu1 %vm3027_vm4, %v3031_v49 }
 0x11a   : > { %2386 = vmatpush3.bf16.msk.msra.mxu1 %vm3027_vm4, %v3031_v49 }
 0x11b   : > { %v2331_v50 = vpop.f32.mrb[4].mxu0  ;;  %2387 = vmatprep.subr.msk.bf16.mxu1 %vm3027_vm4, %v3025_v46 }
 0x11c   : > { %v583_v51 = vpop.f32.mrb[5].mxu0 }
 0x11d   : > { %v2332_v52 = vpop.f32.mrb[6].mxu0 }
 0x11e   : > { %v3042_v53 = vpack.c.bf16 %v2332_v52, %v2331_v50  ;;  %v586_v54 = vpop.f32.mrb[7].mxu0  ;;  %2388 = vmatpush3.bf16.msk.msra.mxu1 %vm3027_vm4, %v3025_v46 }
 0x11f   : > { %v3047_v55 = vpack.c.bf16 %v586_v54, %v583_v51 }
 0x121   : > { %2389 = vmatprep.subr.msk.bf16.mxu1 %vm3027_vm4, %v3047_v55 }
 0x122   : > { %2390 = vmatpush3.bf16.msk.msra.mxu1 %vm3027_vm4, %v3047_v55 }
 0x123   : > { %v2335_v56 = vpop.f32.mrb[8].mxu0  ;;  %2391 = vmatprep.subr.msk.bf16.mxu1 %vm3027_vm4, %v3042_v53 }
 0x124   : > { %v599_v57 = vpop.f32.mrb[9].mxu0 }
 0x125   : > { %v2336_v58 = vpop.f32.mrb[10].mxu0 }
 0x126   : > { %v3058_v59 = vpack.c.bf16 %v2336_v58, %v2335_v56  ;;  %v602_v60 = vpop.f32.mrb[11].mxu0  ;;  %2392 = vmatpush3.bf16.msk.msra.mxu1 %vm3027_vm4, %v3042_v53 }
 0x127   : > { %v3063_v61 = vpack.c.bf16 %v602_v60, %v599_v57 }
 0x129   : > { %2393 = vmatprep.subr.msk.bf16.mxu1 %vm3027_vm4, %v3063_v61 }
 0x12a   : > { %2394 = vmatpush3.bf16.msk.msra.mxu1 %vm3027_vm4, %v3063_v61 }
 0x12b   : > { %v2339_v62 = vpop.f32.mrb[12].mxu0  ;;  %2395 = vmatprep.subr.msk.bf16.mxu1 %vm3027_vm4, %v3058_v59 }
 0x12c   : > { %v615_v63 = vpop.f32.mrb[13].mxu0 }
 0x12d   : > { %v2340_v0 = vpop.f32.mrb[14].mxu0 }
 0x12e   : > { %v3074_v1 = vpack.c.bf16 %v2340_v0, %v2339_v62  ;;  %v618_v2 = vpop.f32.mrb[15].mxu0  ;;  %2396 = vmatpush3.bf16.msk.msra.mxu1 %vm3027_vm4, %v3058_v59 }
 0x12f   : > { %v3079_v3 = vpack.c.bf16 %v618_v2, %v615_v63 }
 0x131   : > { %2397 = vmatprep.subr.msk.bf16.mxu1 %vm3027_vm4, %v3079_v3 }
 0x132   : > { %2398 = vmatpush3.bf16.msk.msra.mxu1 %vm3027_vm4, %v3079_v3 }
 0x133   : > { %v2359_v4 = vpop.f32.mrb[16].mxu0  ;;  %2399 = vmatprep.subr.msk.bf16.mxu1 %vm3027_vm4, %v3074_v1 }
 0x134   : > { %1597 = vperm.xlu0 %2538, %v2359_v4   ;;  %998 = vperm.xlu1 %2535, %v2359_v4   ;;  %v692_v5 = vpop.f32.mrb[17].mxu0 }
 0x135   : > { %v2360_v7 = vpop.f32.mrb[18].mxu0 }
 0x136   : > { %v695_v8 = vpop.f32.mrb[19].mxu0  ;;  %2400 = vmatpush3.bf16.msk.msra.mxu1 %vm3027_vm4, %v3074_v1 }
 0x137   : > { %2409 = vmatprep.subr.msk.bf16.mxu1 %vm3091_vm6, %v3031_v49 }
 0x138   : > { %2539 = vset.pattern.permute.xlu0 %v2734_v40  ;;  %2536 = vset.pattern.permute.xlu1 %v2735_v9 }
 0x139   : > { %795 = vperm.xlu1 %2536, %v2359_v4   ;;  %990 = vperm.xlu0 %2539, %v692_v5  }
 0x13b   : > { %v3102_v10 = vpop.f32.mrb[20].mxu0 }
 0x13c   : > { %v708_v11 = vpop.f32.mrb[21].mxu0 }
 0x13d   : > { %2537 = vset.pattern.permute.xlu1 %v2736_v12  ;;  %2540 = vset.pattern.permute.xlu0 %v2735_v9  ;;  %v3104_v13 = vpop.f32.mrb[22].mxu0 }
 0x13e   : > { %1326 = vperm.xlu1 %2537, %v2359_v4   ;;  %785 = vperm.xlu0 %2540, %v692_v5   ;;  %v711_v14 = vpop.f32.mrb[23].mxu0  ;;  %v2168_v4 = vunpack.c.h.bf16 %v2213_v25 }
 0x142   : > { %1318 = vperm.xlu1 %2537, %v692_v5   ;;  %2541 = vset.pattern.permute.xlu0 %v2733_v39 }
 0x143   : > { %1589 = vperm.xlu0 %2541, %v692_v5  }
 0x146   : > { %2542 = vset.pattern.permute.xlu1 %v2734_v40 }
 0x147   : > { %2543 = vset.pattern.permute.xlu0 %v2735_v9  ;;  %1002 = vperm.xlu1 %2542, %v2360_v7  }
 0x148   : > { %800 = vperm.xlu0 %2543, %v2360_v7  }
 0x14b   : > { %2544 = vset.pattern.permute.xlu1 %v2736_v12 }
 0x14c   : > { %2546 = vset.pattern.permute.xlu0 %v2734_v40  ;;  %1330 = vperm.xlu1 %2544, %v2360_v7  }
 0x14d   : > { %994 = vperm.xlu0 %2546, %v695_v8  }
 0x150   : > { %2545 = vset.pattern.permute.xlu1 %v2733_v39 }
 0x151   : > { %1601 = vperm.xlu1 %2545, %v2360_v7   ;;  %2548 = vset.pattern.permute.xlu0 %v2736_v12 }
 0x152   : > { %1322 = vperm.xlu0 %2548, %v695_v8  }
 0x155   : > { %2547 = vset.pattern.permute.xlu1 %v2735_v9 }
 0x156   : > { %790 = vperm.xlu1 %2547, %v695_v8   ;;  %2550 = vset.pattern.permute.xlu0 %v2734_v40 }
 0x157   : > { %1014 = vperm.xlu0 %2550, %v3102_v10  }
 0x15a   : > { %2549 = vset.pattern.permute.xlu1 %v2733_v39 }
 0x15b   : > { %1593 = vperm.xlu1 %2549, %v695_v8   ;;  %1006 = vperm.xlu0 %2550, %v708_v11  }
 0x15f   : > { %2551 = vset.pattern.permute.xlu1 %v2735_v9  ;;  %2555 = vset.pattern.permute.xlu0 %v2733_v39 }
 0x160   : > { %815 = vperm.xlu1 %2551, %v3102_v10   ;;  %1605 = vperm.xlu0 %2555, %v708_v11  }
 0x164   : > { %2552 = vset.pattern.permute.xlu1 %v2736_v12  ;;  %2557 = vset.pattern.permute.xlu0 %v2735_v9 }
 0x165   : > { %1342 = vperm.xlu1 %2552, %v3102_v10   ;;  %820 = vperm.xlu0 %2557, %v3104_v13  }
 0x169   : > { %2553 = vset.pattern.permute.xlu1 %v2735_v9  ;;  %810 = vperm.xlu0 %2557, %v711_v14  }
 0x16a   : > { %805 = vperm.xlu1 %2553, %v708_v11  }
 0x16d   : > { %2560 = vset.pattern.permute.xlu0 %v2736_v12 }
 0x16e   : > { %2554 = vset.pattern.permute.xlu1 %v2736_v12  ;;  %1338 = vperm.xlu0 %2560, %v711_v14  }
 0x16f   : > { %1334 = vperm.xlu1 %2554, %v708_v11  }
 0x172   : > { %2562 = vset.pattern.permute.xlu0 %v2733_v39 }
 0x173   : > { %2556 = vset.pattern.permute.xlu1 %v2734_v40 }
 0x174   : > { %1018 = vperm.xlu1 %2556, %v3104_v13  }
 0x178   : > { %2558 = vset.pattern.permute.xlu1 %v2736_v12  ;;  %v759_v18 = vpop.f32.mrb[24].mxu0 }
 0x179   : > { %1346 = vperm.xlu1 %2558, %v3104_v13   ;;  %v3122_v19 = vrot.slane %v759_v18, %v1351_v16  ;;  %v3124_v20 = vrot.slane %v759_v18, %v1622_v17  ;;  %v2383_v21 = vpop.f32.mrb[25].mxu0  ;;  %v3132_v26 = vrot.slane %v759_v18, %v1023_v24  ;;  %v3139_v35 = vrot.slane %v759_v18, %v825_v27 }
 0x17a   : > { %v762_v22 = vpop.f32.mrb[26].mxu0 }
 0x17b   : > { %v2384_v23 = vpop.f32.mrb[27].mxu0 }
 0x17d   : > { %2559 = vset.pattern.permute.xlu1 %v2734_v40 }
 0x17e   : > { %1010 = vperm.xlu1 %2559, %v711_v14  }
 0x182   : > { %2561 = vset.pattern.permute.xlu1 %v2733_v39 }
 0x183   : > { %1609 = vperm.xlu1 %2561, %v711_v14   ;;  %v2164_v14 = vunpack.c.h.bf16 %v2212_v34 }
 0x1b3   : > { %v1598_v30 = vpop.permute.xlu0 %1597  ;;  %v999_v31 = vpop.permute.xlu1 %998 }
 0x1b4   : > { %v3135_v32 = vadd.f32 %v3124_v20, %v1598_v30  ;;  %v1027_v33 = vadd.f32 %v3132_v26, %v999_v31  ;;  %v2215_v30 = vld [vmem:[%s3129_s11 + $0x38] sm:$0xff]  }
 0x1b6   : > { %v1035_v36 = vadd.f32 %v2167_v28, %v1027_v33  ;;  %v2148_v33 = vunpack.c.h.bf16 %v2146_v43 }
 0x1b8   : > { %v796_v29 = vpop.permute.xlu1 %795  ;;  %v991_v38 = vpop.permute.xlu0 %990  ;;  %vm1043_vm7 = vcmp.gt.f32.partialorder %v1035_v36, 0.0  ;;  %v1051_v39 = vmul.f32 0.2, %v1035_v36 }
 0x1b9   : > { %v3142_v40 = vadd.f32 %v3139_v35, %v796_v29  ;;  %v1025_v41 = vadd.f32 %v3132_v26, %v991_v38  ;;  %v2214_v38 = vld [vmem:[%s3129_s11 + $0x30] sm:$0xff]  }
 0x1ba   : > { %v3146_v44 = vsel %vm1043_vm7, %v1035_v36, %v1051_v39  ;;  %v2175_v36 = vunpack.c.l.bf16 %v2215_v30 }
 0x1bb   : > { %v1033_v45 = vadd.f32 %v2163_v37, %v1025_v41  ;;  %1069 = vmax.xlane.f32.xlu0 %v3146_v44 }
 0x1bd   : > { %v1327_v48 = vpop.permute.xlu1 %1326  ;;  %v786_v50 = vpop.permute.xlu0 %785  ;;  %vm1041_vm8 = vcmp.gt.f32.partialorder %v1033_v45, 0.0  ;;  %v1049_v51 = vmul.f32 0.2, %v1033_v45 }
 0x1be   : > { %v3150_v52 = vadd.f32 %v3122_v19, %v1327_v48  ;;  %v827_v54 = vadd.f32 %v3139_v35, %v786_v50 }
 0x1bf   : > { %v3153_v56 = vsel %vm1041_vm8, %v1033_v45, %v1049_v51 }
 0x1c0   : > { %v835_v57 = vadd.f32 %v2147_v47, %v827_v54  ;;  %1065 = vmax.xlane.f32.xlu0 %v3153_v56  ;;  %v2171_v47 = vunpack.c.l.bf16 %v2214_v38 }
 0x1c1   : > { %v1319_v58 = vpop.permute.xlu1 %1318 }
 0x1c2   : > { %v3157_v60 = vadd.f32 %v3122_v19, %v1319_v58  ;;  %v1590_v62 = vpop.permute.xlu0 %1589  ;;  %vm843_vm9 = vcmp.gt.f32.partialorder %v835_v57, 0.0  ;;  %v851_v63 = vmul.f32 0.2, %v835_v57 }
 0x1c3   : > { %v3160_v0 = vadd.f32 %v3124_v20, %v1590_v62 }
 0x1c4   : > { %v3162_v2 = vsel %vm843_vm9, %v835_v57, %v851_v63 }
 0x1c5   : > { %867 = vmax.xlane.f32.xlu1 %v3162_v2 }
 0x1c6   : > { %v1003_v5 = vpop.permute.xlu1 %1002 }
 0x1c7   : > { %v1028_v7 = vadd.f32 %v3132_v26, %v1003_v5  ;;  %v801_v8 = vpop.permute.xlu0 %800 }
 0x1c8   : > { %v3167_v9 = vadd.f32 %v3139_v35, %v801_v8 }
 0x1c9   : > { %v1036_v11 = vadd.f32 %v2168_v4, %v1028_v7 }
 0x1cb   : > { %v1331_v12 = vpop.permute.xlu1 %1330  ;;  %vm1044_vm10 = vcmp.gt.f32.partialorder %v1036_v11, 0.0  ;;  %v1052_v15 = vmul.f32 0.2, %v1036_v11 }
 0x1cc   : > { %v3170_v16 = vadd.f32 %v3122_v19, %v1331_v12  ;;  %v995_v17 = vpop.permute.xlu0 %994 }
 0x1cd   : > { %v1026_v18 = vadd.f32 %v3132_v26, %v995_v17  ;;  %v3173_v21 = vsel %vm1044_vm10, %v1036_v11, %v1052_v15 }
 0x1ce   : > { %1071 = vmax.xlane.f32.xlu0 %v3173_v21 }
 0x1cf   : > { %v1034_v22 = vadd.f32 %v2164_v14, %v1026_v18 }
 0x1d0   : > { %v1602_v23 = vpop.permute.xlu1 %1601 }
 0x1d1   : > { %v3177_v24 = vadd.f32 %v3124_v20, %v1602_v23  ;;  %v1323_v25 = vpop.permute.xlu0 %1322  ;;  %vm1042_vm11 = vcmp.gt.f32.partialorder %v1034_v22, 0.0  ;;  %v1050_v27 = vmul.f32 0.2, %v1034_v22 }
 0x1d2   : > { %v3180_v28 = vadd.f32 %v3122_v19, %v1323_v25  ;;  %v2176_v25 = vunpack.c.h.bf16 %v2215_v30 }
 0x1d3   : > { %v3183_v31 = vsel %vm1042_vm11, %v1034_v22, %v1050_v27 }
 0x1d4   : > { %1067 = vmax.xlane.f32.xlu1 %v3183_v31 }
 0x1d5   : > { %v791_v34 = vpop.permute.xlu1 %790 }
 0x1d6   : > { %v828_v37 = vadd.f32 %v3139_v35, %v791_v34  ;;  %v1015_v29 = vpop.permute.xlu0 %1014 }
 0x1d7   : > { %v1031_v39 = vadd.f32 %v3132_v26, %v1015_v29 }
 0x1d8   : > { %v836_v41 = vadd.f32 %v2148_v33, %v828_v37 }
 0x1d9   : > { %v1039_v45 = vadd.f32 %v2175_v36, %v1031_v39 }
 0x1da   : > { %v1594_v48 = vpop.permute.xlu1 %1593  ;;  %v1007_v50 = vpop.permute.xlu0 %1006  ;;  %vm844_vm12 = vcmp.gt.f32.partialorder %v836_v41, 0.0  ;;  %v852_v51 = vmul.f32 0.2, %v836_v41 }
 0x1db   : > { %v3190_v54 = vadd.f32 %v3124_v20, %v1594_v48  ;;  %v1029_v43 = vadd.f32 %v3132_v26, %v1007_v50  ;;  %vm1047_vm13 = vcmp.gt.f32.partialorder %v1039_v45, 0.0  ;;  %v1055_v57 = vmul.f32 0.2, %v1039_v45 }
 0x1dc   : > { %v3193_v58 = vsel %vm844_vm12, %v836_v41, %v852_v51  ;;  %v2172_v41 = vunpack.c.h.bf16 %v2214_v38  ;;  %v2209_v51 = vld [vmem:[%s3129_s11 + $0x8] sm:$0xff]  }
 0x1dd   : > { %v1037_v62 = vadd.f32 %v2171_v47, %v1029_v43  ;;  %869 = vmax.xlane.f32.xlu0 %v3193_v58  ;;  %v3196_v63 = vsel %vm1047_vm13, %v1039_v45, %v1055_v57  ;;  %v2151_v43 = vunpack.c.l.bf16 %v2209_v51 }
 0x1de   : > { %1077 = vmax.xlane.f32.xlu1 %v3196_v63 }
 0x1df   : > { %v816_v4 = vpop.permute.xlu1 %815  ;;  %v1606_v5 = vpop.permute.xlu0 %1605  ;;  %vm1045_vm14 = vcmp.gt.f32.partialorder %v1037_v62, 0.0  ;;  %v1053_v7 = vmul.f32 0.2, %v1037_v62 }
 0x1e0   : > { %v3200_v8 = vadd.f32 %v3139_v35, %v816_v4  ;;  %v3203_v11 = vadd.f32 %v3124_v20, %v1606_v5  ;;  %v837_v4 = vadd.f32 %v2151_v43, %v3142_v40  ;;  %v2217_v40 = vld [vmem:[%s3129_s11 + $0x48] sm:$0xff]  }
 0x1e1   : > { %v3205_v12 = vsel %vm1045_vm14, %v1037_v62, %v1053_v7  ;;  %v2210_v62 = vld [vmem:[%s3129_s11 + $0x10] sm:$0xff]  }
 0x1e2   : > { %1073 = vmax.xlane.f32.xlu1 %v3205_v12  ;;  %v2156_v38 = vunpack.c.h.bf16 %v2210_v62  ;;  %vm845_vm1 = vcmp.gt.f32.partialorder %v837_v4, 0.0 }
 0x1e4   : > { %v1343_v14 = vpop.permute.xlu1 %1342  ;;  %v821_v50 = vpop.permute.xlu0 %820 }
 0x1e5   : > { %v3209_v15 = vadd.f32 %v3122_v19, %v1343_v14  ;;  %v834_v14 = vadd.f32 %v3139_v35, %v821_v50 }
 0x1e8   : > { %v811_v57 = vpop.permute.xlu0 %810 }
 0x1e9   : > { %v806_v17 = vpop.permute.xlu1 %805  ;;  %v832_v5 = vadd.f32 %v3139_v35, %v811_v57 }
 0x1ea   : > { %v3212_v18 = vadd.f32 %v3139_v35, %v806_v17 }
 0x1eb   : > { %v840_v17 = vadd.f32 %v2156_v38, %v832_v5 }
 0x1ed   : > { %vm848_vm2 = vcmp.gt.f32.partialorder %v840_v17, 0.0 }
 0x1ee   : > { %v1335_v22 = vpop.permute.xlu1 %1334 }
 0x1ef   : > { %v3215_v23 = vadd.f32 %v3122_v19, %v1335_v22  ;;  %v853_v22 = vmul.f32 0.2, %v837_v4 }
 0x1f3   : > { %v1019_v27 = vpop.permute.xlu1 %1018  ;;  %1617 = vperm.xlu1 %2561, %v3104_v13  }
 0x1f4   : > { %v1032_v33 = vadd.f32 %v3132_v26, %v1019_v27 }
 0x1f6   : > { %v1040_v34 = vadd.f32 %v2176_v25, %v1032_v33  ;;  %v2216_v25 = vld [vmem:[%s3129_s11 + $0x40] sm:$0xff]  }
 0x1f7   : > { %v2180_v27 = vunpack.c.h.bf16 %v2216_v25 }
 0x1f8   : > { %v1347_v36 = vpop.permute.xlu1 %1346  ;;  %vm1048_vm15 = vcmp.gt.f32.partialorder %v1040_v34, 0.0  ;;  %v1056_v37 = vmul.f32 0.2, %v1040_v34 }
 0x1f9   : > { %v3220_v29 = vadd.f32 %v3122_v19, %v1347_v36  ;;  %v856_v36 = vmul.f32 0.2, %v840_v17 }
 0x1fa   : > { %v3222_v39 = vsel %vm1048_vm15, %v1040_v34, %v1056_v37  ;;  %v3236_v34 = vsel %vm845_vm1, %v837_v4, %v853_v22  ;;  %v2184_v37 = vunpack.c.h.bf16 %v2217_v40 }
 0x1fb   : > { %1079 = vmax.xlane.f32.xlu0 %v3222_v39 }
 0x1fc   : > { %v1364_v50 = vadd.f32 %v2184_v37, %v3170_v16  ;;  %v2152_v16 = vunpack.c.h.bf16 %v2209_v51 }
 0x1fd   : > { %v1011_v30 = vpop.permute.xlu1 %1010 }
 0x1fe   : > { %v1030_v13 = vadd.f32 %v3132_v26, %v1011_v30  ;;  %v2211_v26 = vld [vmem:[%s3129_s11 + $0x18] sm:$0xff]   ;;  %v2218_v30 = vld [vmem:[%s3129_s11 + $0x50] sm:$0xff]   ;;  %v1380_v5 = vmul.f32 0.2, %v1364_v50  ;;  %vm1372_vm5 = vcmp.gt.f32.partialorder %v1364_v50, 0.0 }
 0x1ff   : > { %v2160_v7 = vunpack.c.h.bf16 %v2211_v26  ;;  %v2159_v22 = vunpack.c.l.bf16 %v2211_v26 }
 0x200   : > { %v1038_v45 = vadd.f32 %v2172_v41, %v1030_v13  ;;  %v1362_v41 = vadd.f32 %v2180_v27, %v3180_v28  ;;  %v3242_v13 = vsel %vm848_vm2, %v840_v17, %v856_v36  ;;  %v2155_v17 = vunpack.c.l.bf16 %v2210_v62 }
 0x201   : > { %v842_v33 = vadd.f32 %v2160_v7, %v834_v14  ;;  %v838_v14 = vadd.f32 %v2152_v16, %v3167_v9  ;;  %v2179_v36 = vunpack.c.l.bf16 %v2216_v25  ;;  %v841_v37 = vadd.f32 %v2159_v22, %v3200_v8  ;;  %v2219_v16 = vld [vmem:[%s3129_s11 + $0x58] sm:$0xff]  }
 0x202   : > { %vm1046_vm0 = vcmp.gt.f32.partialorder %v1038_v45, 0.0  ;;  %v1054_v47 = vmul.f32 0.2, %v1038_v45  ;;  %v1378_v4 = vmul.f32 0.2, %v1362_v41  ;;  %vm1370_vm4 = vcmp.gt.f32.partialorder %v1362_v41, 0.0 }
 0x203   : > { %v858_v35 = vmul.f32 0.2, %v842_v33  ;;  %vm850_vm3 = vcmp.gt.f32.partialorder %v842_v33, 0.0  ;;  %v839_v27 = vadd.f32 %v2155_v17, %v3212_v18  ;;  %vm846_vm8 = vcmp.gt.f32.partialorder %v838_v14, 0.0 }
 0x204   : > { %v3226_v48 = vsel %vm1046_vm0, %v1038_v45, %v1054_v47  ;;  %v1339_v45 = vpop.permute.xlu0 %1338  ;;  %v2188_v47 = vunpack.c.h.bf16 %v2218_v30  ;;  %v3251_v38 = vsel %vm1370_vm4, %v1362_v41, %v1378_v4  ;;  %v1361_v51 = vadd.f32 %v2179_v36, %v3157_v60  ;;  %v1610_v36 = vpop.permute.xlu1 %1609 }
 0x205   : > { %1075 = vmax.xlane.f32.xlu0 %v3226_v48  ;;  %v1358_v43 = vadd.f32 %v3122_v19, %v1339_v45  ;;  %v3248_v57 = vsel %vm850_vm3, %v842_v33, %v858_v35  ;;  %v854_v33 = vmul.f32 0.2, %v838_v14  ;;  %v855_v35 = vmul.f32 0.2, %v839_v27 }
 0x206   : > { %vm847_vm9 = vcmp.gt.f32.partialorder %v839_v27, 0.0  ;;  %v2183_v45 = vunpack.c.l.bf16 %v2217_v40  ;;  %v857_v9 = vmul.f32 0.2, %v841_v37  ;;  %vm849_vm10 = vcmp.gt.f32.partialorder %v841_v37, 0.0 }
 0x207   : > { %v1366_v28 = vadd.f32 %v2188_v47, %v1358_v43  ;;  %v3263_v41 = vsel %vm846_vm8, %v838_v14, %v854_v33  ;;  %v3267_v47 = vsel %vm847_vm9, %v839_v27, %v855_v35  ;;  %v2187_v62 = vunpack.c.l.bf16 %v2218_v30  ;;  %v2220_v14 = vld [vmem:[%s3129_s11 + $0x60] sm:$0xff]   ;;  %v2221_v33 = vld [vmem:[%s3129_s11 + $0x68] sm:$0xff]  }
 0x208   : > { %v1363_v18 = vadd.f32 %v2183_v45, %v3150_v52  ;;  %v3271_v26 = vsel %vm849_vm10, %v841_v37, %v857_v9  ;;  %v1377_v8 = vmul.f32 0.2, %v1361_v51  ;;  %vm1369_vm11 = vcmp.gt.f32.partialorder %v1361_v51, 0.0 }
 0x209   : > { %v1382_v7 = vmul.f32 0.2, %v1366_v28  ;;  %vm1374_vm7 = vcmp.gt.f32.partialorder %v1366_v28, 0.0  ;;  %v1365_v25 = vadd.f32 %v2187_v62, %v3215_v23  ;;  %v2195_v22 = vunpack.c.l.bf16 %v2220_v14 }
 0x20a   : > { %v3275_v40 = vsel %vm1369_vm11, %v1361_v51, %v1377_v8  ;;  %v1379_v60 = vmul.f32 0.2, %v1363_v18  ;;  %vm1371_vm12 = vcmp.gt.f32.partialorder %v1363_v18, 0.0  ;;  %v2222_v51 = vld [vmem:[%s3129_s11 + $0x70] sm:$0xff]   ;;  %vm1465_vm9 = vcmp.ge.s32.totalorder %v3021_v42, 32 }
 0x20b   : > { %v3257_v19 = vsel %vm1374_vm7, %v1366_v28, %v1382_v7  ;;  %v1381_v43 = vmul.f32 0.2, %v1365_v25  ;;  %vm1373_vm13 = vcmp.gt.f32.partialorder %v1365_v25, 0.0  ;;  %v1632_v45 = vadd.f32 %v2195_v22, %v3160_v0 }
 0x20c   : > { %v3279_v30 = vsel %vm1371_vm12, %v1363_v18, %v1379_v60  ;;  %v2203_v8 = vunpack.c.l.bf16 %v2222_v51  ;;  %vm1466_vm10 = vcmp.lt.s32.totalorder %v3021_v42, 48 }
 0x20d   : > { %v3282_v28 = vsel %vm1373_vm13, %v1365_v25, %v1381_v43  ;;  %vm1640_vm15 = vcmp.gt.f32.partialorder %v1632_v45, 0.0  ;;  %vm1467_vm11 = vmand %vm1465_vm9, %vm1466_vm10  ;;  %vm1737_vm13 = vcmp.lt.s32.totalorder %v3021_v42, 64 }
 0x20e   : > { %vm3504_vm12 = vmpackc.low %vm1467_vm11, %vm1467_vm11 }
 0x217   : > { %871 = vmax.xlane.f32.xlu1 %v3236_v34 }
 0x21b   : > { %1613 = vperm.xlu0 %2562, %v3102_v10   ;;  %877 = vmax.xlane.f32.xlu1 %v3242_v13  ;;  %v3254_v10 = vsel %vm1372_vm5, %v1364_v50, %v1380_v5 }
 0x21f   : > { %881 = vmax.xlane.f32.xlu1 %v3248_v57 }
 0x223   : > { %1395 = vmax.xlane.f32.xlu1 %v3251_v38 }
 0x227   : > { %1399 = vmax.xlane.f32.xlu1 %v3254_v10 }
 0x22b   : > { %1403 = vmax.xlane.f32.xlu1 %v3257_v19 }
 0x23a   : > { %873 = vmax.xlane.f32.xlu0 %v3263_v41 }
 0x23e   : > { %875 = vmax.xlane.f32.xlu0 %v3267_v47 }
 0x242   : > { %879 = vmax.xlane.f32.xlu0 %v3271_v26 }
 0x246   : > { %1393 = vmax.xlane.f32.xlu0 %v3275_v40 }
 0x248   : > { %v1070_v50 = vpop.xlane.xlu0 %1069 }
 0x249   : > { %v1083_v52 = vsub.f32 %v3146_v44, %v1070_v50  ;;  %v2191_v44 = vunpack.c.l.bf16 %v2219_v16  ;;  %v1648_v50 = vmul.f32 0.2, %v1632_v45 }
 0x24a   : > { %1397 = vmax.xlane.f32.xlu0 %v3279_v30 }
 0x24b   : > { %v1093_v4 = vmul.f32 1.442695, %v1083_v52  ;;  %v1367_v27 = vadd.f32 %v2191_v44, %v3209_v15  ;;  %v1636_v52 = vadd.f32 %v2203_v8, %v3203_v11  ;;  %v2196_v11 = vunpack.c.h.bf16 %v2220_v14 }
 0x24c   : > { %v2204_v14 = vunpack.c.h.bf16 %v2222_v51 }
 0x24d   : > { %2563 = vpow2.f32 %v1093_v4  ;;  %v1066_v23 = vpop.xlane.xlu0 %1065  ;;  %v1383_v18 = vmul.f32 0.2, %v1367_v27  ;;  %vm1375_vm14 = vcmp.gt.f32.partialorder %v1367_v27, 0.0  ;;  %v3307_v4 = vsel %vm1640_vm15, %v1632_v45, %v1648_v50 }
 0x24e   : > { %v1081_v5 = vsub.f32 %v3153_v56, %v1066_v23  ;;  %1401 = vmax.xlane.f32.xlu0 %v3282_v28  ;;  %v2199_v56 = vunpack.c.l.bf16 %v2221_v33  ;;  %vm1644_vm1 = vcmp.gt.f32.partialorder %v1636_v52, 0.0  ;;  %v1633_v45 = vadd.f32 %v2196_v11, %v3190_v54 }
 0x24f   : > { %v3302_v60 = vsel %vm1375_vm14, %v1367_v27, %v1383_v18 }
 0x250   : > { %v1089_v7 = vmul.f32 1.442695, %v1081_v5  ;;  %v1634_v25 = vadd.f32 %v2199_v56, %v3135_v32  ;;  %v2192_v32 = vunpack.c.h.bf16 %v2219_v16  ;;  %v2200_v16 = vunpack.c.h.bf16 %v2221_v33 }
 0x251   : > { %v1649_v8 = vmul.f32 0.2, %v1633_v45  ;;  %vm1641_vm3 = vcmp.gt.f32.partialorder %v1633_v45, 0.0 }
 0x252   : > { %2565 = vpow2.f32 %v1089_v7  ;;  %v3298_v62 = vpop.xlane.xlu1 %867  ;;  %v1650_v23 = vmul.f32 0.2, %v1634_v25  ;;  %vm1642_vm0 = vcmp.gt.f32.partialorder %v1634_v25, 0.0  ;;  %v1652_v7 = vmul.f32 0.2, %v1636_v52 }
 0x253   : > { %v1368_v22 = vadd.f32 %v2192_v32, %v3220_v29  ;;  %v1635_v18 = vadd.f32 %v2200_v16, %v3177_v24 }
 0x254   : > { %v3310_v5 = vsel %vm1642_vm0, %v1634_v25, %v1650_v23  ;;  %v3317_v27 = vsel %vm1644_vm1, %v1636_v52, %v1652_v7  ;;  %v2223_v25 = vld [vmem:[%s3129_s11 + $0x78] sm:$0xff]   ;;  %v3331_v52 = vsel %vm1641_vm3, %v1633_v45, %v1649_v8 }
 0x255   : > { %vm1376_vm2 = vcmp.gt.f32.partialorder %v1368_v22, 0.0  ;;  %v1651_v33 = vmul.f32 0.2, %v1635_v18  ;;  %v2208_v54 = vunpack.c.h.bf16 %v2223_v25  ;;  %vm1643_vm4 = vcmp.gt.f32.partialorder %v1635_v18, 0.0 }
 0x257   : > { %v3288_v17 = vpop.eup %2563 }
 0x258   : > { %1109 = vadd.xlane.f32.xlu0 %v3288_v17 }
 0x25b   : > { %v1072_v37 = vpop.xlane.xlu0 %1071 }
 0x25c   : > { %v3293_v35 = vpop.eup %2565  ;;  %v1084_v9 = vsub.f32 %v3173_v21, %v1072_v37 }
 0x25d   : > { %1105 = vadd.xlane.f32.xlu0 %v3293_v35 }
 0x25e   : > { %v1095_v15 = vmul.f32 1.442695, %v1084_v9  ;;  %v1384_v9 = vmul.f32 0.2, %v1368_v22 }
 0x260   : > { %2567 = vpow2.f32 %v1095_v15  ;;  %v1629_v15 = vadd.f32 %v3124_v20, %v1610_v36  ;;  %v3326_v29 = vsel %vm1376_vm2, %v1368_v22, %v1384_v9  ;;  %v3334_v36 = vsel %vm1643_vm4, %v1635_v18, %v1651_v33 }
 0x261   : > { %1405 = vmax.xlane.f32.xlu0 %v3302_v60  ;;  %v1068_v0 = vpop.xlane.xlu1 %1067  ;;  %v2207_v33 = vunpack.c.l.bf16 %v2223_v25 }
 0x262   : > { %v1082_v21 = vsub.f32 %v3183_v31, %v1068_v0  ;;  %v1637_v0 = vadd.f32 %v2204_v14, %v1629_v15 }
 0x264   : > { %v1091_v43 = vmul.f32 1.442695, %v1082_v21  ;;  %v1653_v51 = vmul.f32 0.2, %v1637_v0  ;;  %vm1645_vm5 = vcmp.gt.f32.partialorder %v1637_v0, 0.0 }
 0x265   : > { %1664 = vmax.xlane.f32.xlu0 %v3307_v4 }
 0x266   : > { %2569 = vpow2.f32 %v1091_v43  ;;  %v3337_v43 = vsel %vm1645_vm5, %v1637_v0, %v1653_v51 }
 0x269   : > { %1668 = vmax.xlane.f32.xlu0 %v3310_v5 }
 0x26a   : > { %v3313_v44 = vpop.eup %2567  ;;  %v870_v7 = vpop.xlane.xlu0 %869 }
 0x26b   : > { %1111 = vadd.xlane.f32.xlu1 %v3313_v44  ;;  %v1078_v31 = vpop.xlane.xlu1 %1077  ;;  %v884_v14 = vsub.f32 %v3193_v58, %v870_v7 }
 0x26c   : > { %v1087_v8 = vsub.f32 %v3196_v63, %v1078_v31 }
 0x26d   : > { %1672 = vmax.xlane.f32.xlu0 %v3317_v27  ;;  %v893_v0 = vmul.f32 1.442695, %v884_v14 }
 0x26f   : > { %v1074_v37 = vpop.xlane.xlu1 %1073 }
 0x270   : > { %v3320_v56 = vpop.eup %2569  ;;  %v1085_v22 = vsub.f32 %v3205_v12, %v1074_v37  ;;  %v883_v12 = vsub.f32 %v3162_v2, %v3298_v62  ;;  %v1101_v37 = vmul.f32 1.442695, %v1087_v8 }
 0x271   : > { %1107 = vadd.xlane.f32.xlu1 %v3320_v56 }
 0x272   : > { %v1097_v15 = vmul.f32 1.442695, %v1085_v22 }
 0x273   : > { %v1618_v50 = vpop.permute.xlu1 %1617 }
 0x274   : > { %v1631_v21 = vadd.f32 %v3124_v20, %v1618_v50 }
 0x275   : > { %1407 = vmax.xlane.f32.xlu1 %v3326_v29 }
 0x276   : > { %v1639_v24 = vadd.f32 %v2208_v54, %v1631_v21  ;;  %v891_v21 = vmul.f32 1.442695, %v883_v12 }
 0x278   : > { %v1655_v23 = vmul.f32 0.2, %v1639_v24  ;;  %vm1647_vm7 = vcmp.gt.f32.partialorder %v1639_v24, 0.0 }
 0x279   : > { %1666 = vmax.xlane.f32.xlu1 %v3331_v52 }
 0x27a   : > { %v3340_v32 = vsel %vm1647_vm7, %v1639_v24, %v1655_v23 }
 0x27d   : > { %1670 = vmax.xlane.f32.xlu1 %v3334_v36 }
 0x281   : > { %1674 = vmax.xlane.f32.xlu1 %v3337_v43 }
 0x285   : > { %1678 = vmax.xlane.f32.xlu1 %v3340_v32 }
 0x288   : > { %v1080_v11 = vpop.xlane.xlu0 %1079 }
 0x289   : > { %v1088_v45 = vsub.f32 %v3222_v39, %v1080_v11 }
 0x28b   : > { %v1103_v50 = vmul.f32 1.442695, %v1088_v45 }
 0x292   : > { %v1076_v16 = vpop.xlane.xlu0 %1075 }
 0x293   : > { %v1086_v9 = vsub.f32 %v3226_v48, %v1076_v16 }
 0x295   : > { %v1099_v18 = vmul.f32 1.442695, %v1086_v9 }
 0x297   : > { %2571 = vpow2.f32 %v1099_v18 }
 0x298   : > { %2573 = vpow2.f32 %v1097_v15 }
 0x299   : > { %2575 = vpow2.f32 %v1103_v50 }
 0x29a   : > { %v1614_v54 = vpop.permute.xlu0 %1613  ;;  %2577 = vpow2.f32 %v893_v0 }
 0x29b   : > { %v1630_v39 = vadd.f32 %v3124_v20, %v1614_v54  ;;  %2579 = vpow2.f32 %v1101_v37 }
 0x29c   : > { %2581 = vpow2.f32 %v891_v21 }
 0x29d   : > { %v1638_v48 = vadd.f32 %v2207_v33, %v1630_v39 }
 0x29f   : > { %vm1646_vm8 = vcmp.gt.f32.partialorder %v1638_v48, 0.0  ;;  %v1654_v58 = vmul.f32 0.2, %v1638_v48 }
 0x2a1   : > { %v3351_v63 = vpop.eup %2571  ;;  %v3353_v31 = vsel %vm1646_vm8, %v1638_v48, %v1654_v58 }
 0x2a2   : > { %1676 = vmax.xlane.f32.xlu0 %v3353_v31  ;;  %1115 = vadd.xlane.f32.xlu1 %v3351_v63  ;;  %v3357_v2 = vpop.eup %2573 }
 0x2a3   : > { %v3359_v25 = vpop.eup %2575 }
 0x2a4   : > { %v872_v62 = vpop.xlane.xlu1 %871  ;;  %v3364_v51 = vpop.eup %2577 }
 0x2a5   : > { %v885_v20 = vsub.f32 %v3236_v34, %v872_v62  ;;  %v3366_v23 = vpop.eup %2579 }
 0x2a6   : > { %1113 = vadd.xlane.f32.xlu0 %v3357_v2  ;;  %1119 = vadd.xlane.f32.xlu1 %v3359_v25  ;;  %v3370_v7 = vpop.eup %2581 }
 0x2a7   : > { %v895_v24 = vmul.f32 1.442695, %v885_v20 }
 0x2a8   : > { %v878_v34 = vpop.xlane.xlu1 %877 }
 0x2a9   : > { %2583 = vpow2.f32 %v895_v24  ;;  %v888_v16 = vsub.f32 %v3242_v13, %v878_v34 }
 0x2aa   : > { %1117 = vadd.xlane.f32.xlu0 %v3366_v23  ;;  %909 = vadd.xlane.f32.xlu1 %v3364_v51 }
 0x2ab   : > { %v901_v15 = vmul.f32 1.442695, %v888_v16 }
 0x2ac   : > { %v882_v22 = vpop.xlane.xlu1 %881 }
 0x2ad   : > { %v890_v8 = vsub.f32 %v3248_v57, %v882_v22 }
 0x2ae   : > { %907 = vadd.xlane.f32.xlu0 %v3370_v7 }
 0x2af   : > { %v905_v12 = vmul.f32 1.442695, %v890_v8 }
 0x2b0   : > { %v1396_v9 = vpop.xlane.xlu1 %1395 }
 0x2b1   : > { %v1410_v37 = vsub.f32 %v3251_v38, %v1396_v9 }
 0x2b3   : > { %v3373_v11 = vpop.eup %2583 }
 0x2b4   : > { %911 = vadd.xlane.f32.xlu0 %v3373_v11  ;;  %v1400_v0 = vpop.xlane.xlu1 %1399 }
 0x2b5   : > { %v1412_v21 = vsub.f32 %v3254_v10, %v1400_v0 }
 0x2b7   : > { %v1423_v24 = vmul.f32 1.442695, %v1412_v21 }
 0x2b8   : > { %v1404_v58 = vpop.xlane.xlu1 %1403 }
 0x2b9   : > { %v1414_v38 = vsub.f32 %v3257_v19, %v1404_v58 }
 0x2c7   : > { %v874_v45 = vpop.xlane.xlu0 %873 }
 0x2c8   : > { %v886_v18 = vsub.f32 %v3263_v41, %v874_v45  ;;  %v1419_v41 = vmul.f32 1.442695, %v1410_v37 }
 0x2ca   : > { %v897_v14 = vmul.f32 1.442695, %v886_v18 }
 0x2cb   : > { %v876_v50 = vpop.xlane.xlu0 %875 }
 0x2cc   : > { %2585 = vpow2.f32 %v897_v14  ;;  %v887_v33 = vsub.f32 %v3267_v47, %v876_v50 }
 0x2cd   : > { %2587 = vpow2.f32 %v901_v15 }
 0x2ce   : > { %v899_v54 = vmul.f32 1.442695, %v887_v33 }
 0x2cf   : > { %v880_v39 = vpop.xlane.xlu0 %879 }
 0x2d0   : > { %2589 = vpow2.f32 %v899_v54  ;;  %v889_v13 = vsub.f32 %v3271_v26, %v880_v39 }
 0x2d1   : > { %2591 = vpow2.f32 %v905_v12 }
 0x2d2   : > { %v903_v48 = vmul.f32 1.442695, %v889_v13 }
 0x2d3   : > { %v1394_v57 = vpop.xlane.xlu0 %1393 }
 0x2d4   : > { %2593 = vpow2.f32 %v903_v48  ;;  %v1409_v47 = vsub.f32 %v3275_v40, %v1394_v57  ;;  %v1427_v40 = vmul.f32 1.442695, %v1414_v38 }
 0x2d5   : > { %2595 = vpow2.f32 %v1419_v41 }
 0x2d6   : > { %v3384_v62 = vpop.eup %2585  ;;  %v1417_v20 = vmul.f32 1.442695, %v1409_v47 }
 0x2d7   : > { %v1398_v34 = vpop.xlane.xlu0 %1397  ;;  %913 = vadd.xlane.f32.xlu1 %v3384_v62  ;;  %v3389_v22 = vpop.eup %2587 }
 0x2d8   : > { %2597 = vpow2.f32 %v1417_v20  ;;  %v1411_v26 = vsub.f32 %v3279_v30, %v1398_v34 }
 0x2d9   : > { %2599 = vpow2.f32 %v1423_v24 }
 0x2da   : > { %v3391_v10 = vpop.eup %2589  ;;  %v1421_v16 = vmul.f32 1.442695, %v1411_v26 }
 0x2db   : > { %v1402_v45 = vpop.xlane.xlu0 %1401  ;;  %915 = vadd.xlane.f32.xlu0 %v3391_v10  ;;  %917 = vadd.xlane.f32.xlu1 %v3389_v22  ;;  %v3396_v9 = vpop.eup %2591 }
 0x2dc   : > { %2601 = vpow2.f32 %v1421_v16  ;;  %v1413_v19 = vsub.f32 %v3282_v28, %v1402_v45 }
 0x2dd   : > { %2603 = vpow2.f32 %v1427_v40 }
 0x2de   : > { %v3398_v18 = vpop.eup %2593  ;;  %v1425_v30 = vmul.f32 1.442695, %v1413_v19 }
 0x2df   : > { %919 = vadd.xlane.f32.xlu0 %v3398_v18  ;;  %921 = vadd.xlane.f32.xlu1 %v3396_v9  ;;  %v3402_v14 = vpop.eup %2595 }
 0x2e0   : > { %2605 = vpow2.f32 %v1425_v30 }
 0x2e2   : > { %v3404_v15 = vpop.eup %2597 }
 0x2e3   : > { %1433 = vadd.xlane.f32.xlu0 %v3404_v15  ;;  %1435 = vadd.xlane.f32.xlu1 %v3402_v14  ;;  %v3408_v28 = vpop.eup %2599 }
 0x2e5   : > { %v1110_v8 = vpop.xlane.xlu0 %1109 }
 0x2e6   : > { %v3410_v50 = vpop.eup %2601 }
 0x2e7   : > { %1437 = vadd.xlane.f32.xlu0 %v3410_v50  ;;  %1439 = vadd.xlane.f32.xlu1 %v3408_v28  ;;  %v3414_v33 = vpop.eup %2603 }
 0x2ea   : > { %v3416_v0 = vpop.eup %2605  ;;  %v1106_v54 = vpop.xlane.xlu0 %1105 }
 0x2eb   : > { %1441 = vadd.xlane.f32.xlu0 %v3416_v0  ;;  %1443 = vadd.xlane.f32.xlu1 %v3414_v33 }
 0x2ee   : > { %v1406_v12 = vpop.xlane.xlu0 %1405 }
 0x2ef   : > { %v1415_v37 = vsub.f32 %v3302_v60, %v1406_v12 }
 0x2f1   : > { %v1429_v39 = vmul.f32 1.442695, %v1415_v37 }
 0x2f2   : > { %v1665_v13 = vpop.xlane.xlu0 %1664 }
 0x2f3   : > { %2607 = vpow2.f32 %v1429_v39  ;;  %v1680_v48 = vsub.f32 %v3307_v4, %v1665_v13 }
 0x2f5   : > { %v1688_v41 = vmul.f32 1.442695, %v1680_v48 }
 0x2f6   : > { %v1669_v21 = vpop.xlane.xlu0 %1668 }
 0x2f7   : > { %2609 = vpow2.f32 %v1688_v41  ;;  %v1682_v57 = vsub.f32 %v3310_v5, %v1669_v21 }
 0x2f8   : > { %v1112_v47 = vpop.xlane.xlu1 %1111 }
 0x2f9   : > { %v1692_v58 = vmul.f32 1.442695, %v1682_v57 }
 0x2fa   : > { %v1673_v20 = vpop.xlane.xlu0 %1672 }
 0x2fb   : > { %2611 = vpow2.f32 %v1692_v58  ;;  %v1684_v24 = vsub.f32 %v3317_v27, %v1673_v20 }
 0x2fc   : > { %2613 = vrcp.f32 %v1110_v8 }
 0x2fd   : > { %v3424_v38 = vpop.eup %2607  ;;  %2615 = vrcp.f32 %v1112_v47  ;;  %v1696_v60 = vmul.f32 1.442695, %v1684_v24 }
 0x2fe   : > { %2617 = vrcp.f32 %v1106_v54  ;;  %1445 = vadd.xlane.f32.xlu0 %v3424_v38  ;;  %v1108_v4 = vpop.xlane.xlu1 %1107 }
 0x2ff   : > { %2619 = vpow2.f32 %v1696_v60 }
 0x300   : > { %2621 = vrcp.f32 %v1108_v4 }
 0x301   : > { %v3427_v34 = vpop.eup %2609 }
 0x302   : > { %1704 = vadd.xlane.f32.xlu0 %v3427_v34  ;;  %v1408_v5 = vpop.xlane.xlu1 %1407 }
 0x303   : > { %v1416_v26 = vsub.f32 %v3326_v29, %v1408_v5 }
 0x305   : > { %v3431_v16 = vpop.eup %2611  ;;  %v1431_v27 = vmul.f32 1.442695, %v1416_v26 }
 0x306   : > { %v2614_v40 = vpop.eup %2613  ;;  %1708 = vadd.xlane.f32.xlu0 %v3431_v16  ;;  %v1667_v45 = vpop.xlane.xlu1 %1666 }
 0x307   : > { %v2616_v19 = vpop.eup %2615  ;;  %2623 = vpow2.f32 %v1431_v27  ;;  %v1681_v30 = vsub.f32 %v3331_v52, %v1667_v45  ;;  %v1126_v21 = vmul.f32 %v2614_v40, %v3288_v17 }
 0x308   : > { %v2618_v8 = vpop.eup %2617  ;;  %v1128_v29 = vmul.f32 %v2616_v19, %v3313_v44 }
 0x309   : > { %v3435_v54 = vpop.eup %2619  ;;  %v1690_v12 = vmul.f32 1.442695, %v1681_v30  ;;  %v1122_v48 = vmul.f32 %v2618_v8, %v3293_v35 }
 0x30a   : > { %v2622_v37 = vpop.eup %2621  ;;  %1712 = vadd.xlane.f32.xlu0 %v3435_v54  ;;  %v1671_v39 = vpop.xlane.xlu1 %1670  ;;  %v1159_v47 = vpack.c.bf16 %v1128_v29, %v1126_v21 }
 0x30b   : > { %2625 = vpow2.f32 %v1690_v12  ;;  %v1683_v13 = vsub.f32 %v3334_v36, %v1671_v39  ;;  %v1124_v41 = vmul.f32 %v2622_v37, %v3320_v56 }
 0x30d   : > { %v1694_v52 = vmul.f32 1.442695, %v1683_v13  ;;  %v1158_v57 = vpack.c.bf16 %v1124_v41, %v1122_v48 }
 0x30e   : > { %v1675_v58 = vpop.xlane.xlu1 %1674 }
 0x30f   : > { %2627 = vpow2.f32 %v1694_v52  ;;  %2401 = vmatprep.mubr.bf16.mxu1 %v1158_v57  ;;  %v1685_v20 = vsub.f32 %v3337_v43, %v1675_v58 }
 0x310   : > { %2402 = vmatmul.mubr.bf16.vlgmr.msra.gmra.mrb[0].mxu1 %v1159_v47 }
 0x311   : > { %v3444_v24 = vpop.eup %2623  ;;  %v1698_v44 = vmul.f32 1.442695, %v1685_v20  ;;  %2410 = vmatpush3.bf16.msk.msra.mxu1 %vm3091_vm6, %v3031_v49 }
 0x312   : > { %2411 = vmatprep.subr.msk.bf16.mxu1 %vm3091_vm6, %v3025_v46  ;;  %1447 = vadd.xlane.f32.xlu1 %v3444_v24  ;;  %v1679_v17 = vpop.xlane.xlu1 %1678 }
 0x313   : > { %2629 = vpow2.f32 %v1698_v44  ;;  %v1687_v35 = vsub.f32 %v3340_v32, %v1679_v17 }
 0x315   : > { %v3454_v56 = vpop.eup %2625  ;;  %v1702_v36 = vmul.f32 1.442695, %v1687_v35  ;;  %2412 = vmatpush3.bf16.msk.msra.mxu1 %vm3091_vm6, %v3025_v46 }
 0x316   : > { %2413 = vmatprep.subr.msk.bf16.mxu1 %vm3091_vm6, %v3047_v55  ;;  %1706 = vadd.xlane.f32.xlu1 %v3454_v56 }
 0x317   : > { %2631 = vpow2.f32 %v1702_v36 }
 0x319   : > { %v3463_v43 = vpop.eup %2627  ;;  %2414 = vmatpush3.bf16.msk.msra.mxu1 %vm3091_vm6, %v3047_v55 }
 0x31a   : > { %2415 = vmatprep.subr.msk.bf16.mxu1 %vm3091_vm6, %v3042_v53  ;;  %1710 = vadd.xlane.f32.xlu1 %v3463_v43 }
 0x31d   : > { %v3472_v32 = vpop.eup %2629  ;;  %2416 = vmatpush3.bf16.msk.msra.mxu1 %vm3091_vm6, %v3042_v53 }
 0x31e   : > { %2417 = vmatprep.subr.msk.bf16.mxu1 %vm3091_vm6, %v3063_v61  ;;  %1714 = vadd.xlane.f32.xlu1 %v3472_v32 }
 0x321   : > { %v3481_v60 = vpop.eup %2631  ;;  %2418 = vmatpush3.bf16.msk.msra.mxu1 %vm3091_vm6, %v3063_v61 }
 0x322   : > { %2419 = vmatprep.subr.msk.bf16.mxu1 %vm3091_vm6, %v3058_v59  ;;  %1718 = vadd.xlane.f32.xlu1 %v3481_v60 }
 0x325   : > { %2420 = vmatpush3.bf16.msk.msra.mxu1 %vm3091_vm6, %v3058_v59 }
 0x326   : > { %2421 = vmatprep.subr.msk.bf16.mxu1 %vm3091_vm6, %v3079_v3 }
 0x329   : > { %2422 = vmatpush3.bf16.msk.msra.mxu1 %vm3091_vm6, %v3079_v3 }
 0x32a   : > { %2423 = vmatprep.subr.msk.bf16.mxu1 %vm3091_vm6, %v3074_v1 }
 0x32d   : > { %2424 = vmatpush3.bf16.msk.msra.mxu1 %vm3091_vm6, %v3074_v1  ;;  %vm1736_vm6 = vcmp.ge.s32.totalorder %v3021_v42, 48 }
 0x32e   : > { %2433 = vmatprep.subr.msk.bf16.mxu1 %vm3504_vm12, %v3031_v49  ;;  %vm1738_vm14 = vmand %vm1736_vm6, %vm1737_vm13 }
 0x32f   : > { %v1677_v5 = vpop.xlane.xlu0 %1676  ;;  %v1116_v26 = vpop.xlane.xlu1 %1115  ;;  %vm3578_vm15 = vmpackc.low %vm1738_vm14, %vm1738_vm14 }
 0x330   : > { %v1686_v27 = vsub.f32 %v3353_v31, %v1677_v5  ;;  %2633 = vrcp.f32 %v1116_v26 }
 0x332   : > { %v1700_v40 = vmul.f32 1.442695, %v1686_v27 }
 0x333   : > { %v1114_v45 = vpop.xlane.xlu0 %1113  ;;  %v1120_v19 = vpop.xlane.xlu1 %1119 }
 0x334   : > { %2635 = vpow2.f32 %v1700_v40 }
 0x335   : > { %2637 = vrcp.f32 %v1114_v45 }
 0x336   : > { %2639 = vrcp.f32 %v1120_v19 }
 0x337   : > { %v1118_v30 = vpop.xlane.xlu0 %1117  ;;  %v910_v8 = vpop.xlane.xlu1 %909 }
 0x338   : > { %2641 = vrcp.f32 %v1118_v30 }
 0x339   : > { %2643 = vrcp.f32 %v910_v8 }
 0x33a   : > { %v2634_v12 = vpop.eup %2633 }
 0x33b   : > { %v908_v6 = vpop.xlane.xlu0 %907  ;;  %v1132_v13 = vmul.f32 %v2634_v12, %v3351_v63 }
 0x33c   : > { %2645 = vrcp.f32 %v908_v6 }
 0x33e   : > { %v3515_v37 = vpop.eup %2635 }
 0x33f   : > { %v2638_v39 = vpop.eup %2637  ;;  %1716 = vadd.xlane.f32.xlu0 %v3515_v37 }
 0x340   : > { %v2640_v31 = vpop.eup %2639  ;;  %v1130_v29 = vmul.f32 %v2638_v39, %v3357_v2 }
 0x341   : > { %v1136_v52 = vmul.f32 %v2640_v31, %v3359_v25  ;;  %v912_v2 = vpop.xlane.xlu0 %911 }
 0x342   : > { %v2642_v48 = vpop.eup %2641  ;;  %v1160_v41 = vpack.c.bf16 %v1132_v13, %v1130_v29  ;;  %2647 = vrcp.f32 %v912_v2 }
 0x343   : > { %v1134_v21 = vmul.f32 %v2642_v48, %v3366_v23  ;;  %v2644_v57 = vpop.eup %2643 }
 0x344   : > { %2405 = vmatprep.mubr.bf16.mxu1 %v1160_v41  ;;  %v926_v44 = vmul.f32 %v2644_v57, %v3364_v51 }
 0x345   : > { %v1161_v58 = vpack.c.bf16 %v1136_v52, %v1134_v21 }
 0x346   : > { %v2646_v47 = vpop.eup %2645 }
 0x347   : > { %2406 = vmatmul.mubr.bf16.gmra.mrb[4].mxu1 %v1161_v58  ;;  %v924_v20 = vmul.f32 %v2646_v47, %v3370_v7 }
 0x349   : > { %v960_v17 = vpack.c.bf16 %v926_v44, %v924_v20 }
 0x34b   : > { %2425 = vmatprep.mubr.bf16.mxu1 %v960_v17 }
 0x34c   : > { %v2648_v5 = vpop.eup %2647 }
 0x34d   : > { %v928_v7 = vmul.f32 %v2648_v5, %v3373_v11 }
 0x364   : > { %v914_v63 = vpop.xlane.xlu1 %913 }
 0x365   : > { %2649 = vrcp.f32 %v914_v63 }
 0x368   : > { %v916_v35 = vpop.xlane.xlu0 %915  ;;  %v918_v36 = vpop.xlane.xlu1 %917 }
 0x369   : > { %2651 = vrcp.f32 %v916_v35 }
 0x36a   : > { %2653 = vrcp.f32 %v918_v36 }
 0x36c   : > { %v920_v25 = vpop.xlane.xlu0 %919  ;;  %v922_v23 = vpop.xlane.xlu1 %921 }
 0x36d   : > { %2655 = vrcp.f32 %v920_v25 }
 0x36e   : > { %2657 = vrcp.f32 %v922_v23 }
 0x36f   : > { %v2650_v26 = vpop.eup %2649 }
 0x370   : > { %v930_v51 = vmul.f32 %v2650_v26, %v3384_v62  ;;  %v1434_v27 = vpop.xlane.xlu0 %1433  ;;  %v1436_v40 = vpop.xlane.xlu1 %1435 }
 0x371   : > { %2659 = vrcp.f32 %v1434_v27 }
 0x372   : > { %2661 = vrcp.f32 %v1436_v40  ;;  %v961_v45 = vpack.c.bf16 %v930_v51, %v928_v7 }
 0x373   : > { %v2652_v19 = vpop.eup %2651 }
 0x374   : > { %v2654_v30 = vpop.eup %2653  ;;  %2426 = vmatmul.mubr.bf16.vlgmr.msra.gmra.mrb[0].mxu1 %v961_v45  ;;  %v932_v8 = vmul.f32 %v2652_v19, %v3391_v10  ;;  %v1438_v31 = vpop.xlane.xlu0 %1437 }
 0x375   : > { %2434 = vmatpush3.bf16.msk.msra.mxu1 %vm3504_vm12, %v3031_v49  ;;  %v934_v6 = vmul.f32 %v2654_v30, %v3389_v22  ;;  %v1440_v29 = vpop.xlane.xlu1 %1439  ;;  %2663 = vrcp.f32 %v1438_v31 }
 0x376   : > { %2435 = vmatprep.subr.msk.bf16.mxu1 %vm3504_vm12, %v3025_v46  ;;  %2665 = vrcp.f32 %v1440_v29 }
 0x377   : > { %v2656_v11 = vpop.eup %2655  ;;  %v962_v62 = vpack.c.bf16 %v934_v6, %v932_v8 }
 0x378   : > { %v2658_v12 = vpop.eup %2657  ;;  %v936_v39 = vmul.f32 %v2656_v11, %v3398_v18  ;;  %v1442_v21 = vpop.xlane.xlu0 %1441 }
 0x379   : > { %2429 = vmatprep.mubr.bf16.mxu1 %v962_v62  ;;  %2436 = vmatpush3.bf16.msk.msra.mxu1 %vm3504_vm12, %v3025_v46  ;;  %v938_v10 = vmul.f32 %v2658_v12, %v3396_v9  ;;  %v1444_v52 = vpop.xlane.xlu1 %1443  ;;  %2667 = vrcp.f32 %v1442_v21  ;;  %v3651_v62 = vld [vmem:[%s3705_s6] ss:$0 sm:$0xff] }
 0x37a   : > { %2437 = vmatprep.subr.msk.bf16.mxu1 %vm3504_vm12, %v3047_v55  ;;  %2669 = vrcp.f32 %v1444_v52 }
 0x37b   : > { %v2660_v22 = vpop.eup %2659  ;;  %v963_v13 = vpack.c.bf16 %v938_v10, %v936_v39 }
 0x37c   : > { %v2662_v48 = vpop.eup %2661  ;;  %v1450_v41 = vmul.f32 %v2660_v22, %v3404_v15 }
 0x37d   : > { %2430 = vmatmul.mubr.bf16.gmra.mrb[4].mxu1 %v963_v13  ;;  %v1452_v18 = vmul.f32 %v2662_v48, %v3402_v14 }
 0x37e   : > { %2438 = vmatpush3.bf16.msk.msra.mxu1 %vm3504_vm12, %v3047_v55 }
 0x37f   : > { %2439 = vmatprep.subr.msk.bf16.mxu1 %vm3504_vm12, %v3042_v53  ;;  %v1486_v9 = vpack.c.bf16 %v1452_v18, %v1450_v41  ;;  %v2664_v14 = vpop.eup %2663 }
 0x380   : > { %v2666_v15 = vpop.eup %2665  ;;  %v1454_v47 = vmul.f32 %v2664_v14, %v3410_v50 }
 0x381   : > { %2449 = vmatprep.mubr.bf16.mxu1 %v1486_v9  ;;  %v1456_v20 = vmul.f32 %v2666_v15, %v3408_v28 }
 0x382   : > { %2440 = vmatpush3.bf16.msk.msra.mxu1 %vm3504_vm12, %v3042_v53 }
 0x383   : > { %2441 = vmatprep.subr.msk.bf16.mxu1 %vm3504_vm12, %v3063_v61  ;;  %v2668_v57 = vpop.eup %2667  ;;  %v1487_v28 = vpack.c.bf16 %v1456_v20, %v1454_v47 }
 0x384   : > { %v2670_v58 = vpop.eup %2669  ;;  %v1458_v44 = vmul.f32 %v2668_v57, %v3416_v0 }
 0x385   : > { %v1460_v17 = vmul.f32 %v2670_v58, %v3414_v33 }
 0x386   : > { %2442 = vmatpush3.bf16.msk.msra.mxu1 %vm3504_vm12, %v3063_v61 }
 0x387   : > { %2443 = vmatprep.subr.msk.bf16.mxu1 %vm3504_vm12, %v3058_v59  ;;  %v1488_v50 = vpack.c.bf16 %v1460_v17, %v1458_v44 }
 0x38a   : > { %2444 = vmatpush3.bf16.msk.msra.mxu1 %vm3504_vm12, %v3058_v59 }
 0x38b   : > { %2445 = vmatprep.subr.msk.bf16.mxu1 %vm3504_vm12, %v3079_v3  ;;  %v1446_v2 = vpop.xlane.xlu0 %1445 }
 0x38c   : > { %2671 = vrcp.f32 %v1446_v2 }
 0x38e   : > { %2446 = vmatpush3.bf16.msk.msra.mxu1 %vm3504_vm12, %v3079_v3 }
 0x38f   : > { %2447 = vmatprep.subr.msk.bf16.mxu1 %vm3504_vm12, %v3074_v1  ;;  %v1705_v33 = vpop.xlane.xlu0 %1704 }
 0x392   : > { %2448 = vmatpush3.bf16.msk.msra.mxu1 %vm3504_vm12, %v3074_v1 }
 0x393   : > { %2457 = vmatprep.subr.msk.bf16.mxu1 %vm3578_vm15, %v3031_v49  ;;  %v1709_v0 = vpop.xlane.xlu0 %1708 }
 0x395   : > { %2450 = vmatmul.mubr.bf16.vlgmr.msra.gmra.mrb[0].mxu1 %v1487_v28 }
 0x396   : > { %2453 = vmatprep.mubr.bf16.mxu1 %v1488_v50  ;;  %2458 = vmatpush3.bf16.msk.msra.mxu1 %vm3578_vm15, %v3031_v49  ;;  %v2672_v63 = vpop.eup %2671 }
 0x397   : > { %2459 = vmatprep.subr.msk.bf16.mxu1 %vm3578_vm15, %v3025_v46 }
 0x39a   : > { %2460 = vmatpush3.bf16.msk.msra.mxu1 %vm3578_vm15, %v3025_v46 }
 0x39b   : > { %2461 = vmatprep.subr.msk.bf16.mxu1 %vm3578_vm15, %v3047_v55 }
 0x39e   : > { %2462 = vmatpush3.bf16.msk.msra.mxu1 %vm3578_vm15, %v3047_v55  ;;  %v1713_v55 = vpop.xlane.xlu0 %1712 }
 0x39f   : > { %2463 = vmatprep.subr.msk.bf16.mxu1 %vm3578_vm15, %v3042_v53  ;;  %v1448_v49 = vpop.xlane.xlu1 %1447 }
 0x3a0   : > { %2673 = vrcp.f32 %v1448_v49 }
 0x3a1   : > { %2675 = vrcp.f32 %v1705_v33 }
 0x3a2   : > { %2464 = vmatpush3.bf16.msk.msra.mxu1 %vm3578_vm15, %v3042_v53 }
 0x3a3   : > { %2465 = vmatprep.subr.msk.bf16.mxu1 %vm3578_vm15, %v3063_v61  ;;  %v1707_v46 = vpop.xlane.xlu1 %1706 }
 0x3a4   : > { %2677 = vrcp.f32 %v1707_v46 }
 0x3a5   : > { %2679 = vrcp.f32 %v1709_v0 }
 0x3a6   : > { %2466 = vmatpush3.bf16.msk.msra.mxu1 %vm3578_vm15, %v3063_v61  ;;  %v1462_v61 = vmul.f32 %v2672_v63, %v3424_v38 }
 0x3a7   : > { %2467 = vmatprep.subr.msk.bf16.mxu1 %vm3578_vm15, %v3058_v59  ;;  %v1711_v4 = vpop.xlane.xlu1 %1710 }
 0x3a8   : > { %2681 = vrcp.f32 %v1711_v4 }
 0x3a9   : > { %2683 = vrcp.f32 %v1713_v55 }
 0x3aa   : > { %v2674_v53 = vpop.eup %2673  ;;  %2468 = vmatpush3.bf16.msk.msra.mxu1 %vm3578_vm15, %v3058_v59 }
 0x3ab   : > { %2469 = vmatprep.subr.msk.bf16.mxu1 %vm3578_vm15, %v3079_v3  ;;  %v1715_v35 = vpop.xlane.xlu1 %1714  ;;  %v1464_v36 = vmul.f32 %v2674_v53, %v3444_v24  ;;  %v2676_v25 = vpop.eup %2675 }
 0x3ac   : > { %2685 = vrcp.f32 %v1715_v35  ;;  %v1721_v59 = vmul.f32 %v2676_v25, %v3427_v34 }
 0x3ad   : > { %v1489_v23 = vpack.c.bf16 %v1464_v36, %v1462_v61 }
 0x3ae   : > { %v2678_v5 = vpop.eup %2677  ;;  %2470 = vmatpush3.bf16.msk.msra.mxu1 %vm3578_vm15, %v3079_v3 }
 0x3af   : > { %2471 = vmatprep.subr.msk.bf16.mxu1 %vm3578_vm15, %v3074_v1  ;;  %2454 = vmatmul.mubr.bf16.gmra.mrb[4].mxu1 %v1489_v23  ;;  %v1723_v26 = vmul.f32 %v2678_v5, %v3454_v56  ;;  %v2680_v38 = vpop.eup %2679  ;;  %v1719_v30 = vpop.xlane.xlu1 %1718 }
 0x3b0   : > { %v1725_v51 = vmul.f32 %v2680_v38, %v3431_v16  ;;  %2687 = vrcp.f32 %v1719_v30 }
 0x3b1   : > { %v1757_v7 = vpack.c.bf16 %v1723_v26, %v1721_v59 }
 0x3b2   : > { %v2682_v24 = vpop.eup %2681  ;;  %2472 = vmatpush3.bf16.msk.msra.mxu1 %vm3578_vm15, %v3074_v1 }
 0x3b3   : > { %v1727_v3 = vmul.f32 %v2682_v24, %v3463_v43  ;;  %2473 = vmatprep.mubr.bf16.mxu1 %v1757_v7  ;;  %v2684_v27 = vpop.eup %2683 }
 0x3b4   : > { %v1729_v34 = vmul.f32 %v2684_v27, %v3435_v54  ;;  %v2131_v54 = vld [vmem:[%s3704_s5] ss:$0 sm:$0xff] }
 0x3b5   : > { %v1758_v40 = vpack.c.bf16 %v1727_v3, %v1725_v51 }
 0x3b6   : > { %v2686_v45 = vpop.eup %2685 }
 0x3b7   : > { %2474 = vmatmul.mubr.bf16.vlgmr.msra.gmra.mrb[0].mxu1 %v1758_v40  ;;  %v1731_v56 = vmul.f32 %v2686_v45, %v3472_v32 }
 0x3b9   : > { %v1759_v19 = vpack.c.bf16 %v1731_v56, %v1729_v34 }
 0x3ba   : > { %v2688_v1 = vpop.eup %2687 }
 0x3bb   : > { %2477 = vmatprep.mubr.bf16.mxu1 %v1759_v19  ;;  %v1735_v43 = vmul.f32 %v2688_v1, %v3481_v60 }
 0x3cc   : > { %v1717_v8 = vpop.xlane.xlu0 %1716 }
 0x3cd   : > { %2689 = vrcp.f32 %v1717_v8 }
 0x3d7   : > { %v2690_v6 = vpop.eup %2689 }
 0x3d8   : > { %v1733_v16 = vmul.f32 %v2690_v6, %v3515_v37  ;;  %v3656_v37 = vld [vmem:[%s3706_s7] ss:$0 sm:$0xff] }
 0x3da   : > { %v1760_v11 = vpack.c.bf16 %v1735_v43, %v1733_v16 }
 0x3dc   : > { %2478 = vmatmul.mubr.bf16.gmra.mrb[4].mxu1 %v1760_v11 }
 0x48a   : > { %v2475_v32 = vpop.f32.mrb[0].mxu1 }
 0x48b   : > { %v1851_v12 = vadd.f32 %v2475_v32, %v2131_v54  ;;  %v1803_v39 = vpop.f32.mrb[1].mxu1 }
 0x48c   : > { %v1849_v60 = vadd.f32 %v2131_v54, %v1803_v39  ;;  %v2476_v31 = vpop.f32.mrb[2].mxu1 }
 0x48d   : > { %v1866_v10 = vmul.f32 %v3651_v62, %v1851_v12  ;;  %v1852_v29 = vadd.f32 %v2476_v31, %v2131_v54  ;;  %v1806_v22 = vpop.f32.mrb[3].mxu1 }
 0x48e   : > { %v1864_v13 = vmul.f32 %v3651_v62, %v1849_v60  ;;  %v1850_v48 = vadd.f32 %v2131_v54, %v1806_v22 }
 0x48f   : > { %v1881_v41 = vadd.f32 %v3656_v37, %v1866_v10  ;;  %v1867_v18 = vmul.f32 %v3651_v62, %v1852_v29 }
 0x490   : > { %v1879_v21 = vadd.f32 %v3656_v37, %v1864_v13  ;;  %v1865_v9 = vmul.f32 %v3651_v62, %v1850_v48 }
 0x491   : > { %v1899_v52 = vmul.f32 1.442695, %v1881_v41  ;;  %v1882_v14 = vadd.f32 %v3656_v37, %v1867_v18  ;;  %vm1889_vm0 = vcmp.gt.f32.partialorder %v1881_v41, 0.0 }
 0x492   : > { %v1895_v15 = vmul.f32 1.442695, %v1879_v21  ;;  %v1880_v57 = vadd.f32 %v3656_v37, %v1865_v9  ;;  %vm1887_vm1 = vcmp.gt.f32.partialorder %v1879_v21, 0.0 }
 0x493   : > { %2691 = vpow2.f32 %v1899_v52  ;;  %v1901_v58 = vmul.f32 1.442695, %v1882_v14  ;;  %vm1890_vm2 = vcmp.gt.f32.partialorder %v1882_v14, 0.0 }
 0x494   : > { %2693 = vpow2.f32 %v1895_v15  ;;  %v1897_v47 = vmul.f32 1.442695, %v1880_v57  ;;  %vm1888_vm3 = vcmp.gt.f32.partialorder %v1880_v57, 0.0 }
 0x495   : > { %2695 = vpow2.f32 %v1901_v58 }
 0x496   : > { %2697 = vpow2.f32 %v1897_v47 }
 0x49d   : > { %v2692_v20 = vpop.eup %2691 }
 0x49e   : > { %v2694_v42 = vpop.eup %2693  ;;  %v2136_v44 = vadd.f32 -1.0, %v2692_v20 }
 0x49f   : > { %v2696_v17 = vpop.eup %2695  ;;  %v2134_v28 = vadd.f32 -1.0, %v2694_v42 }
 0x4a0   : > { %v2698_v50 = vpop.eup %2697  ;;  %v1921_v2 = vsel %vm1889_vm0, %v1881_v41, %v2136_v44  ;;  %v2137_v33 = vadd.f32 -1.0, %v2696_v17 }
 0x4a1   : > { %1929 = vst [vmem:[%s3671_s20 + $0x10] sm:$0xff] %v1921_v2  ;;  %v1919_v49 = vsel %vm1887_vm1, %v1879_v21, %v2134_v28  ;;  %v2135_v0 = vadd.f32 -1.0, %v2698_v50 }
 0x4a2   : > { %1927 = vst [vmem:[%s3671_s20] sm:$0xff] %v1919_v49  ;;  %v1922_v46 = vsel %vm1890_vm2, %v1882_v14, %v2137_v33 }
 0x4a3   : > { %1930 = vst [vmem:[%s3671_s20 + $0x18] sm:$0xff] %v1922_v46  ;;  %v1920_v55 = vsel %vm1888_vm3, %v1880_v57, %v2135_v0 }
 0x4a4   : > { %1928 = vst [vmem:[%s3671_s20 + $0x8] sm:$0xff] %v1920_v55 }
 0x4af   : > { %v2479_v4 = vpop.f32.mrb[4].mxu1 }
 0x4b0   : > { %v1855_v63 = vadd.f32 %v2479_v4, %v2131_v54  ;;  %v1819_v53 = vpop.f32.mrb[5].mxu1 }
 0x4b1   : > { %v1853_v35 = vadd.f32 %v2131_v54, %v1819_v53  ;;  %v2480_v61 = vpop.f32.mrb[6].mxu1 }
 0x4b2   : > { %v1870_v36 = vmul.f32 %v3651_v62, %v1855_v63  ;;  %v1856_v25 = vadd.f32 %v2480_v61, %v2131_v54  ;;  %v1822_v23 = vpop.f32.mrb[7].mxu1 }
 0x4b3   : > { %v1868_v5 = vmul.f32 %v3651_v62, %v1853_v35  ;;  %v1854_v59 = vadd.f32 %v2131_v54, %v1822_v23 }
 0x4b4   : > { %v1885_v26 = vadd.f32 %v3656_v37, %v1870_v36  ;;  %v1871_v38 = vmul.f32 %v3651_v62, %v1856_v25 }
 0x4b5   : > { %v1883_v7 = vadd.f32 %v3656_v37, %v1868_v5  ;;  %v1869_v24 = vmul.f32 %v3651_v62, %v1854_v59 }
 0x4b6   : > { %v1907_v51 = vmul.f32 1.442695, %v1885_v26  ;;  %v1886_v3 = vadd.f32 %v3656_v37, %v1871_v38  ;;  %vm1893_vm4 = vcmp.gt.f32.partialorder %v1885_v26, 0.0 }
 0x4b7   : > { %v1903_v27 = vmul.f32 1.442695, %v1883_v7  ;;  %v1884_v40 = vadd.f32 %v3656_v37, %v1869_v24  ;;  %vm1891_vm5 = vcmp.gt.f32.partialorder %v1883_v7, 0.0 }
 0x4b8   : > { %2699 = vpow2.f32 %v1907_v51  ;;  %v1909_v45 = vmul.f32 1.442695, %v1886_v3  ;;  %vm1894_vm7 = vcmp.gt.f32.partialorder %v1886_v3, 0.0 }
 0x4b9   : > { %2701 = vpow2.f32 %v1903_v27  ;;  %v1905_v34 = vmul.f32 1.442695, %v1884_v40  ;;  %vm1892_vm8 = vcmp.gt.f32.partialorder %v1884_v40, 0.0 }
 0x4ba   : > { %2703 = vpow2.f32 %v1909_v45 }
 0x4bb   : > { %2705 = vpow2.f32 %v1905_v34 }
 0x4c2   : > { %v2700_v56 = vpop.eup %2699 }
 0x4c3   : > { %v2702_v19 = vpop.eup %2701  ;;  %v2140_v30 = vadd.f32 -1.0, %v2700_v56 }
 0x4c4   : > { %v2704_v8 = vpop.eup %2703  ;;  %v2138_v1 = vadd.f32 -1.0, %v2702_v19 }
 0x4c5   : > { %v2706_v6 = vpop.eup %2705  ;;  %v1925_v16 = vsel %vm1893_vm4, %v1885_v26, %v2140_v30  ;;  %v2141_v43 = vadd.f32 -1.0, %v2704_v8 }
 0x4c6   : > { %1933 = vst [vmem:[%s3671_s20 + $0x30] sm:$0xff] %v1925_v16  ;;  %v1923_v11 = vsel %vm1891_vm5, %v1883_v7, %v2138_v1  ;;  %v2139_v54 = vadd.f32 -1.0, %v2706_v6 }
 0x4c7   : > { %1931 = vst [vmem:[%s3671_s20 + $0x20] sm:$0xff] %v1923_v11  ;;  %v1926_v32 = vsel %vm1894_vm7, %v1886_v3, %v2141_v43 }
 0x4c8   : > { %1934 = vst [vmem:[%s3671_s20 + $0x38] sm:$0xff] %v1926_v32  ;;  %v1924_v62 = vsel %vm1892_vm8, %v1884_v40, %v2139_v54 }
 0x4c9   : > { %1932 = vst [vmem:[%s3671_s20 + $0x28] sm:$0xff] %v1924_v62 }
 0x4ca PF: > { %p15_p9 = scmp.ge.s32.totalorder %s2799_s9, 4   ;;  %s3716_s27 = smov %s2725_s28 }
 0x4cb   : > { %s3717_s28 = smov %s2808_s12  ;;  %s3718_s29 = smov %s2799_s9 }
 0x4cc   :  { %17 = sbr.rel (!%p15_p9) target bundleno = 2 (0x2), region = 132 }

// kernel: graph_autoencoder_forward.3
= control target key start
LH: loop header
LB: loop body
LE: loop exit
PB: predicated region body
PF: predicated region fallthrough
CT: control target
= control target key end

     0   :  { %s1992_s18 = smov 0   ;;  %s2386_s0 = inlined_call_operand.vmem [shape: f32[128,128], index: 0, kind: input, shape index: {}]   ;;  %s2387_s1 = inlined_call_operand.vmem [shape: f32[128,128], index: 1, kind: input, shape index: {}]   ;;  %s2388_s2 = inlined_call_operand.vmem [shape: f32[128,128], index: 2, kind: input, shape index: {}]   ;;  %s2389_s3 = inlined_call_operand.vmem [shape: f32[1,128], index: 3, kind: input, shape index: {}]   ;;  %s2390_s4 = inlined_call_operand.vmem [shape: bf16[1,128,128], index: 4, kind: input, shape index: {}]   ;;  %s2391_s5 = inlined_call_operand.vmem [shape: f32[1,128], index: 5, kind: input, shape index: {}]   ;;  %s2392_s6 = inlined_call_operand.vmem [shape: f32[128,128], index: 6, kind: input, shape index: {}]   ;;  %s2393_s7 = inlined_call_operand.vmem [shape: f32[1,128], index: 7, kind: input, shape index: {}]   ;;  %s2394_s8 = inlined_call_operand.vmem [shape: f32[1,128], index: 8, kind: input, shape index: {}]   ;;  %s2395_s9 = inlined_call_operand.vmem [shape: f32[1,128], index: 9, kind: input, shape index: {}]   ;;  %s2396_s10 = inlined_call_operand.vmem [shape: f32[128,128], index: 10, kind: input, shape index: {}]   ;;  %s2397_s11 = inlined_call_operand.vmem [shape: f32[1,128], index: 11, kind: input, shape index: {}]   ;;  %s2398_s12 = inlined_call_operand.vmem [shape: f32[128,128], index: 12, kind: input, shape index: {}]   ;;  %s2399_s13 = inlined_call_operand.vmem [shape: f32[1,128], index: 13, kind: input, shape index: {}]   ;;  %s2400_s14 = inlined_call_operand.vmem [shape: f32[128,128], index: 14, kind: output, shape index: {0}]   ;;  %s2401_s15 = inlined_call_operand.vmem [shape: f32[128,128], index: 15, kind: output, shape index: {1}]  }
   0x1 LB: > { %s1536_s19 = sadd.s32 4294967295, %s1907_s18   ;;  %p1540_p0 = scmp.ge.s32.totalorder %s1907_s18, 1  ;;  %s1907_s18 = sphi %s1992_s18, %s26_s18  }
   0x2   : > { %p441_p1 = scmp.lt.s32.totalorder %s1907_s18, 3 }
   0x4   : > { %p442_p2 = pnand %p1540_p0, %p441_p1 }
   0x5   : > { %v668_v0 = vld [vmem:[%s2388_s2] sm:$0xff] (!%p442_p2)  ;;  %v669_v1 = vld [vmem:[%s2388_s2 + $0x8] sm:$0xff] (!%p442_p2)  ;;  %v670_v2 = vld [vmem:[%s2388_s2 + $0x10] sm:$0xff] (!%p442_p2)  ;;  %s1547_s26 = sshll.u32 (!%p442_p2), %s1536_s19, 6  ;;  %v1909_v8 = vmov (!%p442_p2), 0   ;;  %vm1911_vm0 = vmmov (!%p442_p2), 0  }
   0x6   : > { %445 = sbr.rel (%p442_p2) target bundleno = 1605 (0x645), region = 76  ;;  %v688_v3 = vpack.c.bf16 (!%p442_p2), %v669_v1, %v668_v0  ;;  %v671_v4 = vld [vmem:[%s2388_s2 + $0x18] sm:$0xff] (!%p442_p2)  ;;  %v672_v6 = vld [vmem:[%s2388_s2 + $0x20] sm:$0xff] (!%p442_p2)  ;;  %v673_v7 = vld [vmem:[%s2388_s2 + $0x28] sm:$0xff] (!%p442_p2)  ;;  %s2023_s22 = scalar_lea.vmem (!%p442_p2), %s2386_s0, %s1547_s26  ;;  %1868 = vset.pattern.permute.xlu1 (!%p442_p2), %v1909_v8  ;;  %1867 = vset.pattern.permute.xlu0 (!%p442_p2), %v1909_v8 }
   0x7   : > { %v689_v5 = vpack.c.bf16 (!%p442_p2), %v671_v4, %v670_v2  ;;  %v690_v9 = vpack.c.bf16 (!%p442_p2), %v673_v7, %v672_v6  ;;  %v531_v10 = vld [vmem:[%s2023_s22] sm:$0xff] (!%p442_p2)  ;;  %v532_v11 = vld [vmem:[%s2023_s22 + $0x8] sm:$0xff] (!%p442_p2)  ;;  %v674_v12 = vld [vmem:[%s2388_s2 + $0x30] sm:$0xff] (!%p442_p2)  ;;  %s1541_s23 = sshll.u32 (!%p442_p2), %s1536_s19, 3 }
   0x8   : > { %1716 = vmatprep.subr.bf16.mxu1 (!%p442_p2), %v688_v3  ;;  %v675_v13 = vld [vmem:[%s2388_s2 + $0x38] sm:$0xff] (!%p442_p2)  ;;  %v684_v14 = vpack.c.bf16 (!%p442_p2), %v532_v11, %v531_v10  ;;  %v539_v15 = vld [vmem:[%s2387_s1] sm:$0xff] (!%p442_p2)  ;;  %v540_v16 = vld [vmem:[%s2387_s1 + $0x8] sm:$0xff] (!%p442_p2)  ;;  %p495_p3 = scmp.lt.s32.totalorder (!%p442_p2), %s1541_s23, 15 }
   0x9   : > { %1717 = vmatpush3.bf16.msra.mxu1 (!%p442_p2), %v688_v3  ;;  %v541_v17 = vld [vmem:[%s2387_s1 + $0x10] sm:$0xff] (!%p442_p2)  ;;  %v691_v18 = vpack.c.bf16 (!%p442_p2), %v675_v13, %v674_v12  ;;  %v676_v19 = vld [vmem:[%s2388_s2 + $0x40] sm:$0xff] (!%p442_p2)  ;;  %v563_v20 = vpack.c.bf16 (!%p442_p2), %v540_v16, %v539_v15  ;;  %v542_v21 = vld [vmem:[%s2387_s1 + $0x18] sm:$0xff] (!%p442_p2) }
   0xa   : > { %1718 = vmatprep.subr.bf16.mxu1 (!%p442_p2), %v689_v5  ;;  %1732 = vmatprep.mubr.bf16.mxu1 (!%p442_p2), %v684_v14  ;;  %v677_v22 = vld [vmem:[%s2388_s2 + $0x48] sm:$0xff] (!%p442_p2)  ;;  %v564_v23 = vpack.c.bf16 (!%p442_p2), %v542_v21, %v541_v17  ;;  %v543_v24 = vld [vmem:[%s2387_s1 + $0x20] sm:$0xff] (!%p442_p2)  ;;  %v678_v27 = vld [vmem:[%s2388_s2 + $0x50] sm:$0xff] (!%p442_p2) }
   0xb   : > { %v544_v25 = vld [vmem:[%s2387_s1 + $0x28] sm:$0xff] (!%p442_p2)  ;;  %1684 = vmatprep.subr.bf16.mxu0 (!%p442_p2), %v563_v20  ;;  %v692_v26 = vpack.c.bf16 (!%p442_p2), %v677_v22, %v676_v19  ;;  %v514_v29 = vld [vmem:[%s2386_s0] sm:$0xff] (!%p442_p2)  ;;  %v679_v31 = vld [vmem:[%s2388_s2 + $0x58] sm:$0xff] (!%p442_p2) }
   0xc   : > { %1685 = vmatpush3.bf16.msra.mxu0 (!%p442_p2), %v563_v20  ;;  %v565_v28 = vpack.c.bf16 (!%p442_p2), %v544_v25, %v543_v24  ;;  %v515_v30 = vld [vmem:[%s2386_s0 + $0x8] sm:$0xff] (!%p442_p2)  ;;  %v545_v32 = vld [vmem:[%s2387_s1 + $0x30] sm:$0xff] (!%p442_p2)  ;;  %v546_v33 = vld [vmem:[%s2387_s1 + $0x38] sm:$0xff] (!%p442_p2)  ;;  %v693_v35 = vpack.c.bf16 (!%p442_p2), %v679_v31, %v678_v27  ;;  %v803_v25 = vlaneseq (!%p442_p2) }
   0xd   : > { %1719 = vmatpush3.bf16.msra.mxu1 %v689_v5  ;;  %1686 = vmatprep.subr.bf16.mxu0 %v564_v23  ;;  %v2075_v34 = vpack.c.bf16 %v515_v30, %v514_v29  ;;  %v680_v36 = vld [vmem:[%s2388_s2 + $0x60] sm:$0xff]  ;;  %v566_v37 = vpack.c.bf16 %v546_v33, %v545_v32  ;;  %v681_v38 = vld [vmem:[%s2388_s2 + $0x68] sm:$0xff]  ;;  %v682_v42 = vld [vmem:[%s2388_s2 + $0x70] sm:$0xff]  ;;  %v1910_v5 = vmov 0.0   ;;  %s2405_s23 = smov (!%p495_p3, %s1541_s23), 15 }
   0xe   : > { %1720 = vmatprep.subr.bf16.mxu1 %v690_v9  ;;  %v547_v39 = vld [vmem:[%s2387_s1 + $0x40] sm:$0xff]  ;;  %v548_v40 = vld [vmem:[%s2387_s1 + $0x48] sm:$0xff]  ;;  %v694_v41 = vpack.c.bf16 %v681_v38, %v680_v36  ;;  %v683_v44 = vld [vmem:[%s2388_s2 + $0x78] sm:$0xff]  ;;  %v804_v29 = vand.u32 127, %v803_v25  ;;  %s1542_s24 = sshll.u32 %s2405_s23, 2  ;;  %s1544_s19 = sshll.u32 %s2405_s23, 3 }
   0xf   : > { %1700 = vmatprep.mubr.bf16.mxu0 %v2075_v34  ;;  %v567_v43 = vpack.c.bf16 %v548_v40, %v547_v39  ;;  %v549_v45 = vld [vmem:[%s2387_s1 + $0x50] sm:$0xff]  ;;  %v550_v46 = vld [vmem:[%s2387_s1 + $0x58] sm:$0xff]  ;;  %v695_v47 = vpack.c.bf16 %v683_v44, %v682_v42  ;;  %v551_v49 = vld [vmem:[%s2387_s1 + $0x60] sm:$0xff]  ;;  %s504_s16 = scalar_lea.vmem %s2400_s14, %s1544_s19  ;;  %s510_s28 = scalar_lea.vmem %s2401_s15, %s1544_s19 }
  0x10   : > { %1687 = vmatpush3.bf16.msra.mxu0 %v564_v23  ;;  %v568_v48 = vpack.c.bf16 %v550_v46, %v549_v45  ;;  %v552_v50 = vld [vmem:[%s2387_s1 + $0x68] sm:$0xff]  ;;  %v533_v51 = vld [vmem:[%s2023_s22 + $0x10] sm:$0xff]  ;;  %v534_v52 = vld [vmem:[%s2023_s22 + $0x18] sm:$0xff]  ;;  %vm978_vm1 = vcmp.lt.s32.totalorder %v804_v29, 8 }
  0x11   : > { %1721 = vmatpush3.bf16.msra.mxu1 %v690_v9  ;;  %1688 = vmatprep.subr.bf16.mxu0 %v565_v28  ;;  %v535_v53 = vld [vmem:[%s2023_s22 + $0x20] sm:$0xff]  ;;  %v536_v54 = vld [vmem:[%s2023_s22 + $0x28] sm:$0xff]  ;;  %v569_v55 = vpack.c.bf16 %v552_v50, %v551_v49  ;;  %v553_v56 = vld [vmem:[%s2387_s1 + $0x70] sm:$0xff]  ;;  %v685_v58 = vpack.c.bf16 %v534_v52, %v533_v51 }
  0x12   : > { %1722 = vmatprep.subr.bf16.mxu1 %v691_v18  ;;  %v554_v57 = vld [vmem:[%s2387_s1 + $0x78] sm:$0xff]  ;;  %v686_v59 = vpack.c.bf16 %v536_v54, %v535_v53  ;;  %v537_v61 = vld [vmem:[%s2023_s22 + $0x30] sm:$0xff]  ;;  %v518_v3 = vld [vmem:[%s2386_s0 + $0x20] sm:$0xff] }
  0x13   : > { %v570_v60 = vpack.c.bf16 %v554_v57, %v553_v56  ;;  %v538_v62 = vld [vmem:[%s2023_s22 + $0x38] sm:$0xff]  ;;  %v516_v63 = vld [vmem:[%s2386_s0 + $0x10] sm:$0xff]  ;;  %v519_v4 = vld [vmem:[%s2386_s0 + $0x28] sm:$0xff]  ;;  %s498_s22 = scalar_lea.vmem %s2390_s4, %s1542_s24 }
  0x14   : > { %1689 = vmatpush3.bf16.msra.mxu0 %v565_v28  ;;  %v517_v0 = vld [vmem:[%s2386_s0 + $0x18] sm:$0xff]  ;;  %v687_v1 = vpack.c.bf16 %v538_v62, %v537_v61  ;;  %v557_v6 = vpack.c.bf16 %v519_v4, %v518_v3  ;;  %v520_v7 = vld [vmem:[%s2386_s0 + $0x30] sm:$0xff]  ;;  %v522_v9 = vld [vmem:[%s2386_s0 + $0x40] sm:$0xff] }
  0x15   : > { %1723 = vmatpush3.bf16.msra.mxu1 %v691_v18  ;;  %1690 = vmatprep.subr.bf16.mxu0 %v566_v37  ;;  %v556_v2 = vpack.c.bf16 %v517_v0, %v516_v63  ;;  %v521_v8 = vld [vmem:[%s2386_s0 + $0x38] sm:$0xff]  ;;  %v523_v10 = vld [vmem:[%s2386_s0 + $0x48] sm:$0xff]  ;;  %v526_v13 = vld [vmem:[%s2386_s0 + $0x60] sm:$0xff] }
  0x16   : > { %1724 = vmatprep.subr.bf16.mxu1 %v692_v26  ;;  %v558_v11 = vpack.c.bf16 %v521_v8, %v520_v7  ;;  %v559_v12 = vpack.c.bf16 %v523_v10, %v522_v9  ;;  %v527_v14 = vld [vmem:[%s2386_s0 + $0x68] sm:$0xff]  ;;  %v524_v15 = vld [vmem:[%s2386_s0 + $0x50] sm:$0xff]  ;;  %v525_v16 = vld [vmem:[%s2386_s0 + $0x58] sm:$0xff] }
  0x17   : > { %v561_v17 = vpack.c.bf16 %v527_v14, %v526_v13  ;;  %v560_v18 = vpack.c.bf16 %v525_v16, %v524_v15  ;;  %v528_v19 = vld [vmem:[%s2386_s0 + $0x70] sm:$0xff]  ;;  %v529_v20 = vld [vmem:[%s2386_s0 + $0x78] sm:$0xff]  ;;  %v761_v22 = vld [vmem:[%s2389_s3] sm:$0x1] }
  0x18   : > { %1691 = vmatpush3.bf16.msra.mxu0 %v566_v37  ;;  %v562_v21 = vpack.c.bf16 %v529_v20, %v528_v19  ;;  %v762_v23 = vpack.c.bf16 %v761_v22, %v761_v22  ;;  %vm2166_vm2 = vmpackc.low %vm978_vm1, %vm978_vm1  ;;  %v1581_v3 = vld [vmem:[%s498_s22] sm:$0xff]   ;;  %v1597_v15 = vld [vmem:[%s498_s22 + $0x10] sm:$0xff]  }
  0x19   : > { %1725 = vmatpush3.bf16.msra.mxu1 %v692_v26  ;;  %1692 = vmatprep.subr.bf16.mxu0 %v567_v43  ;;  %v1583_v14 = vunpack.c.h.bf16 %v1581_v3  ;;  %v1590_v20 = vunpack.c.l.bf16 %v1597_v15 }
  0x1a   : > { %1726 = vmatprep.subr.bf16.mxu1 %v693_v35 }
  0x1c   : > { %1693 = vmatpush3.bf16.msra.mxu0 %v567_v43 }
  0x1d   : > { %1727 = vmatpush3.bf16.msra.mxu1 %v693_v35  ;;  %1694 = vmatprep.subr.bf16.mxu0 %v568_v48 }
  0x1e   : > { %1728 = vmatprep.subr.bf16.mxu1 %v694_v41 }
  0x20   : > { %1695 = vmatpush3.bf16.msra.mxu0 %v568_v48 }
  0x21   : > { %1729 = vmatpush3.bf16.msra.mxu1 %v694_v41  ;;  %1696 = vmatprep.subr.bf16.mxu0 %v569_v55 }
  0x22   : > { %1730 = vmatprep.subr.bf16.mxu1 %v695_v47 }
  0x24   : > { %1697 = vmatpush3.bf16.msra.mxu0 %v569_v55 }
  0x25   : > { %1731 = vmatpush3.bf16.msra.mxu1 %v695_v47  ;;  %1698 = vmatprep.subr.bf16.mxu0 %v570_v60 }
  0x28   : > { %1733 = vmatmul.mubr.bf16.vlgmr.msra.gmra.mrb[0].mxu1 %v685_v58  ;;  %1699 = vmatpush3.bf16.msra.mxu0 %v570_v60 }
  0x29   : > { %1736 = vmatprep.mubr.bf16.mxu1 %v686_v59  ;;  %1740 = vmatprep.subr.bf16.mxu0 %v1910_v5  ;;  %v862_v59 = vshrl.u32 %v803_v25, 7  ;;  %v1598_v25 = vld [vmem:[%s498_s22 + $0x18] sm:$0xff]  }
  0x2b   : > { %1701 = vmatmul.mubr.bf16.vlgmr.msra.gmra.mrb[0].mxu0 %v556_v2  ;;  %v863_v60 = vsub.s32 0, %v862_v59 }
  0x2c   : > { %1704 = vmatprep.mubr.bf16.mxu0 %v557_v6 }
  0x30   : > { %1737 = vmatmul.mubr.bf16.gmra.mrb[4].mxu1 %v687_v1 }
  0x31   : > { %1741 = vmatpush3.bf16.xpose.msra.mxu0 %v2075_v34 }
  0x32   : > { %1742 = vmatprep.subr.bf16.mxu0 %v1910_v5 }
  0x33   : > { %1705 = vmatmul.mubr.bf16.gmra.mrb[4].mxu0 %v558_v11 }
  0x34   : > { %1708 = vmatprep.mubr.bf16.mxu0 %v559_v12 }
  0x39   : > { %1743 = vmatpush3.bf16.xpose.msra.mxu0 %v556_v2  ;;  %v1596_v2 = vld [vmem:[%s498_s22 + $0x8] sm:$0xff]  }
  0x3a   : > { %1744 = vmatprep.subr.bf16.mxu0 %v1910_v5  ;;  %v1586_v4 = vunpack.c.l.bf16 %v1596_v2  ;;  %v1587_v13 = vunpack.c.h.bf16 %v1596_v2 }
  0x3b   : > { %1709 = vmatmul.mubr.bf16.gmra.mrb[8].mxu0 %v560_v18 }
  0x3c   : > { %1712 = vmatprep.mubr.bf16.mxu0 %v561_v17 }
  0x41   : > { %1745 = vmatpush3.bf16.xpose.msra.mxu0 %v557_v6  ;;  %v1582_v6 = vunpack.c.l.bf16 %v1581_v3 }
  0x42   : > { %1746 = vmatprep.subr.bf16.mxu0 %v1910_v5 }
  0x43   : > { %1713 = vmatmul.mubr.bf16.gmra.mrb[12].mxu0 %v562_v21 }
  0x44   : > { %1756 = vmatprep.mubr.msk.bf16.mxu0 %vm1911_vm0, %v1910_v5 }
  0x49   : > { %1747 = vmatpush3.bf16.xpose.msra.mxu0 %v558_v11 }
  0x4a   : > { %1748 = vmatprep.subr.bf16.mxu0 %v1910_v5 }
  0x51   : > { %1749 = vmatpush3.bf16.xpose.msra.mxu0 %v559_v12 }
  0x52   : > { %1750 = vmatprep.subr.bf16.mxu0 %v1910_v5 }
  0x59   : > { %1751 = vmatpush3.bf16.xpose.msra.mxu0 %v560_v18 }
  0x5a   : > { %1752 = vmatprep.subr.bf16.mxu0 %v1910_v5 }
  0x61   : > { %1753 = vmatpush3.bf16.xpose.msra.mxu0 %v561_v17 }
  0x62   : > { %1754 = vmatprep.subr.bf16.mxu0 %v1910_v5 }
  0x69   : > { %1755 = vmatpush3.bf16.xpose.msra.mxu0 %v562_v21 }
  0x70   : > { %1757 = vmatmul.mubr.bf16.vlgmr.msra.gmra.mrb[16].mxu0 %v762_v23 }
  0xfb   : > { %v1734_v24 = vpop.f32.mrb[0].mxu1 }
  0xfc   : > { %833 = vperm.xlu1 %1868, %v1734_v24   ;;  %v730_v26 = vpop.f32.mrb[1].mxu1 }
  0xfd   : > { %823 = vperm.xlu0 %1867, %v730_v26   ;;  %v1735_v27 = vpop.f32.mrb[2].mxu1 }
  0xfe   : > { %v733_v28 = vpop.f32.mrb[3].mxu1  ;;  %v1702_v31 = vpop.f32.mrb[0].mxu0 }
  0xff   : > { %v605_v33 = vpop.f32.mrb[1].mxu0 }
 0x100   : > { %838 = vperm.xlu1 %1868, %v1735_v27   ;;  %v1703_v35 = vpop.f32.mrb[2].mxu0 }
 0x101   : > { %828 = vperm.xlu0 %1867, %v733_v28   ;;  %v1553_v37 = vpack.c.bf16 %v1703_v35, %v1702_v31  ;;  %v608_v38 = vpop.f32.mrb[3].mxu0  ;;  %v1591_v28 = vunpack.c.h.bf16 %v1597_v15  ;;  %v1594_v31 = vunpack.c.l.bf16 %v1598_v25 }
 0x102   : > { %v1550_v40 = vpack.c.bf16 %v608_v38, %v605_v33  ;;  %v1595_v38 = vunpack.c.h.bf16 %v1598_v25 }
 0x103   : > { %v1738_v30 = vpop.f32.mrb[4].mxu1 }
 0x104   : > { %v746_v32 = vpop.f32.mrb[5].mxu1  ;;  %1760 = vmatprep.subr.msk.bf16.mxu1 %vm2166_vm2, %v1550_v40 }
 0x105   : > { %843 = vperm.xlu0 %1867, %v746_v32   ;;  %v1739_v34 = vpop.f32.mrb[6].mxu1  ;;  %1761 = vmatpush3.bf16.msk.msra.mxu1 %vm2166_vm2, %v1550_v40 }
 0x106   : > { %v749_v36 = vpop.f32.mrb[7].mxu1  ;;  %1762 = vmatprep.subr.msk.bf16.mxu1 %vm2166_vm2, %v1553_v37  ;;  %v1706_v41 = vpop.f32.mrb[4].mxu0 }
 0x107   : > { %848 = vperm.xlu1 %1868, %v749_v36   ;;  %v621_v42 = vpop.f32.mrb[5].mxu0 }
 0x108   : > { %v1707_v43 = vpop.f32.mrb[6].mxu0 }
 0x109   : > { %853 = vperm.xlu0 %1867, %v1738_v30   ;;  %1763 = vmatpush3.bf16.msk.msra.mxu1 %vm2166_vm2, %v1553_v37  ;;  %v1559_v44 = vpack.c.bf16 %v1707_v43, %v1706_v41  ;;  %v624_v45 = vpop.f32.mrb[7].mxu0 }
 0x10a   : > { %v1556_v46 = vpack.c.bf16 %v624_v45, %v621_v42 }
 0x10b   : > { %858 = vperm.xlu1 %1868, %v1739_v34  }
 0x10c   : > { %1764 = vmatprep.subr.msk.bf16.mxu1 %vm2166_vm2, %v1556_v46 }
 0x10d   : > { %1765 = vmatpush3.bf16.msk.msra.mxu1 %vm2166_vm2, %v1556_v46 }
 0x10e   : > { %v1710_v47 = vpop.f32.mrb[8].mxu0  ;;  %1766 = vmatprep.subr.msk.bf16.mxu1 %vm2166_vm2, %v1559_v44 }
 0x10f   : > { %v637_v48 = vpop.f32.mrb[9].mxu0 }
 0x110   : > { %v1711_v49 = vpop.f32.mrb[10].mxu0 }
 0x111   : > { %v1565_v50 = vpack.c.bf16 %v1711_v49, %v1710_v47  ;;  %v640_v51 = vpop.f32.mrb[11].mxu0  ;;  %1767 = vmatpush3.bf16.msk.msra.mxu1 %vm2166_vm2, %v1559_v44 }
 0x112   : > { %v1562_v52 = vpack.c.bf16 %v640_v51, %v637_v48 }
 0x114   : > { %1768 = vmatprep.subr.msk.bf16.mxu1 %vm2166_vm2, %v1562_v52 }
 0x115   : > { %1769 = vmatpush3.bf16.msk.msra.mxu1 %vm2166_vm2, %v1562_v52 }
 0x116   : > { %v1714_v53 = vpop.f32.mrb[12].mxu0  ;;  %1770 = vmatprep.subr.msk.bf16.mxu1 %vm2166_vm2, %v1565_v50 }
 0x117   : > { %v653_v54 = vpop.f32.mrb[13].mxu0 }
 0x118   : > { %v1715_v55 = vpop.f32.mrb[14].mxu0 }
 0x119   : > { %v1571_v56 = vpack.c.bf16 %v1715_v55, %v1714_v53  ;;  %v656_v57 = vpop.f32.mrb[15].mxu0  ;;  %1771 = vmatpush3.bf16.msk.msra.mxu1 %vm2166_vm2, %v1565_v50 }
 0x11a   : > { %v1568_v58 = vpack.c.bf16 %v656_v57, %v653_v54 }
 0x11c   : > { %1772 = vmatprep.subr.msk.bf16.mxu1 %vm2166_vm2, %v1568_v58 }
 0x11d   : > { %1773 = vmatpush3.bf16.msk.msra.mxu1 %vm2166_vm2, %v1568_v58 }
 0x11e   : > { %1774 = vmatprep.subr.msk.bf16.mxu1 %vm2166_vm2, %v1571_v56 }
 0x121   : > { %1775 = vmatpush3.bf16.msk.msra.mxu1 %vm2166_vm2, %v1571_v56 }
 0x143   : > { %v797_v61 = vpop.f32.mrb[16].mxu0 }
 0x144   : > { %v864_v62 = vrot.slane %v797_v61, %v863_v60  ;;  %v1758_v63 = vpop.f32.mrb[17].mxu0 }
 0x145   : > { %v800_v0 = vpop.f32.mrb[18].mxu0 }
 0x146   : > { %v1759_v1 = vpop.f32.mrb[19].mxu0 }
 0x17b   : > { %v834_v5 = vpop.permute.xlu1 %833 }
 0x17c   : > { %v867_v7 = vadd.f32 %v864_v62, %v834_v5  ;;  %v824_v8 = vpop.permute.xlu0 %823 }
 0x17d   : > { %v865_v9 = vadd.f32 %v864_v62, %v824_v8 }
 0x17e   : > { %v875_v10 = vadd.f32 %v1586_v4, %v867_v7 }
 0x17f   : > { %v873_v11 = vadd.f32 %v1582_v6, %v865_v9  ;;  %v839_v12 = vpop.permute.xlu1 %838 }
 0x180   : > { %v868_v16 = vadd.f32 %v864_v62, %v839_v12  ;;  %v829_v17 = vpop.permute.xlu0 %828  ;;  %v891_v21 = vmul.f32 0.2, %v875_v10  ;;  %vm883_vm4 = vcmp.gt.f32.partialorder %v875_v10, 0.0 }
 0x181   : > { %v866_v18 = vadd.f32 %v864_v62, %v829_v17  ;;  %vm881_vm3 = vcmp.gt.f32.partialorder %v873_v11, 0.0  ;;  %v889_v19 = vmul.f32 0.2, %v873_v11 }
 0x182   : > { %v876_v22 = vadd.f32 %v1587_v13, %v868_v16  ;;  %v899_v32 = vsel %vm883_vm4, %v875_v10, %v891_v21 }
 0x183   : > { %v874_v23 = vadd.f32 %v1583_v14, %v866_v18  ;;  %v897_v24 = vsel %vm881_vm3, %v873_v11, %v889_v19 }
 0x184   : > { %v844_v26 = vpop.permute.xlu0 %843  ;;  %905 = vmax.xlane.f32.xlu0 %v897_v24  ;;  %v892_v36 = vmul.f32 0.2, %v876_v22  ;;  %vm884_vm6 = vcmp.gt.f32.partialorder %v876_v22, 0.0 }
 0x185   : > { %v869_v27 = vadd.f32 %v864_v62, %v844_v26  ;;  %vm882_vm5 = vcmp.gt.f32.partialorder %v874_v23, 0.0  ;;  %v890_v29 = vmul.f32 0.2, %v874_v23 }
 0x186   : > { %v849_v30 = vpop.permute.xlu1 %848  ;;  %v900_v46 = vsel %vm884_vm6, %v876_v22, %v892_v36  ;;  %v1090_v22 = vld [vmem:[%s2392_s6] sm:$0xff] }
 0x187   : > { %v877_v33 = vadd.f32 %v1590_v20, %v869_v27  ;;  %v870_v34 = vadd.f32 %v864_v62, %v849_v30  ;;  %v898_v35 = vsel %vm882_vm5, %v874_v23, %v890_v29  ;;  %v1091_v23 = vld [vmem:[%s2392_s6 + $0x8] sm:$0xff] }
 0x188   : > { %v854_v37 = vpop.permute.xlu0 %853  ;;  %907 = vmax.xlane.f32.xlu1 %v898_v35  ;;  %909 = vmax.xlane.f32.xlu0 %v899_v32 }
 0x189   : > { %v878_v39 = vadd.f32 %v1591_v28, %v870_v34  ;;  %v871_v40 = vadd.f32 %v864_v62, %v854_v37  ;;  %vm885_vm7 = vcmp.gt.f32.partialorder %v877_v33, 0.0  ;;  %v893_v41 = vmul.f32 0.2, %v877_v33 }
 0x18a   : > { %v859_v42 = vpop.permute.xlu1 %858 }
 0x18b   : > { %v879_v43 = vadd.f32 %v1594_v31, %v871_v40  ;;  %v872_v44 = vadd.f32 %v864_v62, %v859_v42  ;;  %v901_v45 = vsel %vm885_vm7, %v877_v33, %v893_v41  ;;  %vm886_vm8 = vcmp.gt.f32.partialorder %v878_v39, 0.0  ;;  %v1092_v40 = vld [vmem:[%s2392_s6 + $0x10] sm:$0xff]  ;;  %v1093_v41 = vld [vmem:[%s2392_s6 + $0x18] sm:$0xff] }
 0x18c   : > { %913 = vmax.xlane.f32.xlu1 %v901_v45  ;;  %911 = vmax.xlane.f32.xlu0 %v900_v46  ;;  %v894_v47 = vmul.f32 0.2, %v878_v39 }
 0x18d   : > { %v880_v48 = vadd.f32 %v1595_v38, %v872_v44  ;;  %vm887_vm9 = vcmp.gt.f32.partialorder %v879_v43, 0.0  ;;  %v895_v49 = vmul.f32 0.2, %v879_v43 }
 0x18e   : > { %v902_v51 = vsel %vm886_vm8, %v878_v39, %v894_v47 }
 0x18f   : > { %v903_v50 = vsel %vm887_vm9, %v879_v43, %v895_v49  ;;  %v896_v52 = vmul.f32 0.2, %v880_v48  ;;  %vm888_vm10 = vcmp.gt.f32.partialorder %v880_v48, 0.0  ;;  %v1095_v49 = vld [vmem:[%s2392_s6 + $0x28] sm:$0xff] }
 0x190   : > { %917 = vmax.xlane.f32.xlu1 %v903_v50  ;;  %915 = vmax.xlane.f32.xlu0 %v902_v51 }
 0x191   : > { %v904_v53 = vsel %vm888_vm10, %v880_v48, %v896_v52  ;;  %v1094_v48 = vld [vmem:[%s2392_s6 + $0x20] sm:$0xff] }
 0x194   : > { %919 = vmax.xlane.f32.xlu0 %v904_v53 }
 0x211   : > { %v906_v54 = vpop.xlane.xlu0 %905 }
 0x212   : > { %v921_v55 = vsub.f32 %v897_v24, %v906_v54  ;;  %v1110_v24 = vpack.c.bf16 %v1091_v23, %v1090_v22  ;;  %v1236_v22 = vld [vmem:[%s2396_s10 + $0x40] sm:$0xff]  ;;  %v1237_v23 = vld [vmem:[%s2396_s10 + $0x48] sm:$0xff] }
 0x214   : > { %v929_v56 = vmul.f32 1.442695, %v921_v55  ;;  %1784 = vmatprep.subr.bf16.mxu1 %v1110_v24  ;;  %v1112_v55 = vpack.c.bf16 %v1095_v49, %v1094_v48  ;;  %v1240_v49 = vld [vmem:[%s2396_s10 + $0x60] sm:$0xff] }
 0x215   : > { %v908_v57 = vpop.xlane.xlu1 %907  ;;  %v910_v58 = vpop.xlane.xlu0 %909 }
 0x216   : > { %1869 = vpow2.f32 %v929_v56  ;;  %v922_v59 = vsub.f32 %v898_v35, %v908_v57  ;;  %v923_v60 = vsub.f32 %v899_v32, %v910_v58  ;;  %v1096_v58 = vld [vmem:[%s2392_s6 + $0x30] sm:$0xff] }
 0x218   : > { %v931_v61 = vmul.f32 1.442695, %v922_v59  ;;  %v933_v62 = vmul.f32 1.442695, %v923_v60  ;;  %v1097_v59 = vld [vmem:[%s2392_s6 + $0x38] sm:$0xff] }
 0x219   : > { %v914_v63 = vpop.xlane.xlu1 %913  ;;  %v912_v0 = vpop.xlane.xlu0 %911 }
 0x21a   : > { %1871 = vpow2.f32 %v931_v61  ;;  %v925_v1 = vsub.f32 %v901_v45, %v914_v63  ;;  %v924_v2 = vsub.f32 %v900_v46, %v912_v0  ;;  %v1111_v46 = vpack.c.bf16 %v1093_v41, %v1092_v40  ;;  %v1099_v63 = vld [vmem:[%s2392_s6 + $0x48] sm:$0xff] }
 0x21b   : > { %1873 = vpow2.f32 %v933_v62  ;;  %v1113_v61 = vpack.c.bf16 %v1097_v59, %v1096_v58  ;;  %v1098_v62 = vld [vmem:[%s2392_s6 + $0x40] sm:$0xff]  ;;  %v1339_v59 = vld [vmem:[%s2398_s12 + $0x18] sm:$0xff] }
 0x21c   : > { %v937_v3 = vmul.f32 1.442695, %v925_v1  ;;  %v935_v4 = vmul.f32 1.442695, %v924_v2  ;;  %v1114_v0 = vpack.c.bf16 %v1099_v63, %v1098_v62  ;;  %v1100_v1 = vld [vmem:[%s2392_s6 + $0x50] sm:$0xff]  ;;  %v1101_v2 = vld [vmem:[%s2392_s6 + $0x58] sm:$0xff] }
 0x21d   : > { %v918_v5 = vpop.xlane.xlu1 %917  ;;  %v916_v6 = vpop.xlane.xlu0 %915  ;;  %v1341_v62 = vld [vmem:[%s2398_s12 + $0x28] sm:$0xff] }
 0x21e   : > { %1875 = vpow2.f32 %v937_v3  ;;  %v927_v7 = vsub.f32 %v903_v50, %v918_v5  ;;  %v926_v8 = vsub.f32 %v902_v51, %v916_v6  ;;  %v1115_v3 = vpack.c.bf16 %v1101_v2, %v1100_v1  ;;  %v1103_v5 = vld [vmem:[%s2392_s6 + $0x68] sm:$0xff]  ;;  %v1343_v1 = vld [vmem:[%s2398_s12 + $0x38] sm:$0xff] }
 0x21f   : > { %1877 = vpow2.f32 %v935_v4  ;;  %v1102_v4 = vld [vmem:[%s2392_s6 + $0x60] sm:$0xff] }
 0x220   : > { %v1870_v9 = vpop.eup %1869  ;;  %v941_v10 = vmul.f32 1.442695, %v927_v7  ;;  %v939_v11 = vmul.f32 1.442695, %v926_v8  ;;  %v1116_v6 = vpack.c.bf16 %v1103_v5, %v1102_v4  ;;  %v1104_v7 = vld [vmem:[%s2392_s6 + $0x70] sm:$0xff]  ;;  %v1105_v8 = vld [vmem:[%s2392_s6 + $0x78] sm:$0xff] }
 0x221   : > { %945 = vadd.xlane.f32.xlu1 %v1870_v9  ;;  %v920_v12 = vpop.xlane.xlu0 %919  ;;  %v1345_v4 = vld [vmem:[%s2398_s12 + $0x48] sm:$0xff] }
 0x222   : > { %1879 = vpow2.f32 %v941_v10  ;;  %v928_v13 = vsub.f32 %v904_v53, %v920_v12  ;;  %v1228_v10 = vld [vmem:[%s2396_s10] sm:$0xff]  ;;  %v1230_v12 = vld [vmem:[%s2396_s10 + $0x10] sm:$0xff] }
 0x223   : > { %1881 = vpow2.f32 %v939_v11  ;;  %v1229_v11 = vld [vmem:[%s2396_s10 + $0x8] sm:$0xff] }
 0x224   : > { %v1872_v14 = vpop.eup %1871  ;;  %v943_v15 = vmul.f32 1.442695, %v928_v13  ;;  %v1248_v13 = vpack.c.bf16 %v1229_v11, %v1228_v10 }
 0x225   : > { %v1874_v16 = vpop.eup %1873  ;;  %947 = vadd.xlane.f32.xlu0 %v1872_v14 }
 0x226   : > { %1883 = vpow2.f32 %v943_v15  ;;  %949 = vadd.xlane.f32.xlu1 %v1874_v16  ;;  %1808 = vmatprep.subr.bf16.mxu0 %v1248_v13 }
 0x227   : > { %1809 = vmatpush3.bf16.msra.mxu0 %v1248_v13  ;;  %v1574_v13 = vld [vmem:[%s2394_s8] ss:$0 sm:$0xff] }
 0x228   : > { %v1876_v17 = vpop.eup %1875 }
 0x229   : > { %v1878_v18 = vpop.eup %1877 }
 0x22a   : > { %953 = vadd.xlane.f32.xlu1 %v1876_v17  ;;  %951 = vadd.xlane.f32.xlu0 %v1878_v18 }
 0x22c   : > { %v1880_v19 = vpop.eup %1879 }
 0x22d   : > { %v1882_v20 = vpop.eup %1881 }
 0x22e   : > { %957 = vadd.xlane.f32.xlu1 %v1880_v19  ;;  %955 = vadd.xlane.f32.xlu0 %v1882_v20 }
 0x230   : > { %v1884_v21 = vpop.eup %1883 }
 0x232   : > { %959 = vadd.xlane.f32.xlu0 %v1884_v21 }
 0x2ae   : > { %v946_v25 = vpop.xlane.xlu1 %945 }
 0x2af   : > { %1885 = vrcp.f32 %v946_v25  ;;  %v1548_v25 = vld [vmem:[%s2391_s5] ss:$0 sm:$0xff] }
 0x2b2   : > { %v948_v26 = vpop.xlane.xlu0 %947 }
 0x2b3   : > { %v950_v27 = vpop.xlane.xlu1 %949  ;;  %1887 = vrcp.f32 %v948_v26 }
 0x2b4   : > { %1889 = vrcp.f32 %v950_v27 }
 0x2b7   : > { %v954_v28 = vpop.xlane.xlu1 %953  ;;  %v952_v29 = vpop.xlane.xlu0 %951 }
 0x2b8   : > { %1891 = vrcp.f32 %v952_v29 }
 0x2b9   : > { %v1886_v30 = vpop.eup %1885  ;;  %1893 = vrcp.f32 %v954_v28 }
 0x2ba   : > { %v962_v34 = vmul.f32 %v1886_v30, %v1870_v9  ;;  %v1117_v9 = vpack.c.bf16 %v1105_v8, %v1104_v7  ;;  %v1347_v7 = vld [vmem:[%s2398_s12 + $0x58] sm:$0xff] }
 0x2bb   : > { %v958_v31 = vpop.xlane.xlu1 %957  ;;  %v956_v32 = vpop.xlane.xlu0 %955 }
 0x2bc   : > { %1895 = vrcp.f32 %v956_v32 }
 0x2bd   : > { %v1888_v33 = vpop.eup %1887  ;;  %1897 = vrcp.f32 %v958_v31 }
 0x2be   : > { %v964_v35 = vmul.f32 %v1888_v33, %v1872_v14  ;;  %v1890_v38 = vpop.eup %1889  ;;  %v1231_v14 = vld [vmem:[%s2396_s10 + $0x18] sm:$0xff] }
 0x2bf   : > { %v960_v36 = vpop.xlane.xlu0 %959  ;;  %v966_v42 = vmul.f32 %v1890_v38, %v1874_v16  ;;  %v1249_v15 = vpack.c.bf16 %v1231_v14, %v1230_v12  ;;  %v1232_v16 = vld [vmem:[%s2396_s10 + $0x20] sm:$0xff] }
 0x2c0   : > { %1899 = vrcp.f32 %v960_v36  ;;  %v998_v37 = vpack.c.bf16 %v964_v35, %v962_v34 }
 0x2c1   : > { %1810 = vmatprep.subr.bf16.mxu0 %v1249_v15 }
 0x2c2   : > { %1776 = vmatprep.mubr.bf16.mxu1 %v998_v37  ;;  %v1892_v39 = vpop.eup %1891  ;;  %1811 = vmatpush3.bf16.msra.mxu0 %v1249_v15 }
 0x2c3   : > { %v968_v43 = vmul.f32 %v1892_v39, %v1878_v18  ;;  %v1894_v44 = vpop.eup %1893 }
 0x2c4   : > { %v970_v51 = vmul.f32 %v1894_v44, %v1876_v17  ;;  %v1233_v17 = vld [vmem:[%s2396_s10 + $0x28] sm:$0xff] }
 0x2c5   : > { %v999_v45 = vpack.c.bf16 %v968_v43, %v966_v42  ;;  %v1250_v18 = vpack.c.bf16 %v1233_v17, %v1232_v16 }
 0x2c6   : > { %v1896_v47 = vpop.eup %1895 }
 0x2c7   : > { %v1898_v50 = vpop.eup %1897  ;;  %1777 = vmatmul.mubr.bf16.vlgmr.msra.gmra.mrb[8].mxu1 %v999_v45  ;;  %v972_v52 = vmul.f32 %v1896_v47, %v1882_v20  ;;  %v1235_v20 = vld [vmem:[%s2396_s10 + $0x38] sm:$0xff]  ;;  %1812 = vmatprep.subr.bf16.mxu0 %v1250_v18 }
 0x2c8   : > { %1785 = vmatpush3.bf16.msra.mxu1 %v1110_v24  ;;  %v974_v56 = vmul.f32 %v1898_v50, %v1880_v19  ;;  %v1234_v19 = vld [vmem:[%s2396_s10 + $0x30] sm:$0xff]  ;;  %1813 = vmatpush3.bf16.msra.mxu0 %v1250_v18  ;;  %v1252_v24 = vpack.c.bf16 %v1237_v23, %v1236_v22  ;;  %v1239_v47 = vld [vmem:[%s2396_s10 + $0x58] sm:$0xff]  ;;  %v1241_v50 = vld [vmem:[%s2396_s10 + $0x68] sm:$0xff] }
 0x2c9   : > { %v1000_v54 = vpack.c.bf16 %v972_v52, %v970_v51  ;;  %1786 = vmatprep.subr.bf16.mxu1 %v1111_v46  ;;  %v1254_v51 = vpack.c.bf16 %v1241_v50, %v1240_v49  ;;  %v1242_v52 = vld [vmem:[%s2396_s10 + $0x70] sm:$0xff]  ;;  %v1575_v23 = vld [vmem:[%s2395_s9] ss:$0 sm:$0xff] }
 0x2ca   : > { %v1900_v53 = vpop.eup %1899 }
 0x2cb   : > { %v976_v57 = vmul.f32 %v1900_v53, %v1884_v21  ;;  %1780 = vmatprep.mubr.bf16.mxu1 %v1000_v54  ;;  %v1251_v21 = vpack.c.bf16 %v1235_v20, %v1234_v19  ;;  %v1243_v53 = vld [vmem:[%s2396_s10 + $0x78] sm:$0xff] }
 0x2cc   : > { %1787 = vmatpush3.bf16.msra.mxu1 %v1111_v46  ;;  %v1238_v46 = vld [vmem:[%s2396_s10 + $0x50] sm:$0xff]  ;;  %v1255_v54 = vpack.c.bf16 %v1243_v53, %v1242_v52 }
 0x2cd   : > { %v1001_v60 = vpack.c.bf16 %v976_v57, %v974_v56  ;;  %1788 = vmatprep.subr.bf16.mxu1 %v1112_v55  ;;  %1814 = vmatprep.subr.bf16.mxu0 %v1251_v21  ;;  %v1253_v48 = vpack.c.bf16 %v1239_v47, %v1238_v46  ;;  %v1337_v56 = vld [vmem:[%s2398_s12 + $0x8] sm:$0xff]  ;;  %v1338_v57 = vld [vmem:[%s2398_s12 + $0x10] sm:$0xff] }
 0x2ce   : > { %1815 = vmatpush3.bf16.msra.mxu0 %v1251_v21 }
 0x2cf   : > { %1781 = vmatmul.mubr.bf16.gmra.mrb[12].mxu1 %v1001_v60  ;;  %1816 = vmatprep.subr.bf16.mxu0 %v1252_v24  ;;  %v1357_v60 = vpack.c.bf16 %v1339_v59, %v1338_v57  ;;  %v1349_v57 = vld [vmem:[%s2398_s12 + $0x68] sm:$0xff]  ;;  %v1350_v59 = vld [vmem:[%s2398_s12 + $0x70] sm:$0xff] }
 0x2d0   : > { %1789 = vmatpush3.bf16.msra.mxu1 %v1112_v55  ;;  %v1336_v55 = vld [vmem:[%s2398_s12] sm:$0xff] }
 0x2d1   : > { %1790 = vmatprep.subr.bf16.mxu1 %v1113_v61  ;;  %v1356_v58 = vpack.c.bf16 %v1337_v56, %v1336_v55  ;;  %v1348_v56 = vld [vmem:[%s2398_s12 + $0x60] sm:$0xff] }
 0x2d2   : > { %1817 = vmatpush3.bf16.msra.mxu0 %v1252_v24 }
 0x2d3   : > { %1818 = vmatprep.subr.bf16.mxu0 %v1253_v48 }
 0x2d4   : > { %1791 = vmatpush3.bf16.msra.mxu1 %v1113_v61  ;;  %v1340_v61 = vld [vmem:[%s2398_s12 + $0x20] sm:$0xff] }
 0x2d5   : > { %1792 = vmatprep.subr.bf16.mxu1 %v1114_v0  ;;  %v1358_v63 = vpack.c.bf16 %v1341_v62, %v1340_v61  ;;  %v1576_v62 = vld [vmem:[%s2397_s11] ss:$0 sm:$0xff] }
 0x2d6   : > { %1819 = vmatpush3.bf16.msra.mxu0 %v1253_v48 }
 0x2d7   : > { %1820 = vmatprep.subr.bf16.mxu0 %v1254_v51 }
 0x2d8   : > { %1793 = vmatpush3.bf16.msra.mxu1 %v1114_v0  ;;  %v1342_v0 = vld [vmem:[%s2398_s12 + $0x30] sm:$0xff] }
 0x2d9   : > { %1794 = vmatprep.subr.bf16.mxu1 %v1115_v3  ;;  %v1359_v2 = vpack.c.bf16 %v1343_v1, %v1342_v0 }
 0x2da   : > { %1821 = vmatpush3.bf16.msra.mxu0 %v1254_v51 }
 0x2db   : > { %1822 = vmatprep.subr.bf16.mxu0 %v1255_v54 }
 0x2dc   : > { %1795 = vmatpush3.bf16.msra.mxu1 %v1115_v3  ;;  %v1344_v3 = vld [vmem:[%s2398_s12 + $0x40] sm:$0xff] }
 0x2dd   : > { %1796 = vmatprep.subr.bf16.mxu1 %v1116_v6  ;;  %v1360_v5 = vpack.c.bf16 %v1345_v4, %v1344_v3 }
 0x2de   : > { %1823 = vmatpush3.bf16.msra.mxu0 %v1255_v54 }
 0x2e0   : > { %1797 = vmatpush3.bf16.msra.mxu1 %v1116_v6  ;;  %v1346_v6 = vld [vmem:[%s2398_s12 + $0x50] sm:$0xff] }
 0x2e1   : > { %1798 = vmatprep.subr.bf16.mxu1 %v1117_v9  ;;  %v1361_v8 = vpack.c.bf16 %v1347_v7, %v1346_v6 }
 0x2e4   : > { %1799 = vmatpush3.bf16.msra.mxu1 %v1117_v9  ;;  %v1573_v9 = vld [vmem:[%s2393_s7] ss:$0 sm:$0xff] }
 0x2e5   : > { %1832 = vmatprep.subr.bf16.mxu1 %v1356_v58 }
 0x39a   : > { %v1778_v26 = vpop.f32.mrb[8].mxu1 }
 0x39b   : > { %v1060_v27 = vadd.f32 %v1778_v26, %v1548_v25  ;;  %v1051_v28 = vpop.f32.mrb[9].mxu1 }
 0x39c   : > { %v1052_v29 = vadd.f32 %v1548_v25, %v1051_v28  ;;  %v1779_v30 = vpop.f32.mrb[10].mxu1 }
 0x39d   : > { %1084 = vst [vmem:[%s504_s16 + $0x10] sm:$0xff] %v1060_v27  ;;  %v1063_v31 = vadd.f32 %v1779_v30, %v1548_v25  ;;  %v1054_v32 = vpop.f32.mrb[11].mxu1 }
 0x39e   : > { %1082 = vst [vmem:[%s504_s16] sm:$0xff] %v1052_v29  ;;  %v1055_v33 = vadd.f32 %v1548_v25, %v1054_v32 }
 0x39f   : > { %1085 = vst [vmem:[%s504_s16 + $0x18] sm:$0xff] %v1063_v31  ;;  %v1107_v34 = vpack.c.bf16 %v1063_v31, %v1060_v27 }
 0x3a0   : > { %1083 = vst [vmem:[%s504_s16 + $0x8] sm:$0xff] %v1055_v33  ;;  %v1106_v35 = vpack.c.bf16 %v1055_v33, %v1052_v29 }
 0x3a2   : > { %v1782_v36 = vpop.f32.mrb[12].mxu1  ;;  %1800 = vmatprep.mubr.bf16.mxu1 %v1106_v35 }
 0x3a3   : > { %v1076_v37 = vadd.f32 %v1782_v36, %v1548_v25  ;;  %v1067_v38 = vpop.f32.mrb[13].mxu1  ;;  %1801 = vmatmul.mubr.bf16.vlgmr.msra.gmra.mrb[16].mxu1 %v1107_v34 }
 0x3a4   : > { %v1068_v39 = vadd.f32 %v1548_v25, %v1067_v38  ;;  %v1783_v40 = vpop.f32.mrb[14].mxu1  ;;  %1833 = vmatpush3.bf16.msra.mxu1 %v1356_v58  ;;  %v1362_v58 = vpack.c.bf16 %v1349_v57, %v1348_v56 }
 0x3a5   : > { %1088 = vst [vmem:[%s504_s16 + $0x30] sm:$0xff] %v1076_v37  ;;  %v1079_v41 = vadd.f32 %v1783_v40, %v1548_v25  ;;  %v1070_v42 = vpop.f32.mrb[15].mxu1  ;;  %1834 = vmatprep.subr.bf16.mxu1 %v1357_v60 }
 0x3a6   : > { %1086 = vst [vmem:[%s504_s16 + $0x20] sm:$0xff] %v1068_v39  ;;  %v1071_v43 = vadd.f32 %v1548_v25, %v1070_v42 }
 0x3a7   : > { %1089 = vst [vmem:[%s504_s16 + $0x38] sm:$0xff] %v1079_v41  ;;  %v1109_v44 = vpack.c.bf16 %v1079_v41, %v1076_v37 }
 0x3a8   : > { %1087 = vst [vmem:[%s504_s16 + $0x28] sm:$0xff] %v1071_v43  ;;  %v1108_v45 = vpack.c.bf16 %v1071_v43, %v1068_v39  ;;  %1835 = vmatpush3.bf16.msra.mxu1 %v1357_v60  ;;  %v1351_v60 = vld [vmem:[%s2398_s12 + $0x78] sm:$0xff] }
 0x3a9   : > { %1836 = vmatprep.subr.bf16.mxu1 %v1358_v63  ;;  %v1363_v61 = vpack.c.bf16 %v1351_v60, %v1350_v59 }
 0x3aa   : > { %1804 = vmatprep.mubr.bf16.mxu1 %v1108_v45 }
 0x3ab   : > { %1805 = vmatmul.mubr.bf16.gmra.mrb[20].mxu1 %v1109_v44 }
 0x3ac   : > { %1837 = vmatpush3.bf16.msra.mxu1 %v1358_v63 }
 0x3ad   : > { %1838 = vmatprep.subr.bf16.mxu1 %v1359_v2 }
 0x3b0   : > { %1839 = vmatpush3.bf16.msra.mxu1 %v1359_v2 }
 0x3b1   : > { %1840 = vmatprep.subr.bf16.mxu1 %v1360_v5 }
 0x3b4   : > { %1841 = vmatpush3.bf16.msra.mxu1 %v1360_v5 }
 0x3b5   : > { %1842 = vmatprep.subr.bf16.mxu1 %v1361_v8 }
 0x3b8   : > { %1843 = vmatpush3.bf16.msra.mxu1 %v1361_v8 }
 0x3b9   : > { %1844 = vmatprep.subr.bf16.mxu1 %v1362_v58 }
 0x3bc   : > { %1845 = vmatpush3.bf16.msra.mxu1 %v1362_v58 }
 0x3bd   : > { %1846 = vmatprep.subr.bf16.mxu1 %v1363_v61 }
 0x3c0   : > { %1847 = vmatpush3.bf16.msra.mxu1 %v1363_v61 }
 0x476   : > { %v1802_v10 = vpop.f32.mrb[16].mxu1 }
 0x477   : > { %v1168_v11 = vadd.f32 %v1802_v10, %v1573_v9  ;;  %v1159_v12 = vpop.f32.mrb[17].mxu1 }
 0x478   : > { %v1160_v14 = vadd.f32 %v1573_v9, %v1159_v12  ;;  %v1803_v15 = vpop.f32.mrb[18].mxu1 }
 0x479   : > { %v1192_v16 = vmax.f32 %v1168_v11, 0.0  ;;  %v1171_v17 = vadd.f32 %v1803_v15, %v1573_v9  ;;  %v1162_v18 = vpop.f32.mrb[19].mxu1 }
 0x47a   : > { %v1190_v19 = vmax.f32 %v1160_v14, 0.0  ;;  %v1163_v20 = vadd.f32 %v1573_v9, %v1162_v18 }
 0x47b   : > { %v1207_v21 = vmul.f32 %v1574_v13, %v1192_v16  ;;  %v1193_v22 = vmax.f32 %v1171_v17, 0.0 }
 0x47c   : > { %v1205_v24 = vmul.f32 %v1574_v13, %v1190_v19  ;;  %v1191_v25 = vmax.f32 %v1163_v20, 0.0 }
 0x47d   : > { %v1208_v26 = vmul.f32 %v1574_v13, %v1193_v22  ;;  %v1222_v29 = vadd.f32 %v1575_v23, %v1207_v21 }
 0x47e   : > { %v1206_v27 = vmul.f32 %v1574_v13, %v1191_v25  ;;  %v1806_v28 = vpop.f32.mrb[20].mxu1  ;;  %v1220_v33 = vadd.f32 %v1575_v23, %v1205_v24 }
 0x47f   : > { %v1223_v30 = vadd.f32 %v1575_v23, %v1208_v26  ;;  %v1184_v31 = vadd.f32 %v1806_v28, %v1573_v9  ;;  %v1175_v32 = vpop.f32.mrb[21].mxu1 }
 0x480   : > { %v1221_v34 = vadd.f32 %v1575_v23, %v1206_v27  ;;  %v1176_v35 = vadd.f32 %v1573_v9, %v1175_v32  ;;  %v1807_v36 = vpop.f32.mrb[22].mxu1  ;;  %v1577_v27 = vld [vmem:[%s2399_s13] ss:$0 sm:$0xff] }
 0x481   : > { %v1245_v37 = vpack.c.bf16 %v1223_v30, %v1222_v29  ;;  %v1196_v38 = vmax.f32 %v1184_v31, 0.0  ;;  %v1187_v39 = vadd.f32 %v1807_v36, %v1573_v9  ;;  %v1178_v40 = vpop.f32.mrb[23].mxu1 }
 0x482   : > { %v1194_v41 = vmax.f32 %v1176_v35, 0.0  ;;  %v1179_v42 = vadd.f32 %v1573_v9, %v1178_v40  ;;  %v1244_v43 = vpack.c.bf16 %v1221_v34, %v1220_v33 }
 0x483   : > { %v1211_v44 = vmul.f32 %v1574_v13, %v1196_v38  ;;  %v1197_v45 = vmax.f32 %v1187_v39, 0.0 }
 0x484   : > { %v1209_v46 = vmul.f32 %v1574_v13, %v1194_v41  ;;  %v1195_v47 = vmax.f32 %v1179_v42, 0.0  ;;  %1824 = vmatprep.mubr.bf16.mxu0 %v1244_v43 }
 0x485   : > { %v1212_v48 = vmul.f32 %v1574_v13, %v1197_v45  ;;  %1825 = vmatmul.mubr.bf16.vlgmr.msra.gmra.mrb[20].mxu0 %v1245_v37  ;;  %v1226_v50 = vadd.f32 %v1575_v23, %v1211_v44 }
 0x486   : > { %v1210_v49 = vmul.f32 %v1574_v13, %v1195_v47  ;;  %v1224_v52 = vadd.f32 %v1575_v23, %v1209_v46 }
 0x487   : > { %v1227_v51 = vadd.f32 %v1575_v23, %v1212_v48 }
 0x488   : > { %v1225_v53 = vadd.f32 %v1575_v23, %v1210_v49 }
 0x489   : > { %v1247_v54 = vpack.c.bf16 %v1227_v51, %v1226_v50 }
 0x48a   : > { %v1246_v55 = vpack.c.bf16 %v1225_v53, %v1224_v52 }
 0x48c   : > { %1828 = vmatprep.mubr.bf16.mxu0 %v1246_v55 }
 0x48d   : > { %1829 = vmatmul.mubr.bf16.gmra.mrb[24].mxu0 %v1247_v54 }
 0x558   : > { %v1826_v63 = vpop.f32.mrb[20].mxu0 }
 0x559   : > { %v1306_v0 = vadd.f32 %v1826_v63, %v1576_v62  ;;  %v1297_v1 = vpop.f32.mrb[21].mxu0 }
 0x55a   : > { %v1298_v2 = vadd.f32 %v1576_v62, %v1297_v1  ;;  %v1827_v3 = vpop.f32.mrb[22].mxu0 }
 0x55b   : > { %v1309_v4 = vadd.f32 %v1827_v3, %v1576_v62  ;;  %v1300_v5 = vpop.f32.mrb[23].mxu0  ;;  %v1330_v7 = vmax.f32 %v1306_v0, 0.0 }
 0x55c   : > { %v1301_v6 = vadd.f32 %v1576_v62, %v1300_v5  ;;  %v1328_v9 = vmax.f32 %v1298_v2, 0.0 }
 0x55d   : > { %v1331_v8 = vmax.f32 %v1309_v4, 0.0 }
 0x55e   : > { %v1329_v10 = vmax.f32 %v1301_v6, 0.0 }
 0x55f   : > { %v1353_v11 = vpack.c.bf16 %v1331_v8, %v1330_v7 }
 0x560   : > { %v1352_v12 = vpack.c.bf16 %v1329_v10, %v1328_v9  ;;  %v1830_v13 = vpop.f32.mrb[24].mxu0 }
 0x561   : > { %v1322_v14 = vadd.f32 %v1830_v13, %v1576_v62  ;;  %v1313_v15 = vpop.f32.mrb[25].mxu0 }
 0x562   : > { %v1314_v16 = vadd.f32 %v1576_v62, %v1313_v15  ;;  %v1831_v17 = vpop.f32.mrb[26].mxu0  ;;  %1848 = vmatprep.mubr.bf16.mxu1 %v1352_v12 }
 0x563   : > { %v1325_v18 = vadd.f32 %v1831_v17, %v1576_v62  ;;  %v1316_v19 = vpop.f32.mrb[27].mxu0  ;;  %1849 = vmatmul.mubr.bf16.vlgmr.msra.gmra.mrb[24].mxu1 %v1353_v11  ;;  %v1334_v21 = vmax.f32 %v1322_v14, 0.0 }
 0x564   : > { %v1317_v20 = vadd.f32 %v1576_v62, %v1316_v19  ;;  %v1332_v23 = vmax.f32 %v1314_v16, 0.0 }
 0x565   : > { %v1335_v22 = vmax.f32 %v1325_v18, 0.0 }
 0x566   : > { %v1333_v24 = vmax.f32 %v1317_v20, 0.0 }
 0x567   : > { %v1355_v25 = vpack.c.bf16 %v1335_v22, %v1334_v21 }
 0x568   : > { %v1354_v26 = vpack.c.bf16 %v1333_v24, %v1332_v23 }
 0x56a   : > { %1852 = vmatprep.mubr.bf16.mxu1 %v1354_v26 }
 0x56b   : > { %1853 = vmatmul.mubr.bf16.gmra.mrb[28].mxu1 %v1355_v25 }
 0x636   : > { %v1850_v28 = vpop.f32.mrb[24].mxu1 }
 0x637   : > { %v1414_v29 = vadd.f32 %v1850_v28, %v1577_v27  ;;  %v1405_v30 = vpop.f32.mrb[25].mxu1 }
 0x638   : > { %v1406_v31 = vadd.f32 %v1577_v27, %v1405_v30  ;;  %v1851_v32 = vpop.f32.mrb[26].mxu1 }
 0x639   : > { %1438 = vst [vmem:[%s510_s28 + $0x10] sm:$0xff] %v1414_v29  ;;  %v1417_v33 = vadd.f32 %v1851_v32, %v1577_v27  ;;  %v1408_v34 = vpop.f32.mrb[27].mxu1 }
 0x63a   : > { %1436 = vst [vmem:[%s510_s28] sm:$0xff] %v1406_v31  ;;  %v1409_v35 = vadd.f32 %v1577_v27, %v1408_v34 }
 0x63b   : > { %1439 = vst [vmem:[%s510_s28 + $0x18] sm:$0xff] %v1417_v33 }
 0x63c   : > { %1437 = vst [vmem:[%s510_s28 + $0x8] sm:$0xff] %v1409_v35 }
 0x63e   : > { %v1854_v36 = vpop.f32.mrb[28].mxu1 }
 0x63f   : > { %v1430_v37 = vadd.f32 %v1854_v36, %v1577_v27  ;;  %v1421_v38 = vpop.f32.mrb[29].mxu1 }
 0x640   : > { %v1422_v39 = vadd.f32 %v1577_v27, %v1421_v38  ;;  %v1855_v40 = vpop.f32.mrb[30].mxu1 }
 0x641   : > { %1442 = vst [vmem:[%s510_s28 + $0x30] sm:$0xff] %v1430_v37  ;;  %v1433_v41 = vadd.f32 %v1855_v40, %v1577_v27  ;;  %v1424_v42 = vpop.f32.mrb[31].mxu1 }
 0x642   : > { %1440 = vst [vmem:[%s510_s28 + $0x20] sm:$0xff] %v1422_v39  ;;  %v1425_v43 = vadd.f32 %v1577_v27, %v1424_v42 }
 0x643   : > { %1443 = vst [vmem:[%s510_s28 + $0x38] sm:$0xff] %v1433_v41 }
 0x644   : > { %1441 = vst [vmem:[%s510_s28 + $0x28] sm:$0xff] %v1425_v43 }
 0x645 PF: > { %s26_s18 = sadd.s32 1, %s1907_s18  }
 0x646   : > { %p23_p4 = scmp.ge.s32.totalorder %s26_s18, 4  }
 0x648   :  { %25 = sbr.rel (!%p23_p4) target bundleno = 1 (0x1), region = 119 }

</bundles_post_ra>
